<compile_context>
chip_gen: v5e
topology: v5e:2x2
jax: 0.10.0
libtpu: 0.0.40
codegen_flags: <defaults>
</compile_context>

<pallas_src>
import math
from functools import partial

import jax
import jax.numpy as jnp
from jax.experimental import pallas as pl
from jax.experimental.pallas import tpu as pltpu

# ----------------------- config -----------------------
VOCAB = 30
MAX_POS = 16
TYPE_VOCAB = 2
HIDDEN = 32
N_HEADS = 4
HEAD_DIM = HIDDEN // N_HEADS
INTERMEDIATE = 64
N_LAYERS = 2
N_LABELS = 14
LN_EPS = 1e-12


# ----------------------- helpers -----------------------
def _full_specs(arrays):
    """Whole-array BlockSpecs for a grid=(1,) call."""
    return [pl.BlockSpec(a.shape, lambda i, nd=a.ndim: (0,) * nd) for a in arrays]


def _ln(y, g, b):
    """Row-wise LayerNorm (f32) — in-kernel epilogue."""
    mean = jnp.mean(y, axis=-1, keepdims=True)
    var = jnp.mean(jnp.square(y - mean), axis=-1, keepdims=True)
    inv = jax.lax.rsqrt(var + LN_EPS)
    return (y - mean) * inv * g + b


# ----------------------- fused forward kernel -----------------------
def _bert_forward_kernel(ids_ref, word_ref, pos_ref, type_ref,
                         emb_g_ref, emb_b_ref,
                         qkv_w_ref, qkv_b_ref, o_w_ref, o_b_ref,
                         ln1_g_ref, ln1_b_ref, ff1_w_ref, ff1_b_ref,
                         ff2_w_ref, ff2_b_ref, ln2_g_ref, ln2_b_ref,
                         pool_w_ref, pool_b_ref, cls_w_ref, cls_b_ref,
                         pred_ref, *, batch, seq, n_heads, head_dim, n_layers):
    hidden = n_heads * head_dim
    bs = batch * seq

    # ---- embedding gather as a one-hot matmul (MXU; no XLA gather, no scratch) ----
    ids = ids_ref[...]                                             # (B*S, 1) int32
    iota = jax.lax.broadcasted_iota(jnp.int32, (bs, VOCAB), 1)
    onehot = (iota == ids).astype(jnp.float32)
    emb = jnp.dot(onehot, word_ref[...], preferred_element_type=jnp.float32)
    pos = pos_ref[0:seq, :]                                        # (S, H) static slice
    emb = emb + jnp.concatenate([pos] * batch, axis=0) + type_ref[0:1, :]
    # token_type_ids are all-zero (HF default), no attention mask (forward(texts)).
    h = _ln(emb, emb_g_ref[...], emb_b_ref[...])                   # (B*S, H)

    scale = 1.0 / math.sqrt(head_dim)
    for l in range(n_layers):                                      # static unroll (2 layers)
        qkv_w, qkv_b = qkv_w_ref[l], qkv_b_ref[l]
        o_w, o_b = o_w_ref[l], o_b_ref[l]
        ln1_g, ln1_b = ln1_g_ref[l], ln1_b_ref[l]
        ff1_w, ff1_b = ff1_w_ref[l], ff1_b_ref[l]
        ff2_w, ff2_b = ff2_w_ref[l], ff2_b_ref[l]
        ln2_g, ln2_b = ln2_g_ref[l], ln2_b_ref[l]

        # ---- fused QKV projection: one (B*S, 3H) matmul ----
        qkv = jnp.dot(h, qkv_w, preferred_element_type=jnp.float32) + qkv_b
        q = qkv[:, 0:hidden]
        k = qkv[:, hidden:2 * hidden]
        v = qkv[:, 2 * hidden:3 * hidden]

        # ---- multi-head self-attention; per-batch outputs stay in vregs ----
        attn_blocks = []
        for b in range(batch):                                     # static unroll (batch=2)
            r0 = b * seq
            ctx_heads = []
            for hh in range(n_heads):                              # static unroll (heads=4)
                c0 = hh * head_dim
                qs = q[r0:r0 + seq, c0:c0 + head_dim]
                ks = k[r0:r0 + seq, c0:c0 + head_dim]
                vs = v[r0:r0 + seq, c0:c0 + head_dim]
                s = jax.lax.dot_general(qs, ks, (((1,), (1,)), ((), ())),
                                        preferred_element_type=jnp.float32) * scale
                s = s - jnp.max(s, axis=-1, keepdims=True)
                p = jnp.exp(s)
                p = p * pl.reciprocal(jnp.sum(p, axis=-1, keepdims=True), approx=True)
                ctx_heads.append(jnp.dot(p, vs, preferred_element_type=jnp.float32))
            # heads merged along lanes, then ONE (seq,hidden)@(hidden,hidden) projection
            ctx_all = jnp.concatenate(ctx_heads, axis=-1)          # (S, H)
            attn_blocks.append(jnp.dot(ctx_all, o_w,
                                       preferred_element_type=jnp.float32))
        attn_out = jnp.concatenate(attn_blocks, axis=0) + o_b      # (B*S, H), no scratch

        # ---- residual + LN1 ----
        h1 = _ln(h + attn_out, ln1_g, ln1_b)

        # ---- FFN(gelu) + FFN2 + residual + LN2 ----
        ffn = jnp.dot(h1, ff1_w, preferred_element_type=jnp.float32) + ff1_b
        ffn = jax.nn.gelu(ffn, approximate=True)  # TODO(synk): exact erf GELU (HF default) once erf lowering is verified
        ffn = jnp.dot(ffn, ff2_w, preferred_element_type=jnp.float32) + ff2_b
        h = _ln(h1 + ffn, ln2_g, ln2_b)

    # ---- fused head: pooler(tanh) + classifier(sigmoid) on the [CLS] rows ----
    cls_rows = jnp.concatenate([h[b * seq:b * seq + 1, :] for b in range(batch)],
                               axis=0)                             # (B, H)
    pooled = jnp.tanh(jnp.dot(cls_rows, pool_w_ref[...],
                              preferred_element_type=jnp.float32) + pool_b_ref[...])
    logits = (jnp.dot(pooled, cls_w_ref[...], preferred_element_type=jnp.float32)
              + cls_b_ref[...])
    pred_ref[...] = jax.nn.sigmoid(logits).astype(pred_ref.dtype)


def pallas_bert_forward(params, token_ids):
    B, S = token_ids.shape
    ids = token_ids.reshape(B * S, 1).astype(jnp.int32)
    L = params["layers"]
    args = (ids,
            params["word_emb"], params["pos_emb"], params["type_emb"],
            params["emb_ln_g"], params["emb_ln_b"],
            L["qkv_w"], L["qkv_b"], L["o_w"], L["o_b"],
            L["ln1_g"], L["ln1_b"], L["ff1_w"], L["ff1_b"],
            L["ff2_w"], L["ff2_b"], L["ln2_g"], L["ln2_b"],
            params["pool_w"], params["pool_b"], params["cls_w"], params["cls_b"])
    return pl.pallas_call(
        partial(_bert_forward_kernel, batch=B, seq=S,
                n_heads=N_HEADS, head_dim=HEAD_DIM, n_layers=N_LAYERS),
        out_shape=jax.ShapeDtypeStruct((B, N_LABELS), jnp.float32),
        grid=(1,),
        in_specs=_full_specs(args),
        out_specs=pl.BlockSpec((B, N_LABELS), lambda i: (0, 0)),
        compiler_params=pltpu.CompilerParams(dimension_semantics=("arbitrary",)),
    )(*args)


# ----------------------- parameters -----------------------
def init_params(key):
    keys = list(jax.random.split(key, 64))
    it = iter(keys)

    def w(shape):
        return 0.02 * jax.random.normal(next(it), shape, jnp.float32)

    def zeros(shape):
        return jnp.zeros(shape, jnp.float32)

    def ones(shape):
        return jnp.ones(shape, jnp.float32)

    layers = []
    for _ in range(N_LAYERS):
        q_w, k_w, v_w = w((HIDDEN, HIDDEN)), w((HIDDEN, HIDDEN)), w((HIDDEN, HIDDEN))
        layers.append({
            # Q/K/V fused into one (H, 3H) matmul (concat hoisted to init).
            "qkv_w": jnp.concatenate([q_w, k_w, v_w], axis=1),
            "qkv_b": zeros((1, 3 * HIDDEN)),
            "o_w": w((HIDDEN, HIDDEN)), "o_b": zeros((1, HIDDEN)),
            "ln1_g": ones((1, HIDDEN)), "ln1_b": zeros((1, HIDDEN)),
            "ff1_w": w((HIDDEN, INTERMEDIATE)), "ff1_b": zeros((1, INTERMEDIATE)),
            "ff2_w": w((INTERMEDIATE, HIDDEN)), "ff2_b": zeros((1, HIDDEN)),
            "ln2_g": ones((1, HIDDEN)), "ln2_b": zeros((1, HIDDEN)),
        })
    # Stack per-layer weights along a leading axis so the fused kernel indexes
    # them with a static layer index (one ref per parameter kind).
    stacked = {k: jnp.stack([lyr[k] for lyr in layers], axis=0) for k in layers[0]}

    return {
        "word_emb": w((VOCAB, HIDDEN)),
        "pos_emb": w((MAX_POS, HIDDEN)),
        "type_emb": w((TYPE_VOCAB, HIDDEN)),
        "emb_ln_g": ones((1, HIDDEN)),
        "emb_ln_b": zeros((1, HIDDEN)),
        "layers": stacked,
        "pool_w": w((HIDDEN, HIDDEN)),
        "pool_b": zeros((1, HIDDEN)),
        "cls_w": w((HIDDEN, N_LABELS)),
        "cls_b": zeros((1, N_LABELS)),
    }


# ----------------------- forward -----------------------
def bertmodel_forward(params, token_ids, labels=None):
    """Mirrors bertmodel.forward: pred = sigmoid(Linear(pooler_out)); optional CE loss."""
    pred = pallas_bert_forward(params, token_ids)
    if labels is not None:
        # CrossEntropyLoss applied to sigmoid outputs, as in the reference (JAX glue;
        # inference path labels=None is the hot path).
        logp = jax.nn.log_softmax(pred, axis=-1)
        return -jnp.mean(jnp.take_along_axis(logp, labels[:, None], axis=-1))
    return pred


# ----------------------- main -----------------------
if __name__ == "__main__":
    key = jax.random.PRNGKey(0)
    pkey, dkey = jax.random.split(key)
    params = init_params(pkey)

    B, S = 2, 8
    texts = jax.random.randint(dkey, (B, S), 0, VOCAB, dtype=jnp.int32)

    pred = jax.jit(lambda p, t: bertmodel_forward(p, t))(params, texts)
    jax.block_until_ready(pred)
    assert pred.shape == (B, N_LABELS) and pred.dtype == jnp.float32
    assert bool(jnp.all(jnp.isfinite(pred)))
    print("KERNEL_OK")
</pallas_src>

<mosaic_0001>
module attributes {stable_mosaic.version = 11 : i64} {
  func.func @_bert_forward_kernel(%arg0: i32, %arg1: memref<16x1xi32, #tpu.memory_space<vmem>>, %arg2: memref<30x32xf32, #tpu.memory_space<vmem>>, %arg3: memref<16x32xf32, #tpu.memory_space<vmem>>, %arg4: memref<2x32xf32, #tpu.memory_space<vmem>>, %arg5: memref<1x32xf32, #tpu.memory_space<vmem>>, %arg6: memref<1x32xf32, #tpu.memory_space<vmem>>, %arg7: memref<2x32x96xf32, #tpu.memory_space<vmem>>, %arg8: memref<2x1x96xf32, #tpu.memory_space<vmem>>, %arg9: memref<2x32x32xf32, #tpu.memory_space<vmem>>, %arg10: memref<2x1x32xf32, #tpu.memory_space<vmem>>, %arg11: memref<2x1x32xf32, #tpu.memory_space<vmem>>, %arg12: memref<2x1x32xf32, #tpu.memory_space<vmem>>, %arg13: memref<2x32x64xf32, #tpu.memory_space<vmem>>, %arg14: memref<2x1x64xf32, #tpu.memory_space<vmem>>, %arg15: memref<2x64x32xf32, #tpu.memory_space<vmem>>, %arg16: memref<2x1x32xf32, #tpu.memory_space<vmem>>, %arg17: memref<2x1x32xf32, #tpu.memory_space<vmem>>, %arg18: memref<2x1x32xf32, #tpu.memory_space<vmem>>, %arg19: memref<32x32xf32, #tpu.memory_space<vmem>>, %arg20: memref<1x32xf32, #tpu.memory_space<vmem>>, %arg21: memref<32x14xf32, #tpu.memory_space<vmem>>, %arg22: memref<1x14xf32, #tpu.memory_space<vmem>>, %arg23: memref<2x14xf32, #tpu.memory_space<vmem>>) attributes {dimension_semantics = [#tpu.dimension_semantics<arbitrary>], iteration_bounds = array<i64: 1>, scalar_prefetch = 0 : i64, scratch_operands = 0 : i64, tpu.core_type = #tpu.core_type<tc>, window_params = [{pipeline_mode = #tpu.pipeline_mode<synchronous>, transform_indices = @transform_0, window_bounds = array<i64: 16, 1>}, {pipeline_mode = #tpu.pipeline_mode<synchronous>, transform_indices = @transform_1, window_bounds = array<i64: 30, 32>}, {pipeline_mode = #tpu.pipeline_mode<synchronous>, transform_indices = @transform_2, window_bounds = array<i64: 16, 32>}, {pipeline_mode = #tpu.pipeline_mode<synchronous>, transform_indices = @transform_3, window_bounds = array<i64: 2, 32>}, {pipeline_mode = #tpu.pipeline_mode<synchronous>, transform_indices = @transform_4, window_bounds = array<i64: 1, 32>}, {pipeline_mode = #tpu.pipeline_mode<synchronous>, transform_indices = @transform_5, window_bounds = array<i64: 1, 32>}, {pipeline_mode = #tpu.pipeline_mode<synchronous>, transform_indices = @transform_6, window_bounds = array<i64: 2, 32, 96>}, {pipeline_mode = #tpu.pipeline_mode<synchronous>, transform_indices = @transform_7, window_bounds = array<i64: 2, 1, 96>}, {pipeline_mode = #tpu.pipeline_mode<synchronous>, transform_indices = @transform_8, window_bounds = array<i64: 2, 32, 32>}, {pipeline_mode = #tpu.pipeline_mode<synchronous>, transform_indices = @transform_9, window_bounds = array<i64: 2, 1, 32>}, {pipeline_mode = #tpu.pipeline_mode<synchronous>, transform_indices = @transform_10, window_bounds = array<i64: 2, 1, 32>}, {pipeline_mode = #tpu.pipeline_mode<synchronous>, transform_indices = @transform_11, window_bounds = array<i64: 2, 1, 32>}, {pipeline_mode = #tpu.pipeline_mode<synchronous>, transform_indices = @transform_12, window_bounds = array<i64: 2, 32, 64>}, {pipeline_mode = #tpu.pipeline_mode<synchronous>, transform_indices = @transform_13, window_bounds = array<i64: 2, 1, 64>}, {pipeline_mode = #tpu.pipeline_mode<synchronous>, transform_indices = @transform_14, window_bounds = array<i64: 2, 64, 32>}, {pipeline_mode = #tpu.pipeline_mode<synchronous>, transform_indices = @transform_15, window_bounds = array<i64: 2, 1, 32>}, {pipeline_mode = #tpu.pipeline_mode<synchronous>, transform_indices = @transform_16, window_bounds = array<i64: 2, 1, 32>}, {pipeline_mode = #tpu.pipeline_mode<synchronous>, transform_indices = @transform_17, window_bounds = array<i64: 2, 1, 32>}, {pipeline_mode = #tpu.pipeline_mode<synchronous>, transform_indices = @transform_18, window_bounds = array<i64: 32, 32>}, {pipeline_mode = #tpu.pipeline_mode<synchronous>, transform_indices = @transform_19, window_bounds = array<i64: 1, 32>}, {pipeline_mode = #tpu.pipeline_mode<synchronous>, transform_indices = @transform_20, window_bounds = array<i64: 32, 14>}, {pipeline_mode = #tpu.pipeline_mode<synchronous>, transform_indices = @transform_21, window_bounds = array<i64: 1, 14>}, {pipeline_mode = #tpu.pipeline_mode<synchronous>, transform_indices = @transform_22, window_bounds = array<i64: 2, 14>}]} {
    %c0 = arith.constant 0 : index
    %c0_0 = arith.constant 0 : index
    %0 = vector.load %arg1[%c0, %c0_0] : memref<16x1xi32, #tpu.memory_space<vmem>>, vector<16x1xi32>
    %1 = tpu.iota {dimensions = array<i32: 1>} : vector<16x30xi32>
    %2 = vector.broadcast %0 : vector<16x1xi32> to vector<16x30xi32>
    %3 = arith.cmpi eq, %1, %2 : vector<16x30xi32>
    %4 = arith.extui %3 : vector<16x30xi1> to vector<16x30xi32>
    %5 = arith.sitofp %4 : vector<16x30xi32> to vector<16x30xf32>
    %c0_1 = arith.constant 0 : index
    %c0_2 = arith.constant 0 : index
    %6 = vector.load %arg2[%c0_1, %c0_2] : memref<30x32xf32, #tpu.memory_space<vmem>>, vector<30x32xf32>
    %cst = arith.constant dense<0.000000e+00> : vector<16x32xf32>
    %7 = tpu.matmul %5, %6, %cst {dimension_numbers = #tpu.dot_dimension_numbers<[1], [0], [0], [1], [0, 0, 1, 1], [], []>} : vector<16x30xf32>, vector<30x32xf32>, vector<16x32xf32> -> vector<16x32xf32>
    %c0_3 = arith.constant 0 : index
    %c0_4 = arith.constant 0 : index
    %8 = vector.load %arg3[%c0_3, %c0_4] : memref<16x32xf32, #tpu.memory_space<vmem>>, vector<8x32xf32>
    %9 = tpu.concatenate %8, %8 in 0 : vector<8x32xf32>, vector<8x32xf32> -> vector<16x32xf32>
    %10 = arith.addf %7, %9 : vector<16x32xf32>
    %c0_5 = arith.constant 0 : index
    %c0_6 = arith.constant 0 : index
    %11 = vector.load %arg4[%c0_5, %c0_6] : memref<2x32xf32, #tpu.memory_space<vmem>>, vector<1x32xf32>
    %12 = vector.broadcast %11 : vector<1x32xf32> to vector<16x32xf32>
    %13 = arith.addf %10, %12 : vector<16x32xf32>
    %c0_7 = arith.constant 0 : index
    %c0_8 = arith.constant 0 : index
    %14 = vector.load %arg5[%c0_7, %c0_8] : memref<1x32xf32, #tpu.memory_space<vmem>>, vector<1x32xf32>
    %c0_9 = arith.constant 0 : index
    %c0_10 = arith.constant 0 : index
    %15 = vector.load %arg6[%c0_9, %c0_10] : memref<1x32xf32, #tpu.memory_space<vmem>>, vector<1x32xf32>
    %cst_11 = arith.constant dense<0.000000e+00> : vector<16xf32>
    %16 = vector.multi_reduction <add>, %13, %cst_11 [1] : vector<16x32xf32> to vector<16xf32>
    %17 = vector.shape_cast %16 : vector<16xf32> to vector<16x1xf32>
    %cst_12 = arith.constant 3.200000e+01 : f32
    %18 = vector.broadcast %cst_12 : f32 to vector<16x1xf32>
    %19 = arith.divf %17, %18 : vector<16x1xf32>
    %20 = vector.broadcast %19 : vector<16x1xf32> to vector<16x32xf32>
    %21 = arith.subf %13, %20 : vector<16x32xf32>
    %22 = arith.mulf %21, %21 : vector<16x32xf32>
    %cst_13 = arith.constant dense<0.000000e+00> : vector<16xf32>
    %23 = vector.multi_reduction <add>, %22, %cst_13 [1] : vector<16x32xf32> to vector<16xf32>
    %24 = vector.shape_cast %23 : vector<16xf32> to vector<16x1xf32>
    %cst_14 = arith.constant 3.200000e+01 : f32
    %25 = vector.broadcast %cst_14 : f32 to vector<16x1xf32>
    %26 = arith.divf %24, %25 : vector<16x1xf32>
    %cst_15 = arith.constant 9.99999996E-13 : f32
    %27 = vector.broadcast %cst_15 : f32 to vector<16x1xf32>
    %28 = arith.addf %26, %27 : vector<16x1xf32>
    %29 = math.rsqrt %28 : vector<16x1xf32>
    %30 = vector.broadcast %19 : vector<16x1xf32> to vector<16x32xf32>
    %31 = arith.subf %13, %30 : vector<16x32xf32>
    %32 = vector.broadcast %29 : vector<16x1xf32> to vector<16x32xf32>
    %33 = arith.mulf %31, %32 : vector<16x32xf32>
    %34 = vector.broadcast %14 : vector<1x32xf32> to vector<16x32xf32>
    %35 = arith.mulf %33, %34 : vector<16x32xf32>
    %36 = vector.broadcast %15 : vector<1x32xf32> to vector<16x32xf32>
    %37 = arith.addf %35, %36 : vector<16x32xf32>
    %c0_16 = arith.constant 0 : index
    %c0_17 = arith.constant 0 : index
    %c0_18 = arith.constant 0 : index
    %38 = vector.load %arg7[%c0_16, %c0_17, %c0_18] : memref<2x32x96xf32, #tpu.memory_space<vmem>>, vector<1x32x96xf32>
    %39 = vector.shape_cast %38 : vector<1x32x96xf32> to vector<32x96xf32>
    %c0_19 = arith.constant 0 : index
    %c0_20 = arith.constant 0 : index
    %c0_21 = arith.constant 0 : index
    %40 = vector.load %arg8[%c0_19, %c0_20, %c0_21] : memref<2x1x96xf32, #tpu.memory_space<vmem>>, vector<1x1x96xf32>
    %41 = vector.shape_cast %40 : vector<1x1x96xf32> to vector<1x96xf32>
    %c0_22 = arith.constant 0 : index
    %c0_23 = arith.constant 0 : index
    %c0_24 = arith.constant 0 : index
    %42 = vector.load %arg9[%c0_22, %c0_23, %c0_24] : memref<2x32x32xf32, #tpu.memory_space<vmem>>, vector<1x32x32xf32>
    %43 = vector.shape_cast %42 : vector<1x32x32xf32> to vector<32x32xf32>
    %c0_25 = arith.constant 0 : index
    %c0_26 = arith.constant 0 : index
    %c0_27 = arith.constant 0 : index
    %44 = vector.load %arg10[%c0_25, %c0_26, %c0_27] : memref<2x1x32xf32, #tpu.memory_space<vmem>>, vector<1x1x32xf32>
    %45 = vector.shape_cast %44 : vector<1x1x32xf32> to vector<1x32xf32>
    %c0_28 = arith.constant 0 : index
    %c0_29 = arith.constant 0 : index
    %c0_30 = arith.constant 0 : index
    %46 = vector.load %arg11[%c0_28, %c0_29, %c0_30] : memref<2x1x32xf32, #tpu.memory_space<vmem>>, vector<1x1x32xf32>
    %47 = vector.shape_cast %46 : vector<1x1x32xf32> to vector<1x32xf32>
    %c0_31 = arith.constant 0 : index
    %c0_32 = arith.constant 0 : index
    %c0_33 = arith.constant 0 : index
    %48 = vector.load %arg12[%c0_31, %c0_32, %c0_33] : memref<2x1x32xf32, #tpu.memory_space<vmem>>, vector<1x1x32xf32>
    %49 = vector.shape_cast %48 : vector<1x1x32xf32> to vector<1x32xf32>
    %c0_34 = arith.constant 0 : index
    %c0_35 = arith.constant 0 : index
    %c0_36 = arith.constant 0 : index
    %50 = vector.load %arg13[%c0_34, %c0_35, %c0_36] : memref<2x32x64xf32, #tpu.memory_space<vmem>>, vector<1x32x64xf32>
    %51 = vector.shape_cast %50 : vector<1x32x64xf32> to vector<32x64xf32>
    %c0_37 = arith.constant 0 : index
    %c0_38 = arith.constant 0 : index
    %c0_39 = arith.constant 0 : index
    %52 = vector.load %arg14[%c0_37, %c0_38, %c0_39] : memref<2x1x64xf32, #tpu.memory_space<vmem>>, vector<1x1x64xf32>
    %53 = vector.shape_cast %52 : vector<1x1x64xf32> to vector<1x64xf32>
    %c0_40 = arith.constant 0 : index
    %c0_41 = arith.constant 0 : index
    %c0_42 = arith.constant 0 : index
    %54 = vector.load %arg15[%c0_40, %c0_41, %c0_42] : memref<2x64x32xf32, #tpu.memory_space<vmem>>, vector<1x64x32xf32>
    %55 = vector.shape_cast %54 : vector<1x64x32xf32> to vector<64x32xf32>
    %c0_43 = arith.constant 0 : index
    %c0_44 = arith.constant 0 : index
    %c0_45 = arith.constant 0 : index
    %56 = vector.load %arg16[%c0_43, %c0_44, %c0_45] : memref<2x1x32xf32, #tpu.memory_space<vmem>>, vector<1x1x32xf32>
    %57 = vector.shape_cast %56 : vector<1x1x32xf32> to vector<1x32xf32>
    %c0_46 = arith.constant 0 : index
    %c0_47 = arith.constant 0 : index
    %c0_48 = arith.constant 0 : index
    %58 = vector.load %arg17[%c0_46, %c0_47, %c0_48] : memref<2x1x32xf32, #tpu.memory_space<vmem>>, vector<1x1x32xf32>
    %59 = vector.shape_cast %58 : vector<1x1x32xf32> to vector<1x32xf32>
    %c0_49 = arith.constant 0 : index
    %c0_50 = arith.constant 0 : index
    %c0_51 = arith.constant 0 : index
    %60 = vector.load %arg18[%c0_49, %c0_50, %c0_51] : memref<2x1x32xf32, #tpu.memory_space<vmem>>, vector<1x1x32xf32>
    %61 = vector.shape_cast %60 : vector<1x1x32xf32> to vector<1x32xf32>
    %cst_52 = arith.constant dense<0.000000e+00> : vector<16x96xf32>
    %62 = tpu.matmul %37, %39, %cst_52 {dimension_numbers = #tpu.dot_dimension_numbers<[1], [0], [0], [1], [0, 0, 1, 1], [], []>} : vector<16x32xf32>, vector<32x96xf32>, vector<16x96xf32> -> vector<16x96xf32>
    %63 = vector.broadcast %41 : vector<1x96xf32> to vector<16x96xf32>
    %64 = arith.addf %62, %63 : vector<16x96xf32>
    %65 = vector.extract_strided_slice %64 {offsets = [0, 0], sizes = [16, 32], strides = [1, 1]} : vector<16x96xf32> to vector<16x32xf32>
    %66 = vector.extract_strided_slice %64 {offsets = [0, 32], sizes = [16, 32], strides = [1, 1]} : vector<16x96xf32> to vector<16x32xf32>
    %67 = vector.extract_strided_slice %64 {offsets = [0, 64], sizes = [16, 32], strides = [1, 1]} : vector<16x96xf32> to vector<16x32xf32>
    %68 = vector.extract_strided_slice %65 {offsets = [0, 0], sizes = [8, 8], strides = [1, 1]} : vector<16x32xf32> to vector<8x8xf32>
    %69 = vector.extract_strided_slice %66 {offsets = [0, 0], sizes = [8, 8], strides = [1, 1]} : vector<16x32xf32> to vector<8x8xf32>
    %70 = vector.extract_strided_slice %67 {offsets = [0, 0], sizes = [8, 8], strides = [1, 1]} : vector<16x32xf32> to vector<8x8xf32>
    %cst_53 = arith.constant dense<0.000000e+00> : vector<8x8xf32>
    %71 = tpu.matmul %68, %69, %cst_53 {dimension_numbers = #tpu.dot_dimension_numbers<[1], [1], [0], [0], [0, 0, 1, 0], [], []>} : vector<8x8xf32>, vector<8x8xf32>, vector<8x8xf32> -> vector<8x8xf32>
    %cst_54 = arith.constant 0.353553385 : f32
    %72 = vector.broadcast %cst_54 : f32 to vector<8x8xf32>
    %73 = arith.mulf %71, %72 : vector<8x8xf32>
    %cst_55 = arith.constant dense<0xFF800000> : vector<8xf32>
    %74 = vector.multi_reduction <maximumf>, %73, %cst_55 [1] : vector<8x8xf32> to vector<8xf32>
    %75 = vector.shape_cast %74 : vector<8xf32> to vector<8x1xf32>
    %76 = vector.broadcast %75 : vector<8x1xf32> to vector<8x8xf32>
    %77 = arith.subf %73, %76 : vector<8x8xf32>
    %78 = math.exp %77 : vector<8x8xf32>
    %cst_56 = arith.constant dense<0.000000e+00> : vector<8xf32>
    %79 = vector.multi_reduction <add>, %78, %cst_56 [1] : vector<8x8xf32> to vector<8xf32>
    %80 = vector.shape_cast %79 : vector<8xf32> to vector<8x1xf32>
    %81 = tpu.reciprocal %80 {approx = true} : vector<8x1xf32> -> vector<8x1xf32>
    %82 = vector.broadcast %81 : vector<8x1xf32> to vector<8x8xf32>
    %83 = arith.mulf %78, %82 : vector<8x8xf32>
    %cst_57 = arith.constant dense<0.000000e+00> : vector<8x8xf32>
    %84 = tpu.matmul %83, %70, %cst_57 {dimension_numbers = #tpu.dot_dimension_numbers<[1], [0], [0], [1], [0, 0, 1, 1], [], []>} : vector<8x8xf32>, vector<8x8xf32>, vector<8x8xf32> -> vector<8x8xf32>
    %85 = vector.extract_strided_slice %65 {offsets = [0, 8], sizes = [8, 8], strides = [1, 1]} : vector<16x32xf32> to vector<8x8xf32>
    %86 = vector.extract_strided_slice %66 {offsets = [0, 8], sizes = [8, 8], strides = [1, 1]} : vector<16x32xf32> to vector<8x8xf32>
    %87 = vector.extract_strided_slice %67 {offsets = [0, 8], sizes = [8, 8], strides = [1, 1]} : vector<16x32xf32> to vector<8x8xf32>
    %cst_58 = arith.constant dense<0.000000e+00> : vector<8x8xf32>
    %88 = tpu.matmul %85, %86, %cst_58 {dimension_numbers = #tpu.dot_dimension_numbers<[1], [1], [0], [0], [0, 0, 1, 0], [], []>} : vector<8x8xf32>, vector<8x8xf32>, vector<8x8xf32> -> vector<8x8xf32>
    %cst_59 = arith.constant 0.353553385 : f32
    %89 = vector.broadcast %cst_59 : f32 to vector<8x8xf32>
    %90 = arith.mulf %88, %89 : vector<8x8xf32>
    %cst_60 = arith.constant dense<0xFF800000> : vector<8xf32>
    %91 = vector.multi_reduction <maximumf>, %90, %cst_60 [1] : vector<8x8xf32> to vector<8xf32>
    %92 = vector.shape_cast %91 : vector<8xf32> to vector<8x1xf32>
    %93 = vector.broadcast %92 : vector<8x1xf32> to vector<8x8xf32>
    %94 = arith.subf %90, %93 : vector<8x8xf32>
    %95 = math.exp %94 : vector<8x8xf32>
    %cst_61 = arith.constant dense<0.000000e+00> : vector<8xf32>
    %96 = vector.multi_reduction <add>, %95, %cst_61 [1] : vector<8x8xf32> to vector<8xf32>
    %97 = vector.shape_cast %96 : vector<8xf32> to vector<8x1xf32>
    %98 = tpu.reciprocal %97 {approx = true} : vector<8x1xf32> -> vector<8x1xf32>
    %99 = vector.broadcast %98 : vector<8x1xf32> to vector<8x8xf32>
    %100 = arith.mulf %95, %99 : vector<8x8xf32>
    %cst_62 = arith.constant dense<0.000000e+00> : vector<8x8xf32>
    %101 = tpu.matmul %100, %87, %cst_62 {dimension_numbers = #tpu.dot_dimension_numbers<[1], [0], [0], [1], [0, 0, 1, 1], [], []>} : vector<8x8xf32>, vector<8x8xf32>, vector<8x8xf32> -> vector<8x8xf32>
    %102 = vector.extract_strided_slice %65 {offsets = [0, 16], sizes = [8, 8], strides = [1, 1]} : vector<16x32xf32> to vector<8x8xf32>
    %103 = vector.extract_strided_slice %66 {offsets = [0, 16], sizes = [8, 8], strides = [1, 1]} : vector<16x32xf32> to vector<8x8xf32>
    %104 = vector.extract_strided_slice %67 {offsets = [0, 16], sizes = [8, 8], strides = [1, 1]} : vector<16x32xf32> to vector<8x8xf32>
    %cst_63 = arith.constant dense<0.000000e+00> : vector<8x8xf32>
    %105 = tpu.matmul %102, %103, %cst_63 {dimension_numbers = #tpu.dot_dimension_numbers<[1], [1], [0], [0], [0, 0, 1, 0], [], []>} : vector<8x8xf32>, vector<8x8xf32>, vector<8x8xf32> -> vector<8x8xf32>
    %cst_64 = arith.constant 0.353553385 : f32
    %106 = vector.broadcast %cst_64 : f32 to vector<8x8xf32>
    %107 = arith.mulf %105, %106 : vector<8x8xf32>
    %cst_65 = arith.constant dense<0xFF800000> : vector<8xf32>
    %108 = vector.multi_reduction <maximumf>, %107, %cst_65 [1] : vector<8x8xf32> to vector<8xf32>
    %109 = vector.shape_cast %108 : vector<8xf32> to vector<8x1xf32>
    %110 = vector.broadcast %109 : vector<8x1xf32> to vector<8x8xf32>
    %111 = arith.subf %107, %110 : vector<8x8xf32>
    %112 = math.exp %111 : vector<8x8xf32>
    %cst_66 = arith.constant dense<0.000000e+00> : vector<8xf32>
    %113 = vector.multi_reduction <add>, %112, %cst_66 [1] : vector<8x8xf32> to vector<8xf32>
    %114 = vector.shape_cast %113 : vector<8xf32> to vector<8x1xf32>
    %115 = tpu.reciprocal %114 {approx = true} : vector<8x1xf32> -> vector<8x1xf32>
    %116 = vector.broadcast %115 : vector<8x1xf32> to vector<8x8xf32>
    %117 = arith.mulf %112, %116 : vector<8x8xf32>
    %cst_67 = arith.constant dense<0.000000e+00> : vector<8x8xf32>
    %118 = tpu.matmul %117, %104, %cst_67 {dimension_numbers = #tpu.dot_dimension_numbers<[1], [0], [0], [1], [0, 0, 1, 1], [], []>} : vector<8x8xf32>, vector<8x8xf32>, vector<8x8xf32> -> vector<8x8xf32>
    %119 = vector.extract_strided_slice %65 {offsets = [0, 24], sizes = [8, 8], strides = [1, 1]} : vector<16x32xf32> to vector<8x8xf32>
    %120 = vector.extract_strided_slice %66 {offsets = [0, 24], sizes = [8, 8], strides = [1, 1]} : vector<16x32xf32> to vector<8x8xf32>
    %121 = vector.extract_strided_slice %67 {offsets = [0, 24], sizes = [8, 8], strides = [1, 1]} : vector<16x32xf32> to vector<8x8xf32>
    %cst_68 = arith.constant dense<0.000000e+00> : vector<8x8xf32>
    %122 = tpu.matmul %119, %120, %cst_68 {dimension_numbers = #tpu.dot_dimension_numbers<[1], [1], [0], [0], [0, 0, 1, 0], [], []>} : vector<8x8xf32>, vector<8x8xf32>, vector<8x8xf32> -> vector<8x8xf32>
    %cst_69 = arith.constant 0.353553385 : f32
    %123 = vector.broadcast %cst_69 : f32 to vector<8x8xf32>
    %124 = arith.mulf %122, %123 : vector<8x8xf32>
    %cst_70 = arith.constant dense<0xFF800000> : vector<8xf32>
    %125 = vector.multi_reduction <maximumf>, %124, %cst_70 [1] : vector<8x8xf32> to vector<8xf32>
    %126 = vector.shape_cast %125 : vector<8xf32> to vector<8x1xf32>
    %127 = vector.broadcast %126 : vector<8x1xf32> to vector<8x8xf32>
    %128 = arith.subf %124, %127 : vector<8x8xf32>
    %129 = math.exp %128 : vector<8x8xf32>
    %cst_71 = arith.constant dense<0.000000e+00> : vector<8xf32>
    %130 = vector.multi_reduction <add>, %129, %cst_71 [1] : vector<8x8xf32> to vector<8xf32>
    %131 = vector.shape_cast %130 : vector<8xf32> to vector<8x1xf32>
    %132 = tpu.reciprocal %131 {approx = true} : vector<8x1xf32> -> vector<8x1xf32>
    %133 = vector.broadcast %132 : vector<8x1xf32> to vector<8x8xf32>
    %134 = arith.mulf %129, %133 : vector<8x8xf32>
    %cst_72 = arith.constant dense<0.000000e+00> : vector<8x8xf32>
    %135 = tpu.matmul %134, %121, %cst_72 {dimension_numbers = #tpu.dot_dimension_numbers<[1], [0], [0], [1], [0, 0, 1, 1], [], []>} : vector<8x8xf32>, vector<8x8xf32>, vector<8x8xf32> -> vector<8x8xf32>
    %136 = tpu.concatenate %84, %101, %118, %135 in 1 : vector<8x8xf32>, vector<8x8xf32>, vector<8x8xf32>, vector<8x8xf32> -> vector<8x32xf32>
    %cst_73 = arith.constant dense<0.000000e+00> : vector<8x32xf32>
    %137 = tpu.matmul %136, %43, %cst_73 {dimension_numbers = #tpu.dot_dimension_numbers<[1], [0], [0], [1], [0, 0, 1, 1], [], []>} : vector<8x32xf32>, vector<32x32xf32>, vector<8x32xf32> -> vector<8x32xf32>
    %138 = vector.extract_strided_slice %65 {offsets = [8, 0], sizes = [8, 8], strides = [1, 1]} : vector<16x32xf32> to vector<8x8xf32>
    %139 = vector.extract_strided_slice %66 {offsets = [8, 0], sizes = [8, 8], strides = [1, 1]} : vector<16x32xf32> to vector<8x8xf32>
    %140 = vector.extract_strided_slice %67 {offsets = [8, 0], sizes = [8, 8], strides = [1, 1]} : vector<16x32xf32> to vector<8x8xf32>
    %cst_74 = arith.constant dense<0.000000e+00> : vector<8x8xf32>
    %141 = tpu.matmul %138, %139, %cst_74 {dimension_numbers = #tpu.dot_dimension_numbers<[1], [1], [0], [0], [0, 0, 1, 0], [], []>} : vector<8x8xf32>, vector<8x8xf32>, vector<8x8xf32> -> vector<8x8xf32>
    %cst_75 = arith.constant 0.353553385 : f32
    %142 = vector.broadcast %cst_75 : f32 to vector<8x8xf32>
    %143 = arith.mulf %141, %142 : vector<8x8xf32>
    %cst_76 = arith.constant dense<0xFF800000> : vector<8xf32>
    %144 = vector.multi_reduction <maximumf>, %143, %cst_76 [1] : vector<8x8xf32> to vector<8xf32>
    %145 = vector.shape_cast %144 : vector<8xf32> to vector<8x1xf32>
    %146 = vector.broadcast %145 : vector<8x1xf32> to vector<8x8xf32>
    %147 = arith.subf %143, %146 : vector<8x8xf32>
    %148 = math.exp %147 : vector<8x8xf32>
    %cst_77 = arith.constant dense<0.000000e+00> : vector<8xf32>
    %149 = vector.multi_reduction <add>, %148, %cst_77 [1] : vector<8x8xf32> to vector<8xf32>
    %150 = vector.shape_cast %149 : vector<8xf32> to vector<8x1xf32>
    %151 = tpu.reciprocal %150 {approx = true} : vector<8x1xf32> -> vector<8x1xf32>
    %152 = vector.broadcast %151 : vector<8x1xf32> to vector<8x8xf32>
    %153 = arith.mulf %148, %152 : vector<8x8xf32>
    %cst_78 = arith.constant dense<0.000000e+00> : vector<8x8xf32>
    %154 = tpu.matmul %153, %140, %cst_78 {dimension_numbers = #tpu.dot_dimension_numbers<[1], [0], [0], [1], [0, 0, 1, 1], [], []>} : vector<8x8xf32>, vector<8x8xf32>, vector<8x8xf32> -> vector<8x8xf32>
    %155 = vector.extract_strided_slice %65 {offsets = [8, 8], sizes = [8, 8], strides = [1, 1]} : vector<16x32xf32> to vector<8x8xf32>
    %156 = vector.extract_strided_slice %66 {offsets = [8, 8], sizes = [8, 8], strides = [1, 1]} : vector<16x32xf32> to vector<8x8xf32>
    %157 = vector.extract_strided_slice %67 {offsets = [8, 8], sizes = [8, 8], strides = [1, 1]} : vector<16x32xf32> to vector<8x8xf32>
    %cst_79 = arith.constant dense<0.000000e+00> : vector<8x8xf32>
    %158 = tpu.matmul %155, %156, %cst_79 {dimension_numbers = #tpu.dot_dimension_numbers<[1], [1], [0], [0], [0, 0, 1, 0], [], []>} : vector<8x8xf32>, vector<8x8xf32>, vector<8x8xf32> -> vector<8x8xf32>
    %cst_80 = arith.constant 0.353553385 : f32
    %159 = vector.broadcast %cst_80 : f32 to vector<8x8xf32>
    %160 = arith.mulf %158, %159 : vector<8x8xf32>
    %cst_81 = arith.constant dense<0xFF800000> : vector<8xf32>
    %161 = vector.multi_reduction <maximumf>, %160, %cst_81 [1] : vector<8x8xf32> to vector<8xf32>
    %162 = vector.shape_cast %161 : vector<8xf32> to vector<8x1xf32>
    %163 = vector.broadcast %162 : vector<8x1xf32> to vector<8x8xf32>
    %164 = arith.subf %160, %163 : vector<8x8xf32>
    %165 = math.exp %164 : vector<8x8xf32>
    %cst_82 = arith.constant dense<0.000000e+00> : vector<8xf32>
    %166 = vector.multi_reduction <add>, %165, %cst_82 [1] : vector<8x8xf32> to vector<8xf32>
    %167 = vector.shape_cast %166 : vector<8xf32> to vector<8x1xf32>
    %168 = tpu.reciprocal %167 {approx = true} : vector<8x1xf32> -> vector<8x1xf32>
    %169 = vector.broadcast %168 : vector<8x1xf32> to vector<8x8xf32>
    %170 = arith.mulf %165, %169 : vector<8x8xf32>
    %cst_83 = arith.constant dense<0.000000e+00> : vector<8x8xf32>
    %171 = tpu.matmul %170, %157, %cst_83 {dimension_numbers = #tpu.dot_dimension_numbers<[1], [0], [0], [1], [0, 0, 1, 1], [], []>} : vector<8x8xf32>, vector<8x8xf32>, vector<8x8xf32> -> vector<8x8xf32>
    %172 = vector.extract_strided_slice %65 {offsets = [8, 16], sizes = [8, 8], strides = [1, 1]} : vector<16x32xf32> to vector<8x8xf32>
    %173 = vector.extract_strided_slice %66 {offsets = [8, 16], sizes = [8, 8], strides = [1, 1]} : vector<16x32xf32> to vector<8x8xf32>
    %174 = vector.extract_strided_slice %67 {offsets = [8, 16], sizes = [8, 8], strides = [1, 1]} : vector<16x32xf32> to vector<8x8xf32>
    %cst_84 = arith.constant dense<0.000000e+00> : vector<8x8xf32>
    %175 = tpu.matmul %172, %173, %cst_84 {dimension_numbers = #tpu.dot_dimension_numbers<[1], [1], [0], [0], [0, 0, 1, 0], [], []>} : vector<8x8xf32>, vector<8x8xf32>, vector<8x8xf32> -> vector<8x8xf32>
    %cst_85 = arith.constant 0.353553385 : f32
    %176 = vector.broadcast %cst_85 : f32 to vector<8x8xf32>
    %177 = arith.mulf %175, %176 : vector<8x8xf32>
    %cst_86 = arith.constant dense<0xFF800000> : vector<8xf32>
    %178 = vector.multi_reduction <maximumf>, %177, %cst_86 [1] : vector<8x8xf32> to vector<8xf32>
    %179 = vector.shape_cast %178 : vector<8xf32> to vector<8x1xf32>
    %180 = vector.broadcast %179 : vector<8x1xf32> to vector<8x8xf32>
    %181 = arith.subf %177, %180 : vector<8x8xf32>
    %182 = math.exp %181 : vector<8x8xf32>
    %cst_87 = arith.constant dense<0.000000e+00> : vector<8xf32>
    %183 = vector.multi_reduction <add>, %182, %cst_87 [1] : vector<8x8xf32> to vector<8xf32>
    %184 = vector.shape_cast %183 : vector<8xf32> to vector<8x1xf32>
    %185 = tpu.reciprocal %184 {approx = true} : vector<8x1xf32> -> vector<8x1xf32>
    %186 = vector.broadcast %185 : vector<8x1xf32> to vector<8x8xf32>
    %187 = arith.mulf %182, %186 : vector<8x8xf32>
    %cst_88 = arith.constant dense<0.000000e+00> : vector<8x8xf32>
    %188 = tpu.matmul %187, %174, %cst_88 {dimension_numbers = #tpu.dot_dimension_numbers<[1], [0], [0], [1], [0, 0, 1, 1], [], []>} : vector<8x8xf32>, vector<8x8xf32>, vector<8x8xf32> -> vector<8x8xf32>
    %189 = vector.extract_strided_slice %65 {offsets = [8, 24], sizes = [8, 8], strides = [1, 1]} : vector<16x32xf32> to vector<8x8xf32>
    %190 = vector.extract_strided_slice %66 {offsets = [8, 24], sizes = [8, 8], strides = [1, 1]} : vector<16x32xf32> to vector<8x8xf32>
    %191 = vector.extract_strided_slice %67 {offsets = [8, 24], sizes = [8, 8], strides = [1, 1]} : vector<16x32xf32> to vector<8x8xf32>
    %cst_89 = arith.constant dense<0.000000e+00> : vector<8x8xf32>
    %192 = tpu.matmul %189, %190, %cst_89 {dimension_numbers = #tpu.dot_dimension_numbers<[1], [1], [0], [0], [0, 0, 1, 0], [], []>} : vector<8x8xf32>, vector<8x8xf32>, vector<8x8xf32> -> vector<8x8xf32>
    %cst_90 = arith.constant 0.353553385 : f32
    %193 = vector.broadcast %cst_90 : f32 to vector<8x8xf32>
    %194 = arith.mulf %192, %193 : vector<8x8xf32>
    %cst_91 = arith.constant dense<0xFF800000> : vector<8xf32>
    %195 = vector.multi_reduction <maximumf>, %194, %cst_91 [1] : vector<8x8xf32> to vector<8xf32>
    %196 = vector.shape_cast %195 : vector<8xf32> to vector<8x1xf32>
    %197 = vector.broadcast %196 : vector<8x1xf32> to vector<8x8xf32>
    %198 = arith.subf %194, %197 : vector<8x8xf32>
    %199 = math.exp %198 : vector<8x8xf32>
    %cst_92 = arith.constant dense<0.000000e+00> : vector<8xf32>
    %200 = vector.multi_reduction <add>, %199, %cst_92 [1] : vector<8x8xf32> to vector<8xf32>
    %201 = vector.shape_cast %200 : vector<8xf32> to vector<8x1xf32>
    %202 = tpu.reciprocal %201 {approx = true} : vector<8x1xf32> -> vector<8x1xf32>
    %203 = vector.broadcast %202 : vector<8x1xf32> to vector<8x8xf32>
    %204 = arith.mulf %199, %203 : vector<8x8xf32>
    %cst_93 = arith.constant dense<0.000000e+00> : vector<8x8xf32>
    %205 = tpu.matmul %204, %191, %cst_93 {dimension_numbers = #tpu.dot_dimension_numbers<[1], [0], [0], [1], [0, 0, 1, 1], [], []>} : vector<8x8xf32>, vector<8x8xf32>, vector<8x8xf32> -> vector<8x8xf32>
    %206 = tpu.concatenate %154, %171, %188, %205 in 1 : vector<8x8xf32>, vector<8x8xf32>, vector<8x8xf32>, vector<8x8xf32> -> vector<8x32xf32>
    %cst_94 = arith.constant dense<0.000000e+00> : vector<8x32xf32>
    %207 = tpu.matmul %206, %43, %cst_94 {dimension_numbers = #tpu.dot_dimension_numbers<[1], [0], [0], [1], [0, 0, 1, 1], [], []>} : vector<8x32xf32>, vector<32x32xf32>, vector<8x32xf32> -> vector<8x32xf32>
    %208 = tpu.concatenate %137, %207 in 0 : vector<8x32xf32>, vector<8x32xf32> -> vector<16x32xf32>
    %209 = vector.broadcast %45 : vector<1x32xf32> to vector<16x32xf32>
    %210 = arith.addf %208, %209 : vector<16x32xf32>
    %211 = arith.addf %37, %210 : vector<16x32xf32>
    %cst_95 = arith.constant dense<0.000000e+00> : vector<16xf32>
    %212 = vector.multi_reduction <add>, %211, %cst_95 [1] : vector<16x32xf32> to vector<16xf32>
    %213 = vector.shape_cast %212 : vector<16xf32> to vector<16x1xf32>
    %cst_96 = arith.constant 3.200000e+01 : f32
    %214 = vector.broadcast %cst_96 : f32 to vector<16x1xf32>
    %215 = arith.divf %213, %214 : vector<16x1xf32>
    %216 = vector.broadcast %215 : vector<16x1xf32> to vector<16x32xf32>
    %217 = arith.subf %211, %216 : vector<16x32xf32>
    %218 = arith.mulf %217, %217 : vector<16x32xf32>
    %cst_97 = arith.constant dense<0.000000e+00> : vector<16xf32>
    %219 = vector.multi_reduction <add>, %218, %cst_97 [1] : vector<16x32xf32> to vector<16xf32>
    %220 = vector.shape_cast %219 : vector<16xf32> to vector<16x1xf32>
    %cst_98 = arith.constant 3.200000e+01 : f32
    %221 = vector.broadcast %cst_98 : f32 to vector<16x1xf32>
    %222 = arith.divf %220, %221 : vector<16x1xf32>
    %cst_99 = arith.constant 9.99999996E-13 : f32
    %223 = vector.broadcast %cst_99 : f32 to vector<16x1xf32>
    %224 = arith.addf %222, %223 : vector<16x1xf32>
    %225 = math.rsqrt %224 : vector<16x1xf32>
    %226 = vector.broadcast %215 : vector<16x1xf32> to vector<16x32xf32>
    %227 = arith.subf %211, %226 : vector<16x32xf32>
    %228 = vector.broadcast %225 : vector<16x1xf32> to vector<16x32xf32>
    %229 = arith.mulf %227, %228 : vector<16x32xf32>
    %230 = vector.broadcast %47 : vector<1x32xf32> to vector<16x32xf32>
    %231 = arith.mulf %229, %230 : vector<16x32xf32>
    %232 = vector.broadcast %49 : vector<1x32xf32> to vector<16x32xf32>
    %233 = arith.addf %231, %232 : vector<16x32xf32>
    %cst_100 = arith.constant dense<0.000000e+00> : vector<16x64xf32>
    %234 = tpu.matmul %233, %51, %cst_100 {dimension_numbers = #tpu.dot_dimension_numbers<[1], [0], [0], [1], [0, 0, 1, 1], [], []>} : vector<16x32xf32>, vector<32x64xf32>, vector<16x64xf32> -> vector<16x64xf32>
    %235 = vector.broadcast %53 : vector<1x64xf32> to vector<16x64xf32>
    %236 = arith.addf %234, %235 : vector<16x64xf32>
    %237 = arith.mulf %236, %236 : vector<16x64xf32>
    %238 = arith.mulf %236, %237 : vector<16x64xf32>
    %cst_101 = arith.constant 4.471500e-02 : f32
    %239 = vector.broadcast %cst_101 : f32 to vector<16x64xf32>
    %240 = arith.mulf %239, %238 : vector<16x64xf32>
    %241 = arith.addf %236, %240 : vector<16x64xf32>
    %cst_102 = arith.constant 0.797884583 : f32
    %242 = vector.broadcast %cst_102 : f32 to vector<16x64xf32>
    %243 = arith.mulf %242, %241 : vector<16x64xf32>
    %244 = math.tanh %243 : vector<16x64xf32>
    %cst_103 = arith.constant 1.000000e+00 : f32
    %245 = vector.broadcast %cst_103 : f32 to vector<16x64xf32>
    %246 = arith.addf %245, %244 : vector<16x64xf32>
    %cst_104 = arith.constant 5.000000e-01 : f32
    %247 = vector.broadcast %cst_104 : f32 to vector<16x64xf32>
    %248 = arith.mulf %247, %246 : vector<16x64xf32>
    %249 = arith.mulf %236, %248 : vector<16x64xf32>
    %cst_105 = arith.constant dense<0.000000e+00> : vector<16x32xf32>
    %250 = tpu.matmul %249, %55, %cst_105 {dimension_numbers = #tpu.dot_dimension_numbers<[1], [0], [0], [1], [0, 0, 1, 1], [], []>} : vector<16x64xf32>, vector<64x32xf32>, vector<16x32xf32> -> vector<16x32xf32>
    %251 = vector.broadcast %57 : vector<1x32xf32> to vector<16x32xf32>
    %252 = arith.addf %250, %251 : vector<16x32xf32>
    %253 = arith.addf %233, %252 : vector<16x32xf32>
    %cst_106 = arith.constant dense<0.000000e+00> : vector<16xf32>
    %254 = vector.multi_reduction <add>, %253, %cst_106 [1] : vector<16x32xf32> to vector<16xf32>
    %255 = vector.shape_cast %254 : vector<16xf32> to vector<16x1xf32>
    %cst_107 = arith.constant 3.200000e+01 : f32
    %256 = vector.broadcast %cst_107 : f32 to vector<16x1xf32>
    %257 = arith.divf %255, %256 : vector<16x1xf32>
    %258 = vector.broadcast %257 : vector<16x1xf32> to vector<16x32xf32>
    %259 = arith.subf %253, %258 : vector<16x32xf32>
    %260 = arith.mulf %259, %259 : vector<16x32xf32>
    %cst_108 = arith.constant dense<0.000000e+00> : vector<16xf32>
    %261 = vector.multi_reduction <add>, %260, %cst_108 [1] : vector<16x32xf32> to vector<16xf32>
    %262 = vector.shape_cast %261 : vector<16xf32> to vector<16x1xf32>
    %cst_109 = arith.constant 3.200000e+01 : f32
    %263 = vector.broadcast %cst_109 : f32 to vector<16x1xf32>
    %264 = arith.divf %262, %263 : vector<16x1xf32>
    %cst_110 = arith.constant 9.99999996E-13 : f32
    %265 = vector.broadcast %cst_110 : f32 to vector<16x1xf32>
    %266 = arith.addf %264, %265 : vector<16x1xf32>
    %267 = math.rsqrt %266 : vector<16x1xf32>
    %268 = vector.broadcast %257 : vector<16x1xf32> to vector<16x32xf32>
    %269 = arith.subf %253, %268 : vector<16x32xf32>
    %270 = vector.broadcast %267 : vector<16x1xf32> to vector<16x32xf32>
    %271 = arith.mulf %269, %270 : vector<16x32xf32>
    %272 = vector.broadcast %59 : vector<1x32xf32> to vector<16x32xf32>
    %273 = arith.mulf %271, %272 : vector<16x32xf32>
    %274 = vector.broadcast %61 : vector<1x32xf32> to vector<16x32xf32>
    %275 = arith.addf %273, %274 : vector<16x32xf32>
    %c1 = arith.constant 1 : index
    %c0_111 = arith.constant 0 : index
    %c0_112 = arith.constant 0 : index
    %276 = vector.load %arg7[%c1, %c0_111, %c0_112] : memref<2x32x96xf32, #tpu.memory_space<vmem>>, vector<1x32x96xf32>
    %277 = vector.shape_cast %276 : vector<1x32x96xf32> to vector<32x96xf32>
    %c1_113 = arith.constant 1 : index
    %c0_114 = arith.constant 0 : index
    %c0_115 = arith.constant 0 : index
    %278 = vector.load %arg8[%c1_113, %c0_114, %c0_115] : memref<2x1x96xf32, #tpu.memory_space<vmem>>, vector<1x1x96xf32>
    %279 = vector.shape_cast %278 : vector<1x1x96xf32> to vector<1x96xf32>
    %c1_116 = arith.constant 1 : index
    %c0_117 = arith.constant 0 : index
    %c0_118 = arith.constant 0 : index
    %280 = vector.load %arg9[%c1_116, %c0_117, %c0_118] : memref<2x32x32xf32, #tpu.memory_space<vmem>>, vector<1x32x32xf32>
    %281 = vector.shape_cast %280 : vector<1x32x32xf32> to vector<32x32xf32>
    %c1_119 = arith.constant 1 : index
    %c0_120 = arith.constant 0 : index
    %c0_121 = arith.constant 0 : index
    %282 = vector.load %arg10[%c1_119, %c0_120, %c0_121] : memref<2x1x32xf32, #tpu.memory_space<vmem>>, vector<1x1x32xf32>
    %283 = vector.shape_cast %282 : vector<1x1x32xf32> to vector<1x32xf32>
    %c1_122 = arith.constant 1 : index
    %c0_123 = arith.constant 0 : index
    %c0_124 = arith.constant 0 : index
    %284 = vector.load %arg11[%c1_122, %c0_123, %c0_124] : memref<2x1x32xf32, #tpu.memory_space<vmem>>, vector<1x1x32xf32>
    %285 = vector.shape_cast %284 : vector<1x1x32xf32> to vector<1x32xf32>
    %c1_125 = arith.constant 1 : index
    %c0_126 = arith.constant 0 : index
    %c0_127 = arith.constant 0 : index
    %286 = vector.load %arg12[%c1_125, %c0_126, %c0_127] : memref<2x1x32xf32, #tpu.memory_space<vmem>>, vector<1x1x32xf32>
    %287 = vector.shape_cast %286 : vector<1x1x32xf32> to vector<1x32xf32>
    %c1_128 = arith.constant 1 : index
    %c0_129 = arith.constant 0 : index
    %c0_130 = arith.constant 0 : index
    %288 = vector.load %arg13[%c1_128, %c0_129, %c0_130] : memref<2x32x64xf32, #tpu.memory_space<vmem>>, vector<1x32x64xf32>
    %289 = vector.shape_cast %288 : vector<1x32x64xf32> to vector<32x64xf32>
    %c1_131 = arith.constant 1 : index
    %c0_132 = arith.constant 0 : index
    %c0_133 = arith.constant 0 : index
    %290 = vector.load %arg14[%c1_131, %c0_132, %c0_133] : memref<2x1x64xf32, #tpu.memory_space<vmem>>, vector<1x1x64xf32>
    %291 = vector.shape_cast %290 : vector<1x1x64xf32> to vector<1x64xf32>
    %c1_134 = arith.constant 1 : index
    %c0_135 = arith.constant 0 : index
    %c0_136 = arith.constant 0 : index
    %292 = vector.load %arg15[%c1_134, %c0_135, %c0_136] : memref<2x64x32xf32, #tpu.memory_space<vmem>>, vector<1x64x32xf32>
    %293 = vector.shape_cast %292 : vector<1x64x32xf32> to vector<64x32xf32>
    %c1_137 = arith.constant 1 : index
    %c0_138 = arith.constant 0 : index
    %c0_139 = arith.constant 0 : index
    %294 = vector.load %arg16[%c1_137, %c0_138, %c0_139] : memref<2x1x32xf32, #tpu.memory_space<vmem>>, vector<1x1x32xf32>
    %295 = vector.shape_cast %294 : vector<1x1x32xf32> to vector<1x32xf32>
    %c1_140 = arith.constant 1 : index
    %c0_141 = arith.constant 0 : index
    %c0_142 = arith.constant 0 : index
    %296 = vector.load %arg17[%c1_140, %c0_141, %c0_142] : memref<2x1x32xf32, #tpu.memory_space<vmem>>, vector<1x1x32xf32>
    %297 = vector.shape_cast %296 : vector<1x1x32xf32> to vector<1x32xf32>
    %c1_143 = arith.constant 1 : index
    %c0_144 = arith.constant 0 : index
    %c0_145 = arith.constant 0 : index
    %298 = vector.load %arg18[%c1_143, %c0_144, %c0_145] : memref<2x1x32xf32, #tpu.memory_space<vmem>>, vector<1x1x32xf32>
    %299 = vector.shape_cast %298 : vector<1x1x32xf32> to vector<1x32xf32>
    %cst_146 = arith.constant dense<0.000000e+00> : vector<16x96xf32>
    %300 = tpu.matmul %275, %277, %cst_146 {dimension_numbers = #tpu.dot_dimension_numbers<[1], [0], [0], [1], [0, 0, 1, 1], [], []>} : vector<16x32xf32>, vector<32x96xf32>, vector<16x96xf32> -> vector<16x96xf32>
    %301 = vector.broadcast %279 : vector<1x96xf32> to vector<16x96xf32>
    %302 = arith.addf %300, %301 : vector<16x96xf32>
    %303 = vector.extract_strided_slice %302 {offsets = [0, 0], sizes = [16, 32], strides = [1, 1]} : vector<16x96xf32> to vector<16x32xf32>
    %304 = vector.extract_strided_slice %302 {offsets = [0, 32], sizes = [16, 32], strides = [1, 1]} : vector<16x96xf32> to vector<16x32xf32>
    %305 = vector.extract_strided_slice %302 {offsets = [0, 64], sizes = [16, 32], strides = [1, 1]} : vector<16x96xf32> to vector<16x32xf32>
    %306 = vector.extract_strided_slice %303 {offsets = [0, 0], sizes = [8, 8], strides = [1, 1]} : vector<16x32xf32> to vector<8x8xf32>
    %307 = vector.extract_strided_slice %304 {offsets = [0, 0], sizes = [8, 8], strides = [1, 1]} : vector<16x32xf32> to vector<8x8xf32>
    %308 = vector.extract_strided_slice %305 {offsets = [0, 0], sizes = [8, 8], strides = [1, 1]} : vector<16x32xf32> to vector<8x8xf32>
    %cst_147 = arith.constant dense<0.000000e+00> : vector<8x8xf32>
    %309 = tpu.matmul %306, %307, %cst_147 {dimension_numbers = #tpu.dot_dimension_numbers<[1], [1], [0], [0], [0, 0, 1, 0], [], []>} : vector<8x8xf32>, vector<8x8xf32>, vector<8x8xf32> -> vector<8x8xf32>
    %cst_148 = arith.constant 0.353553385 : f32
    %310 = vector.broadcast %cst_148 : f32 to vector<8x8xf32>
    %311 = arith.mulf %309, %310 : vector<8x8xf32>
    %cst_149 = arith.constant dense<0xFF800000> : vector<8xf32>
    %312 = vector.multi_reduction <maximumf>, %311, %cst_149 [1] : vector<8x8xf32> to vector<8xf32>
    %313 = vector.shape_cast %312 : vector<8xf32> to vector<8x1xf32>
    %314 = vector.broadcast %313 : vector<8x1xf32> to vector<8x8xf32>
    %315 = arith.subf %311, %314 : vector<8x8xf32>
    %316 = math.exp %315 : vector<8x8xf32>
    %cst_150 = arith.constant dense<0.000000e+00> : vector<8xf32>
    %317 = vector.multi_reduction <add>, %316, %cst_150 [1] : vector<8x8xf32> to vector<8xf32>
    %318 = vector.shape_cast %317 : vector<8xf32> to vector<8x1xf32>
    %319 = tpu.reciprocal %318 {approx = true} : vector<8x1xf32> -> vector<8x1xf32>
    %320 = vector.broadcast %319 : vector<8x1xf32> to vector<8x8xf32>
    %321 = arith.mulf %316, %320 : vector<8x8xf32>
    %cst_151 = arith.constant dense<0.000000e+00> : vector<8x8xf32>
    %322 = tpu.matmul %321, %308, %cst_151 {dimension_numbers = #tpu.dot_dimension_numbers<[1], [0], [0], [1], [0, 0, 1, 1], [], []>} : vector<8x8xf32>, vector<8x8xf32>, vector<8x8xf32> -> vector<8x8xf32>
    %323 = vector.extract_strided_slice %303 {offsets = [0, 8], sizes = [8, 8], strides = [1, 1]} : vector<16x32xf32> to vector<8x8xf32>
    %324 = vector.extract_strided_slice %304 {offsets = [0, 8], sizes = [8, 8], strides = [1, 1]} : vector<16x32xf32> to vector<8x8xf32>
    %325 = vector.extract_strided_slice %305 {offsets = [0, 8], sizes = [8, 8], strides = [1, 1]} : vector<16x32xf32> to vector<8x8xf32>
    %cst_152 = arith.constant dense<0.000000e+00> : vector<8x8xf32>
    %326 = tpu.matmul %323, %324, %cst_152 {dimension_numbers = #tpu.dot_dimension_numbers<[1], [1], [0], [0], [0, 0, 1, 0], [], []>} : vector<8x8xf32>, vector<8x8xf32>, vector<8x8xf32> -> vector<8x8xf32>
    %cst_153 = arith.constant 0.353553385 : f32
    %327 = vector.broadcast %cst_153 : f32 to vector<8x8xf32>
    %328 = arith.mulf %326, %327 : vector<8x8xf32>
    %cst_154 = arith.constant dense<0xFF800000> : vector<8xf32>
    %329 = vector.multi_reduction <maximumf>, %328, %cst_154 [1] : vector<8x8xf32> to vector<8xf32>
    %330 = vector.shape_cast %329 : vector<8xf32> to vector<8x1xf32>
    %331 = vector.broadcast %330 : vector<8x1xf32> to vector<8x8xf32>
    %332 = arith.subf %328, %331 : vector<8x8xf32>
    %333 = math.exp %332 : vector<8x8xf32>
    %cst_155 = arith.constant dense<0.000000e+00> : vector<8xf32>
    %334 = vector.multi_reduction <add>, %333, %cst_155 [1] : vector<8x8xf32> to vector<8xf32>
    %335 = vector.shape_cast %334 : vector<8xf32> to vector<8x1xf32>
    %336 = tpu.reciprocal %335 {approx = true} : vector<8x1xf32> -> vector<8x1xf32>
    %337 = vector.broadcast %336 : vector<8x1xf32> to vector<8x8xf32>
    %338 = arith.mulf %333, %337 : vector<8x8xf32>
    %cst_156 = arith.constant dense<0.000000e+00> : vector<8x8xf32>
    %339 = tpu.matmul %338, %325, %cst_156 {dimension_numbers = #tpu.dot_dimension_numbers<[1], [0], [0], [1], [0, 0, 1, 1], [], []>} : vector<8x8xf32>, vector<8x8xf32>, vector<8x8xf32> -> vector<8x8xf32>
    %340 = vector.extract_strided_slice %303 {offsets = [0, 16], sizes = [8, 8], strides = [1, 1]} : vector<16x32xf32> to vector<8x8xf32>
    %341 = vector.extract_strided_slice %304 {offsets = [0, 16], sizes = [8, 8], strides = [1, 1]} : vector<16x32xf32> to vector<8x8xf32>
    %342 = vector.extract_strided_slice %305 {offsets = [0, 16], sizes = [8, 8], strides = [1, 1]} : vector<16x32xf32> to vector<8x8xf32>
    %cst_157 = arith.constant dense<0.000000e+00> : vector<8x8xf32>
    %343 = tpu.matmul %340, %341, %cst_157 {dimension_numbers = #tpu.dot_dimension_numbers<[1], [1], [0], [0], [0, 0, 1, 0], [], []>} : vector<8x8xf32>, vector<8x8xf32>, vector<8x8xf32> -> vector<8x8xf32>
    %cst_158 = arith.constant 0.353553385 : f32
    %344 = vector.broadcast %cst_158 : f32 to vector<8x8xf32>
    %345 = arith.mulf %343, %344 : vector<8x8xf32>
    %cst_159 = arith.constant dense<0xFF800000> : vector<8xf32>
    %346 = vector.multi_reduction <maximumf>, %345, %cst_159 [1] : vector<8x8xf32> to vector<8xf32>
    %347 = vector.shape_cast %346 : vector<8xf32> to vector<8x1xf32>
    %348 = vector.broadcast %347 : vector<8x1xf32> to vector<8x8xf32>
    %349 = arith.subf %345, %348 : vector<8x8xf32>
    %350 = math.exp %349 : vector<8x8xf32>
    %cst_160 = arith.constant dense<0.000000e+00> : vector<8xf32>
    %351 = vector.multi_reduction <add>, %350, %cst_160 [1] : vector<8x8xf32> to vector<8xf32>
    %352 = vector.shape_cast %351 : vector<8xf32> to vector<8x1xf32>
    %353 = tpu.reciprocal %352 {approx = true} : vector<8x1xf32> -> vector<8x1xf32>
    %354 = vector.broadcast %353 : vector<8x1xf32> to vector<8x8xf32>
    %355 = arith.mulf %350, %354 : vector<8x8xf32>
    %cst_161 = arith.constant dense<0.000000e+00> : vector<8x8xf32>
    %356 = tpu.matmul %355, %342, %cst_161 {dimension_numbers = #tpu.dot_dimension_numbers<[1], [0], [0], [1], [0, 0, 1, 1], [], []>} : vector<8x8xf32>, vector<8x8xf32>, vector<8x8xf32> -> vector<8x8xf32>
    %357 = vector.extract_strided_slice %303 {offsets = [0, 24], sizes = [8, 8], strides = [1, 1]} : vector<16x32xf32> to vector<8x8xf32>
    %358 = vector.extract_strided_slice %304 {offsets = [0, 24], sizes = [8, 8], strides = [1, 1]} : vector<16x32xf32> to vector<8x8xf32>
    %359 = vector.extract_strided_slice %305 {offsets = [0, 24], sizes = [8, 8], strides = [1, 1]} : vector<16x32xf32> to vector<8x8xf32>
    %cst_162 = arith.constant dense<0.000000e+00> : vector<8x8xf32>
    %360 = tpu.matmul %357, %358, %cst_162 {dimension_numbers = #tpu.dot_dimension_numbers<[1], [1], [0], [0], [0, 0, 1, 0], [], []>} : vector<8x8xf32>, vector<8x8xf32>, vector<8x8xf32> -> vector<8x8xf32>
    %cst_163 = arith.constant 0.353553385 : f32
    %361 = vector.broadcast %cst_163 : f32 to vector<8x8xf32>
    %362 = arith.mulf %360, %361 : vector<8x8xf32>
    %cst_164 = arith.constant dense<0xFF800000> : vector<8xf32>
    %363 = vector.multi_reduction <maximumf>, %362, %cst_164 [1] : vector<8x8xf32> to vector<8xf32>
    %364 = vector.shape_cast %363 : vector<8xf32> to vector<8x1xf32>
    %365 = vector.broadcast %364 : vector<8x1xf32> to vector<8x8xf32>
    %366 = arith.subf %362, %365 : vector<8x8xf32>
    %367 = math.exp %366 : vector<8x8xf32>
    %cst_165 = arith.constant dense<0.000000e+00> : vector<8xf32>
    %368 = vector.multi_reduction <add>, %367, %cst_165 [1] : vector<8x8xf32> to vector<8xf32>
    %369 = vector.shape_cast %368 : vector<8xf32> to vector<8x1xf32>
    %370 = tpu.reciprocal %369 {approx = true} : vector<8x1xf32> -> vector<8x1xf32>
    %371 = vector.broadcast %370 : vector<8x1xf32> to vector<8x8xf32>
    %372 = arith.mulf %367, %371 : vector<8x8xf32>
    %cst_166 = arith.constant dense<0.000000e+00> : vector<8x8xf32>
    %373 = tpu.matmul %372, %359, %cst_166 {dimension_numbers = #tpu.dot_dimension_numbers<[1], [0], [0], [1], [0, 0, 1, 1], [], []>} : vector<8x8xf32>, vector<8x8xf32>, vector<8x8xf32> -> vector<8x8xf32>
    %374 = tpu.concatenate %322, %339, %356, %373 in 1 : vector<8x8xf32>, vector<8x8xf32>, vector<8x8xf32>, vector<8x8xf32> -> vector<8x32xf32>
    %cst_167 = arith.constant dense<0.000000e+00> : vector<8x32xf32>
    %375 = tpu.matmul %374, %281, %cst_167 {dimension_numbers = #tpu.dot_dimension_numbers<[1], [0], [0], [1], [0, 0, 1, 1], [], []>} : vector<8x32xf32>, vector<32x32xf32>, vector<8x32xf32> -> vector<8x32xf32>
    %376 = vector.extract_strided_slice %303 {offsets = [8, 0], sizes = [8, 8], strides = [1, 1]} : vector<16x32xf32> to vector<8x8xf32>
    %377 = vector.extract_strided_slice %304 {offsets = [8, 0], sizes = [8, 8], strides = [1, 1]} : vector<16x32xf32> to vector<8x8xf32>
    %378 = vector.extract_strided_slice %305 {offsets = [8, 0], sizes = [8, 8], strides = [1, 1]} : vector<16x32xf32> to vector<8x8xf32>
    %cst_168 = arith.constant dense<0.000000e+00> : vector<8x8xf32>
    %379 = tpu.matmul %376, %377, %cst_168 {dimension_numbers = #tpu.dot_dimension_numbers<[1], [1], [0], [0], [0, 0, 1, 0], [], []>} : vector<8x8xf32>, vector<8x8xf32>, vector<8x8xf32> -> vector<8x8xf32>
    %cst_169 = arith.constant 0.353553385 : f32
    %380 = vector.broadcast %cst_169 : f32 to vector<8x8xf32>
    %381 = arith.mulf %379, %380 : vector<8x8xf32>
    %cst_170 = arith.constant dense<0xFF800000> : vector<8xf32>
    %382 = vector.multi_reduction <maximumf>, %381, %cst_170 [1] : vector<8x8xf32> to vector<8xf32>
    %383 = vector.shape_cast %382 : vector<8xf32> to vector<8x1xf32>
    %384 = vector.broadcast %383 : vector<8x1xf32> to vector<8x8xf32>
    %385 = arith.subf %381, %384 : vector<8x8xf32>
    %386 = math.exp %385 : vector<8x8xf32>
    %cst_171 = arith.constant dense<0.000000e+00> : vector<8xf32>
    %387 = vector.multi_reduction <add>, %386, %cst_171 [1] : vector<8x8xf32> to vector<8xf32>
    %388 = vector.shape_cast %387 : vector<8xf32> to vector<8x1xf32>
    %389 = tpu.reciprocal %388 {approx = true} : vector<8x1xf32> -> vector<8x1xf32>
    %390 = vector.broadcast %389 : vector<8x1xf32> to vector<8x8xf32>
    %391 = arith.mulf %386, %390 : vector<8x8xf32>
    %cst_172 = arith.constant dense<0.000000e+00> : vector<8x8xf32>
    %392 = tpu.matmul %391, %378, %cst_172 {dimension_numbers = #tpu.dot_dimension_numbers<[1], [0], [0], [1], [0, 0, 1, 1], [], []>} : vector<8x8xf32>, vector<8x8xf32>, vector<8x8xf32> -> vector<8x8xf32>
    %393 = vector.extract_strided_slice %303 {offsets = [8, 8], sizes = [8, 8], strides = [1, 1]} : vector<16x32xf32> to vector<8x8xf32>
    %394 = vector.extract_strided_slice %304 {offsets = [8, 8], sizes = [8, 8], strides = [1, 1]} : vector<16x32xf32> to vector<8x8xf32>
    %395 = vector.extract_strided_slice %305 {offsets = [8, 8], sizes = [8, 8], strides = [1, 1]} : vector<16x32xf32> to vector<8x8xf32>
    %cst_173 = arith.constant dense<0.000000e+00> : vector<8x8xf32>
    %396 = tpu.matmul %393, %394, %cst_173 {dimension_numbers = #tpu.dot_dimension_numbers<[1], [1], [0], [0], [0, 0, 1, 0], [], []>} : vector<8x8xf32>, vector<8x8xf32>, vector<8x8xf32> -> vector<8x8xf32>
    %cst_174 = arith.constant 0.353553385 : f32
    %397 = vector.broadcast %cst_174 : f32 to vector<8x8xf32>
    %398 = arith.mulf %396, %397 : vector<8x8xf32>
    %cst_175 = arith.constant dense<0xFF800000> : vector<8xf32>
    %399 = vector.multi_reduction <maximumf>, %398, %cst_175 [1] : vector<8x8xf32> to vector<8xf32>
    %400 = vector.shape_cast %399 : vector<8xf32> to vector<8x1xf32>
    %401 = vector.broadcast %400 : vector<8x1xf32> to vector<8x8xf32>
    %402 = arith.subf %398, %401 : vector<8x8xf32>
    %403 = math.exp %402 : vector<8x8xf32>
    %cst_176 = arith.constant dense<0.000000e+00> : vector<8xf32>
    %404 = vector.multi_reduction <add>, %403, %cst_176 [1] : vector<8x8xf32> to vector<8xf32>
    %405 = vector.shape_cast %404 : vector<8xf32> to vector<8x1xf32>
    %406 = tpu.reciprocal %405 {approx = true} : vector<8x1xf32> -> vector<8x1xf32>
    %407 = vector.broadcast %406 : vector<8x1xf32> to vector<8x8xf32>
    %408 = arith.mulf %403, %407 : vector<8x8xf32>
    %cst_177 = arith.constant dense<0.000000e+00> : vector<8x8xf32>
    %409 = tpu.matmul %408, %395, %cst_177 {dimension_numbers = #tpu.dot_dimension_numbers<[1], [0], [0], [1], [0, 0, 1, 1], [], []>} : vector<8x8xf32>, vector<8x8xf32>, vector<8x8xf32> -> vector<8x8xf32>
    %410 = vector.extract_strided_slice %303 {offsets = [8, 16], sizes = [8, 8], strides = [1, 1]} : vector<16x32xf32> to vector<8x8xf32>
    %411 = vector.extract_strided_slice %304 {offsets = [8, 16], sizes = [8, 8], strides = [1, 1]} : vector<16x32xf32> to vector<8x8xf32>
    %412 = vector.extract_strided_slice %305 {offsets = [8, 16], sizes = [8, 8], strides = [1, 1]} : vector<16x32xf32> to vector<8x8xf32>
    %cst_178 = arith.constant dense<0.000000e+00> : vector<8x8xf32>
    %413 = tpu.matmul %410, %411, %cst_178 {dimension_numbers = #tpu.dot_dimension_numbers<[1], [1], [0], [0], [0, 0, 1, 0], [], []>} : vector<8x8xf32>, vector<8x8xf32>, vector<8x8xf32> -> vector<8x8xf32>
    %cst_179 = arith.constant 0.353553385 : f32
    %414 = vector.broadcast %cst_179 : f32 to vector<8x8xf32>
    %415 = arith.mulf %413, %414 : vector<8x8xf32>
    %cst_180 = arith.constant dense<0xFF800000> : vector<8xf32>
    %416 = vector.multi_reduction <maximumf>, %415, %cst_180 [1] : vector<8x8xf32> to vector<8xf32>
    %417 = vector.shape_cast %416 : vector<8xf32> to vector<8x1xf32>
    %418 = vector.broadcast %417 : vector<8x1xf32> to vector<8x8xf32>
    %419 = arith.subf %415, %418 : vector<8x8xf32>
    %420 = math.exp %419 : vector<8x8xf32>
    %cst_181 = arith.constant dense<0.000000e+00> : vector<8xf32>
    %421 = vector.multi_reduction <add>, %420, %cst_181 [1] : vector<8x8xf32> to vector<8xf32>
    %422 = vector.shape_cast %421 : vector<8xf32> to vector<8x1xf32>
    %423 = tpu.reciprocal %422 {approx = true} : vector<8x1xf32> -> vector<8x1xf32>
    %424 = vector.broadcast %423 : vector<8x1xf32> to vector<8x8xf32>
    %425 = arith.mulf %420, %424 : vector<8x8xf32>
    %cst_182 = arith.constant dense<0.000000e+00> : vector<8x8xf32>
    %426 = tpu.matmul %425, %412, %cst_182 {dimension_numbers = #tpu.dot_dimension_numbers<[1], [0], [0], [1], [0, 0, 1, 1], [], []>} : vector<8x8xf32>, vector<8x8xf32>, vector<8x8xf32> -> vector<8x8xf32>
    %427 = vector.extract_strided_slice %303 {offsets = [8, 24], sizes = [8, 8], strides = [1, 1]} : vector<16x32xf32> to vector<8x8xf32>
    %428 = vector.extract_strided_slice %304 {offsets = [8, 24], sizes = [8, 8], strides = [1, 1]} : vector<16x32xf32> to vector<8x8xf32>
    %429 = vector.extract_strided_slice %305 {offsets = [8, 24], sizes = [8, 8], strides = [1, 1]} : vector<16x32xf32> to vector<8x8xf32>
    %cst_183 = arith.constant dense<0.000000e+00> : vector<8x8xf32>
    %430 = tpu.matmul %427, %428, %cst_183 {dimension_numbers = #tpu.dot_dimension_numbers<[1], [1], [0], [0], [0, 0, 1, 0], [], []>} : vector<8x8xf32>, vector<8x8xf32>, vector<8x8xf32> -> vector<8x8xf32>
    %cst_184 = arith.constant 0.353553385 : f32
    %431 = vector.broadcast %cst_184 : f32 to vector<8x8xf32>
    %432 = arith.mulf %430, %431 : vector<8x8xf32>
    %cst_185 = arith.constant dense<0xFF800000> : vector<8xf32>
    %433 = vector.multi_reduction <maximumf>, %432, %cst_185 [1] : vector<8x8xf32> to vector<8xf32>
    %434 = vector.shape_cast %433 : vector<8xf32> to vector<8x1xf32>
    %435 = vector.broadcast %434 : vector<8x1xf32> to vector<8x8xf32>
    %436 = arith.subf %432, %435 : vector<8x8xf32>
    %437 = math.exp %436 : vector<8x8xf32>
    %cst_186 = arith.constant dense<0.000000e+00> : vector<8xf32>
    %438 = vector.multi_reduction <add>, %437, %cst_186 [1] : vector<8x8xf32> to vector<8xf32>
    %439 = vector.shape_cast %438 : vector<8xf32> to vector<8x1xf32>
    %440 = tpu.reciprocal %439 {approx = true} : vector<8x1xf32> -> vector<8x1xf32>
    %441 = vector.broadcast %440 : vector<8x1xf32> to vector<8x8xf32>
    %442 = arith.mulf %437, %441 : vector<8x8xf32>
    %cst_187 = arith.constant dense<0.000000e+00> : vector<8x8xf32>
    %443 = tpu.matmul %442, %429, %cst_187 {dimension_numbers = #tpu.dot_dimension_numbers<[1], [0], [0], [1], [0, 0, 1, 1], [], []>} : vector<8x8xf32>, vector<8x8xf32>, vector<8x8xf32> -> vector<8x8xf32>
    %444 = tpu.concatenate %392, %409, %426, %443 in 1 : vector<8x8xf32>, vector<8x8xf32>, vector<8x8xf32>, vector<8x8xf32> -> vector<8x32xf32>
    %cst_188 = arith.constant dense<0.000000e+00> : vector<8x32xf32>
    %445 = tpu.matmul %444, %281, %cst_188 {dimension_numbers = #tpu.dot_dimension_numbers<[1], [0], [0], [1], [0, 0, 1, 1], [], []>} : vector<8x32xf32>, vector<32x32xf32>, vector<8x32xf32> -> vector<8x32xf32>
    %446 = tpu.concatenate %375, %445 in 0 : vector<8x32xf32>, vector<8x32xf32> -> vector<16x32xf32>
    %447 = vector.broadcast %283 : vector<1x32xf32> to vector<16x32xf32>
    %448 = arith.addf %446, %447 : vector<16x32xf32>
    %449 = arith.addf %275, %448 : vector<16x32xf32>
    %cst_189 = arith.constant dense<0.000000e+00> : vector<16xf32>
    %450 = vector.multi_reduction <add>, %449, %cst_189 [1] : vector<16x32xf32> to vector<16xf32>
    %451 = vector.shape_cast %450 : vector<16xf32> to vector<16x1xf32>
    %cst_190 = arith.constant 3.200000e+01 : f32
    %452 = vector.broadcast %cst_190 : f32 to vector<16x1xf32>
    %453 = arith.divf %451, %452 : vector<16x1xf32>
    %454 = vector.broadcast %453 : vector<16x1xf32> to vector<16x32xf32>
    %455 = arith.subf %449, %454 : vector<16x32xf32>
    %456 = arith.mulf %455, %455 : vector<16x32xf32>
    %cst_191 = arith.constant dense<0.000000e+00> : vector<16xf32>
    %457 = vector.multi_reduction <add>, %456, %cst_191 [1] : vector<16x32xf32> to vector<16xf32>
    %458 = vector.shape_cast %457 : vector<16xf32> to vector<16x1xf32>
    %cst_192 = arith.constant 3.200000e+01 : f32
    %459 = vector.broadcast %cst_192 : f32 to vector<16x1xf32>
    %460 = arith.divf %458, %459 : vector<16x1xf32>
    %cst_193 = arith.constant 9.99999996E-13 : f32
    %461 = vector.broadcast %cst_193 : f32 to vector<16x1xf32>
    %462 = arith.addf %460, %461 : vector<16x1xf32>
    %463 = math.rsqrt %462 : vector<16x1xf32>
    %464 = vector.broadcast %453 : vector<16x1xf32> to vector<16x32xf32>
    %465 = arith.subf %449, %464 : vector<16x32xf32>
    %466 = vector.broadcast %463 : vector<16x1xf32> to vector<16x32xf32>
    %467 = arith.mulf %465, %466 : vector<16x32xf32>
    %468 = vector.broadcast %285 : vector<1x32xf32> to vector<16x32xf32>
    %469 = arith.mulf %467, %468 : vector<16x32xf32>
    %470 = vector.broadcast %287 : vector<1x32xf32> to vector<16x32xf32>
    %471 = arith.addf %469, %470 : vector<16x32xf32>
    %cst_194 = arith.constant dense<0.000000e+00> : vector<16x64xf32>
    %472 = tpu.matmul %471, %289, %cst_194 {dimension_numbers = #tpu.dot_dimension_numbers<[1], [0], [0], [1], [0, 0, 1, 1], [], []>} : vector<16x32xf32>, vector<32x64xf32>, vector<16x64xf32> -> vector<16x64xf32>
    %473 = vector.broadcast %291 : vector<1x64xf32> to vector<16x64xf32>
    %474 = arith.addf %472, %473 : vector<16x64xf32>
    %475 = arith.mulf %474, %474 : vector<16x64xf32>
    %476 = arith.mulf %474, %475 : vector<16x64xf32>
    %cst_195 = arith.constant 4.471500e-02 : f32
    %477 = vector.broadcast %cst_195 : f32 to vector<16x64xf32>
    %478 = arith.mulf %477, %476 : vector<16x64xf32>
    %479 = arith.addf %474, %478 : vector<16x64xf32>
    %cst_196 = arith.constant 0.797884583 : f32
    %480 = vector.broadcast %cst_196 : f32 to vector<16x64xf32>
    %481 = arith.mulf %480, %479 : vector<16x64xf32>
    %482 = math.tanh %481 : vector<16x64xf32>
    %cst_197 = arith.constant 1.000000e+00 : f32
    %483 = vector.broadcast %cst_197 : f32 to vector<16x64xf32>
    %484 = arith.addf %483, %482 : vector<16x64xf32>
    %cst_198 = arith.constant 5.000000e-01 : f32
    %485 = vector.broadcast %cst_198 : f32 to vector<16x64xf32>
    %486 = arith.mulf %485, %484 : vector<16x64xf32>
    %487 = arith.mulf %474, %486 : vector<16x64xf32>
    %cst_199 = arith.constant dense<0.000000e+00> : vector<16x32xf32>
    %488 = tpu.matmul %487, %293, %cst_199 {dimension_numbers = #tpu.dot_dimension_numbers<[1], [0], [0], [1], [0, 0, 1, 1], [], []>} : vector<16x64xf32>, vector<64x32xf32>, vector<16x32xf32> -> vector<16x32xf32>
    %489 = vector.broadcast %295 : vector<1x32xf32> to vector<16x32xf32>
    %490 = arith.addf %488, %489 : vector<16x32xf32>
    %491 = arith.addf %471, %490 : vector<16x32xf32>
    %cst_200 = arith.constant dense<0.000000e+00> : vector<16xf32>
    %492 = vector.multi_reduction <add>, %491, %cst_200 [1] : vector<16x32xf32> to vector<16xf32>
    %493 = vector.shape_cast %492 : vector<16xf32> to vector<16x1xf32>
    %cst_201 = arith.constant 3.200000e+01 : f32
    %494 = vector.broadcast %cst_201 : f32 to vector<16x1xf32>
    %495 = arith.divf %493, %494 : vector<16x1xf32>
    %496 = vector.broadcast %495 : vector<16x1xf32> to vector<16x32xf32>
    %497 = arith.subf %491, %496 : vector<16x32xf32>
    %498 = arith.mulf %497, %497 : vector<16x32xf32>
    %cst_202 = arith.constant dense<0.000000e+00> : vector<16xf32>
    %499 = vector.multi_reduction <add>, %498, %cst_202 [1] : vector<16x32xf32> to vector<16xf32>
    %500 = vector.shape_cast %499 : vector<16xf32> to vector<16x1xf32>
    %cst_203 = arith.constant 3.200000e+01 : f32
    %501 = vector.broadcast %cst_203 : f32 to vector<16x1xf32>
    %502 = arith.divf %500, %501 : vector<16x1xf32>
    %cst_204 = arith.constant 9.99999996E-13 : f32
    %503 = vector.broadcast %cst_204 : f32 to vector<16x1xf32>
    %504 = arith.addf %502, %503 : vector<16x1xf32>
    %505 = math.rsqrt %504 : vector<16x1xf32>
    %506 = vector.broadcast %495 : vector<16x1xf32> to vector<16x32xf32>
    %507 = arith.subf %491, %506 : vector<16x32xf32>
    %508 = vector.broadcast %505 : vector<16x1xf32> to vector<16x32xf32>
    %509 = arith.mulf %507, %508 : vector<16x32xf32>
    %510 = vector.broadcast %297 : vector<1x32xf32> to vector<16x32xf32>
    %511 = arith.mulf %509, %510 : vector<16x32xf32>
    %512 = vector.broadcast %299 : vector<1x32xf32> to vector<16x32xf32>
    %513 = arith.addf %511, %512 : vector<16x32xf32>
    %514 = vector.extract_strided_slice %513 {offsets = [0, 0], sizes = [1, 32], strides = [1, 1]} : vector<16x32xf32> to vector<1x32xf32>
    %515 = vector.extract_strided_slice %513 {offsets = [8, 0], sizes = [1, 32], strides = [1, 1]} : vector<16x32xf32> to vector<1x32xf32>
    %516 = tpu.concatenate %514, %515 in 0 : vector<1x32xf32>, vector<1x32xf32> -> vector<2x32xf32>
    %c0_205 = arith.constant 0 : index
    %c0_206 = arith.constant 0 : index
    %517 = vector.load %arg19[%c0_205, %c0_206] : memref<32x32xf32, #tpu.memory_space<vmem>>, vector<32x32xf32>
    %cst_207 = arith.constant dense<0.000000e+00> : vector<2x32xf32>
    %518 = tpu.matmul %516, %517, %cst_207 {dimension_numbers = #tpu.dot_dimension_numbers<[1], [0], [0], [1], [0, 0, 1, 1], [], []>} : vector<2x32xf32>, vector<32x32xf32>, vector<2x32xf32> -> vector<2x32xf32>
    %c0_208 = arith.constant 0 : index
    %c0_209 = arith.constant 0 : index
    %519 = vector.load %arg20[%c0_208, %c0_209] : memref<1x32xf32, #tpu.memory_space<vmem>>, vector<1x32xf32>
    %520 = vector.broadcast %519 : vector<1x32xf32> to vector<2x32xf32>
    %521 = arith.addf %518, %520 : vector<2x32xf32>
    %522 = math.tanh %521 : vector<2x32xf32>
    %c0_210 = arith.constant 0 : index
    %c0_211 = arith.constant 0 : index
    %523 = vector.load %arg21[%c0_210, %c0_211] : memref<32x14xf32, #tpu.memory_space<vmem>>, vector<32x14xf32>
    %cst_212 = arith.constant dense<0.000000e+00> : vector<2x14xf32>
    %524 = tpu.matmul %522, %523, %cst_212 {dimension_numbers = #tpu.dot_dimension_numbers<[1], [0], [0], [1], [0, 0, 1, 1], [], []>} : vector<2x32xf32>, vector<32x14xf32>, vector<2x14xf32> -> vector<2x14xf32>
    %c0_213 = arith.constant 0 : index
    %c0_214 = arith.constant 0 : index
    %525 = vector.load %arg22[%c0_213, %c0_214] : memref<1x14xf32, #tpu.memory_space<vmem>>, vector<1x14xf32>
    %526 = vector.broadcast %525 : vector<1x14xf32> to vector<2x14xf32>
    %527 = arith.addf %524, %526 : vector<2x14xf32>
    %528 = arith.negf %527 : vector<2x14xf32>
    %529 = math.exp %528 : vector<2x14xf32>
    %cst_215 = arith.constant 1.000000e+00 : f32
    %530 = vector.broadcast %cst_215 : f32 to vector<2x14xf32>
    %531 = arith.addf %530, %529 : vector<2x14xf32>
    %532 = arith.divf %530, %531 : vector<2x14xf32>
    %c0_216 = arith.constant 0 : index
    %c0_217 = arith.constant 0 : index
    %533 = vector.load %arg23[%c0_216, %c0_217] : memref<2x14xf32, #tpu.memory_space<vmem>>, vector<2x14xf32>
    tpu.vector_store %arg23[%c0_216, %c0_217], %532 {strides = array<i32>} : memref<2x14xf32, #tpu.memory_space<vmem>>, vector<2x14xf32>,
    return
  }
  func.func @transform_0(%arg0: i32) -> (i32, i32) {
    %c0_i32 = arith.constant 0 : i32
    %c0_i32_0 = arith.constant 0 : i32
    %c0_i32_1 = arith.constant 0 : i32
    return %c0_i32, %c0_i32_0 : i32, i32
  }
  func.func @transform_1(%arg0: i32) -> (i32, i32) {
    %c0_i32 = arith.constant 0 : i32
    %c0_i32_0 = arith.constant 0 : i32
    %c0_i32_1 = arith.constant 0 : i32
    return %c0_i32, %c0_i32_0 : i32, i32
  }
  func.func @transform_2(%arg0: i32) -> (i32, i32) {
    %c0_i32 = arith.constant 0 : i32
    %c0_i32_0 = arith.constant 0 : i32
    %c0_i32_1 = arith.constant 0 : i32
    return %c0_i32, %c0_i32_0 : i32, i32
  }
  func.func @transform_3(%arg0: i32) -> (i32, i32) {
    %c0_i32 = arith.constant 0 : i32
    %c0_i32_0 = arith.constant 0 : i32
    %c0_i32_1 = arith.constant 0 : i32
    return %c0_i32, %c0_i32_0 : i32, i32
  }
  func.func @transform_4(%arg0: i32) -> (i32, i32) {
    %c0_i32 = arith.constant 0 : i32
    %c0_i32_0 = arith.constant 0 : i32
    %c0_i32_1 = arith.constant 0 : i32
    return %c0_i32, %c0_i32_0 : i32, i32
  }
  func.func @transform_5(%arg0: i32) -> (i32, i32) {
    %c0_i32 = arith.constant 0 : i32
    %c0_i32_0 = arith.constant 0 : i32
    %c0_i32_1 = arith.constant 0 : i32
    return %c0_i32, %c0_i32_0 : i32, i32
  }
  func.func @transform_6(%arg0: i32) -> (i32, i32, i32) {
    %c0_i32 = arith.constant 0 : i32
    %c0_i32_0 = arith.constant 0 : i32
    %c0_i32_1 = arith.constant 0 : i32
    %c0_i32_2 = arith.constant 0 : i32
    return %c0_i32, %c0_i32_0, %c0_i32_1 : i32, i32, i32
  }
  func.func @transform_7(%arg0: i32) -> (i32, i32, i32) {
    %c0_i32 = arith.constant 0 : i32
    %c0_i32_0 = arith.constant 0 : i32
    %c0_i32_1 = arith.constant 0 : i32
    %c0_i32_2 = arith.constant 0 : i32
    return %c0_i32, %c0_i32_0, %c0_i32_1 : i32, i32, i32
  }
  func.func @transform_8(%arg0: i32) -> (i32, i32, i32) {
    %c0_i32 = arith.constant 0 : i32
    %c0_i32_0 = arith.constant 0 : i32
    %c0_i32_1 = arith.constant 0 : i32
    %c0_i32_2 = arith.constant 0 : i32
    return %c0_i32, %c0_i32_0, %c0_i32_1 : i32, i32, i32
  }
  func.func @transform_9(%arg0: i32) -> (i32, i32, i32) {
    %c0_i32 = arith.constant 0 : i32
    %c0_i32_0 = arith.constant 0 : i32
    %c0_i32_1 = arith.constant 0 : i32
    %c0_i32_2 = arith.constant 0 : i32
    return %c0_i32, %c0_i32_0, %c0_i32_1 : i32, i32, i32
  }
  func.func @transform_10(%arg0: i32) -> (i32, i32, i32) {
    %c0_i32 = arith.constant 0 : i32
    %c0_i32_0 = arith.constant 0 : i32
    %c0_i32_1 = arith.constant 0 : i32
    %c0_i32_2 = arith.constant 0 : i32
    return %c0_i32, %c0_i32_0, %c0_i32_1 : i32, i32, i32
  }
  func.func @transform_11(%arg0: i32) -> (i32, i32, i32) {
    %c0_i32 = arith.constant 0 : i32
    %c0_i32_0 = arith.constant 0 : i32
    %c0_i32_1 = arith.constant 0 : i32
    %c0_i32_2 = arith.constant 0 : i32
    return %c0_i32, %c0_i32_0, %c0_i32_1 : i32, i32, i32
  }
  func.func @transform_12(%arg0: i32) -> (i32, i32, i32) {
    %c0_i32 = arith.constant 0 : i32
    %c0_i32_0 = arith.constant 0 : i32
    %c0_i32_1 = arith.constant 0 : i32
    %c0_i32_2 = arith.constant 0 : i32
    return %c0_i32, %c0_i32_0, %c0_i32_1 : i32, i32, i32
  }
  func.func @transform_13(%arg0: i32) -> (i32, i32, i32) {
    %c0_i32 = arith.constant 0 : i32
    %c0_i32_0 = arith.constant 0 : i32
    %c0_i32_1 = arith.constant 0 : i32
    %c0_i32_2 = arith.constant 0 : i32
    return %c0_i32, %c0_i32_0, %c0_i32_1 : i32, i32, i32
  }
  func.func @transform_14(%arg0: i32) -> (i32, i32, i32) {
    %c0_i32 = arith.constant 0 : i32
    %c0_i32_0 = arith.constant 0 : i32
    %c0_i32_1 = arith.constant 0 : i32
    %c0_i32_2 = arith.constant 0 : i32
    return %c0_i32, %c0_i32_0, %c0_i32_1 : i32, i32, i32
  }
  func.func @transform_15(%arg0: i32) -> (i32, i32, i32) {
    %c0_i32 = arith.constant 0 : i32
    %c0_i32_0 = arith.constant 0 : i32
    %c0_i32_1 = arith.constant 0 : i32
    %c0_i32_2 = arith.constant 0 : i32
    return %c0_i32, %c0_i32_0, %c0_i32_1 : i32, i32, i32
  }
  func.func @transform_16(%arg0: i32) -> (i32, i32, i32) {
    %c0_i32 = arith.constant 0 : i32
    %c0_i32_0 = arith.constant 0 : i32
    %c0_i32_1 = arith.constant 0 : i32
    %c0_i32_2 = arith.constant 0 : i32
    return %c0_i32, %c0_i32_0, %c0_i32_1 : i32, i32, i32
  }
  func.func @transform_17(%arg0: i32) -> (i32, i32, i32) {
    %c0_i32 = arith.constant 0 : i32
    %c0_i32_0 = arith.constant 0 : i32
    %c0_i32_1 = arith.constant 0 : i32
    %c0_i32_2 = arith.constant 0 : i32
    return %c0_i32, %c0_i32_0, %c0_i32_1 : i32, i32, i32
  }
  func.func @transform_18(%arg0: i32) -> (i32, i32) {
    %c0_i32 = arith.constant 0 : i32
    %c0_i32_0 = arith.constant 0 : i32
    %c0_i32_1 = arith.constant 0 : i32
    return %c0_i32, %c0_i32_0 : i32, i32
  }
  func.func @transform_19(%arg0: i32) -> (i32, i32) {
    %c0_i32 = arith.constant 0 : i32
    %c0_i32_0 = arith.constant 0 : i32
    %c0_i32_1 = arith.constant 0 : i32
    return %c0_i32, %c0_i32_0 : i32, i32
  }
  func.func @transform_20(%arg0: i32) -> (i32, i32) {
    %c0_i32 = arith.constant 0 : i32
    %c0_i32_0 = arith.constant 0 : i32
    %c0_i32_1 = arith.constant 0 : i32
    return %c0_i32, %c0_i32_0 : i32, i32
  }
  func.func @transform_21(%arg0: i32) -> (i32, i32) {
    %c0_i32 = arith.constant 0 : i32
    %c0_i32_0 = arith.constant 0 : i32
    %c0_i32_1 = arith.constant 0 : i32
    return %c0_i32, %c0_i32_0 : i32, i32
  }
  func.func @transform_22(%arg0: i32) -> (i32, i32) {
    %c0_i32 = arith.constant 0 : i32
    %c0_i32_0 = arith.constant 0 : i32
    %c0_i32_1 = arith.constant 0 : i32
    return %c0_i32, %c0_i32_0 : i32, i32
  }
}

</mosaic_0001>

<bundles_post_ra>
// kernel: _lambda_.1
= control target key start
LH: loop header
LB: loop body
LE: loop exit
PB: predicated region body
PF: predicated region fallthrough
CT: control target
= control target key end

     0   :  { %s3477_s0 = inlined_call_operand.vmem [shape: s32[16,1], index: 0, kind: input, shape index: {}]   ;;  %s3478_s1 = inlined_call_operand.hbm [shape: f32[30,32], index: 1, kind: input, shape index: {}]   ;;  %s3479_s2 = inlined_call_operand.hbm [shape: f32[16,32], index: 2, kind: input, shape index: {}]   ;;  %s3480_s3 = inlined_call_operand.vmem [shape: f32[2,32], index: 3, kind: input, shape index: {}]   ;;  %s3481_s4 = inlined_call_operand.hbm [shape: f32[1,32], index: 4, kind: input, shape index: {}]   ;;  %s3482_s5 = inlined_call_operand.hbm [shape: f32[1,32], index: 5, kind: input, shape index: {}]   ;;  %s3483_s6 = inlined_call_operand.vmem [shape: f32[2,32,96], index: 6, kind: input, shape index: {}]   ;;  %s3484_s7 = inlined_call_operand.vmem [shape: f32[2,1,96], index: 7, kind: input, shape index: {}]   ;;  %s3485_s8 = inlined_call_operand.vmem [shape: f32[2,32,32], index: 8, kind: input, shape index: {}]   ;;  %s3486_s9 = inlined_call_operand.vmem [shape: f32[2,1,32], index: 9, kind: input, shape index: {}]   ;;  %s3487_s10 = inlined_call_operand.vmem [shape: f32[2,1,32], index: 10, kind: input, shape index: {}]   ;;  %s3488_s11 = inlined_call_operand.hbm [shape: f32[2,1,32], index: 11, kind: input, shape index: {}]   ;;  %s3489_s12 = inlined_call_operand.vmem [shape: f32[2,32,64], index: 12, kind: input, shape index: {}]   ;;  %s3490_s13 = inlined_call_operand.hbm [shape: f32[2,1,64], index: 13, kind: input, shape index: {}]   ;;  %s3491_s14 = inlined_call_operand.vmem [shape: f32[2,64,32], index: 14, kind: input, shape index: {}]   ;;  %s3492_s15 = inlined_call_operand.hbm [shape: f32[2,1,32], index: 15, kind: input, shape index: {}]   ;;  %s3493_s16 = inlined_call_operand.hbm [shape: f32[2,1,32], index: 16, kind: input, shape index: {}]   ;;  %s3494_s17 = inlined_call_operand.hbm [shape: f32[2,1,32], index: 17, kind: input, shape index: {}]   ;;  %s3495_s18 = inlined_call_operand.hbm [shape: f32[32,32], index: 18, kind: input, shape index: {}]   ;;  %s3496_s19 = inlined_call_operand.vmem [shape: f32[1,32], index: 19, kind: input, shape index: {}]   ;;  %s3497_s20 = inlined_call_operand.vmem [shape: f32[32,14], index: 20, kind: input, shape index: {}]   ;;  %s3498_s21 = inlined_call_operand.hbm [shape: f32[1,14], index: 21, kind: input, shape index: {}]   ;;  %s3499_s22 = inlined_call_operand.hbm [shape: f32[2,14], index: 22, kind: output, shape index: {}]  }
   0x1   :  { %3502 = sst [smem:[#allocation28_spill]] %s3477_s0 }
   0x2   :  { %3503 = sst [smem:[#allocation29_spill]] %s3478_s1 }
   0x3   :  { %3504 = sst [smem:[#allocation30_spill]] %s3479_s2 }
   0x4   :  { %3505 = sst [smem:[#allocation31_spill]] %s3480_s3 }
   0x5   :  { %3506 = sst [smem:[#allocation32_spill]] %s3481_s4 }
   0x6   :  { %3507 = sst [smem:[#allocation33_spill]] %s3482_s5 }
   0x7   :  { %3508 = sst [smem:[#allocation34_spill]] %s3483_s6 }
   0x8   :  { %3509 = sst [smem:[#allocation35_spill]] %s3496_s19 }
   0x9   :  { %3510 = sst [smem:[#allocation36_spill]] %s3499_s22 }
   0xa   :  { %27 = vsyncpa [#allocation3], 0 }
   0xb   :  { %28 = vsyncpa [#allocation6], 0 }
   0xc   :  { %29 = vsyncpa [#allocation9], 0 }
   0xd   :  { %30 = vsyncpa [#allocation12], 0 }
   0xe   :  { %31 = vsyncpa [#allocation15], 0 }
   0xf   :  { %32 = vsyncpa [#allocation18], 0 }
  0x10   :  { %33 = vsyncpa [#allocation4], 0  ;;  %s3511_s29 = sld [smem:[#allocation30_spill]]  ;;  %s2760_s4 = smov [#allocation5]  }
  0x11   :  { %s55_s0 = sshll.u32 %s2760_s4, 4  ;;  %s3512_s5 = sld [smem:[#allocation33_spill]]  ;;  %s56_s0 = int_to_ptr.vmem [resolvable:$true] %s55_s0 }
  0x12   :  { %s2761_s6 = smov 128   ;;  %s2762_s25 = smov 8  }
  0x13   :  { %s2763_s26 = smov [#allocation8]   ;;  %s115_s28 = sshll.u32 %s3490_s13, 4  ;;  %s116_s28 = int_to_ptr.hbm [resolvable:$true] %s115_s28 }
  0x14   :  { %s82_s2 = sshll.u32 %s2763_s26, 4  ;;  %s2765_s22 = smov 16   ;;  %s83_s2 = int_to_ptr.vmem [resolvable:$true] %s82_s2 }
  0x15   :  { %s2766_s19 = smov 1   ;;  %s169_s13 = sshll.u32 %s3495_s18, 4  ;;  %s170_s13 = int_to_ptr.hbm [resolvable:$true] %s169_s13 }
  0x16   :  { %s53_s30 = sshll.u32 %s3511_s29, 4  ;;  %s2764_s29 = smov [#allocation11]   ;;  %s54_s30 = int_to_ptr.hbm [resolvable:$true] %s53_s30 }
  0x17   :  { %s80_s24 = sshll.u32 %s3512_s5, 4  ;;  %s117_s4 = sshll.u32 %s2764_s29, 4  ;;  %s81_s24 = int_to_ptr.hbm [resolvable:$true] %s80_s24  ;;  %s118_s4 = int_to_ptr.vmem [resolvable:$true] %s117_s4 }
  0x18   :  { %61 = dma.hbm_to_vmem [thread:$0]  %s54_s30, 256, %s56_s0, [#allocation6], %s2761_s6, %s2761_s6, %s2762_s25  }
  0x19   :  { %85 = dma.hbm_to_vmem [thread:$0]  %s81_s24, 16, %s83_s2, [#allocation9]  }
  0x1a   :  { %s143_s5 = sshll.u32 %s3493_s16, 4  ;;  %s2767_s30 = smov [#allocation14]   ;;  %s144_s5 = int_to_ptr.hbm [resolvable:$true] %s143_s5 }
  0x1b   :  { %123 = dma.hbm_to_vmem [thread:$0]  %s116_s28, 32, %s118_s4, [#allocation12], %s2765_s22, %s2765_s22, %s2766_s19  }
  0x1c   :  { %s145_s0 = sshll.u32 %s2767_s30, 4  ;;  %s3513_s27 = sld [smem:[#allocation29_spill]]  ;;  %s146_s0 = int_to_ptr.vmem [resolvable:$true] %s145_s0 }
  0x1d   :  { %151 = dma.hbm_to_vmem [thread:$0]  %s144_s5, 32, %s146_s0, [#allocation15], %s2765_s22, %s2765_s22, %s2766_s19  }
  0x1e   :  { %s2768_s29 = smov [#allocation17]   ;;  %s2769_s28 = smov [#allocation2]  }
  0x1f   :  { %s171_s23 = sshll.u32 %s2768_s29, 4  ;;  %s42_s18 = sshll.u32 %s2769_s28, 4  ;;  %s172_s23 = int_to_ptr.vmem [resolvable:$true] %s171_s23  ;;  %s43_s18 = int_to_ptr.vmem [resolvable:$true] %s42_s18 }
  0x20   :  { %177 = dma.hbm_to_vmem [thread:$0]  %s170_s13, 512, %s172_s23, [#allocation18], %s2761_s6, %s2761_s6, %s2762_s25  }
  0x21   :  { %s3514_s30 = sld [smem:[#allocation32_spill]]  ;;  %s100_s26 = sshll.u32 %s3488_s11, 4  ;;  %s101_s26 = int_to_ptr.hbm [resolvable:$true] %s100_s26 }
  0x22   :  { %s40_s3 = sshll.u32 %s3513_s27, 4  ;;  %s2770_s16 = smov [#allocation7]   ;;  %s41_s3 = int_to_ptr.hbm [resolvable:$true] %s40_s3 }
  0x23   :  { %48 = dma.hbm_to_vmem [thread:$0]  %s41_s3, 512, %s43_s18, [#allocation3], %s2761_s6, %s2761_s6, %s2762_s25  }
  0x24   :  { %s71_s2 = sshll.u32 %s2770_s16, 4  ;;  %s2771_s13 = smov [#allocation10]   ;;  %s72_s2 = int_to_ptr.vmem [resolvable:$true] %s71_s2 }
  0x25   :  { %s102_s27 = sshll.u32 %s2771_s13, 4  ;;  %s130_s28 = sshll.u32 %s3492_s15, 4  ;;  %s103_s27 = int_to_ptr.vmem [resolvable:$true] %s102_s27  ;;  %s131_s28 = int_to_ptr.hbm [resolvable:$true] %s130_s28 }
  0x26   :  { %108 = dma.hbm_to_vmem [thread:$0]  %s101_s26, 32, %s103_s27, [#allocation9], %s2765_s22, %s2765_s22, %s2766_s19  }
  0x27   :  { %s69_s24 = sshll.u32 %s3514_s30, 4  ;;  %s156_s11 = sshll.u32 %s3494_s17, 4  ;;  %s70_s24 = int_to_ptr.hbm [resolvable:$true] %s69_s24  ;;  %s157_s11 = int_to_ptr.hbm [resolvable:$true] %s156_s11 }
  0x28   :  { %74 = dma.hbm_to_vmem [thread:$0]  %s70_s24, 16, %s72_s2, [#allocation6]  }
  0x29   :  { %s2772_s18 = smov [#allocation13]   ;;  %s2773_s1 = smov [#allocation16]  }
  0x2a   :  { %s132_s4 = sshll.u32 %s2772_s18, 4  ;;  %s158_s15 = sshll.u32 %s2773_s1, 4  ;;  %s133_s4 = int_to_ptr.vmem [resolvable:$true] %s132_s4  ;;  %s159_s15 = int_to_ptr.vmem [resolvable:$true] %s158_s15 }
  0x2b   :  { %138 = dma.hbm_to_vmem [thread:$0]  %s131_s28, 32, %s133_s4, [#allocation12], %s2765_s22, %s2765_s22, %s2766_s19  }
  0x2c   :  { %s187_s5 = sshll.u32 %s3498_s21, 4  ;;  %s2774_s17 = smov [#allocation19]   ;;  %s188_s5 = int_to_ptr.hbm [resolvable:$true] %s187_s5 }
  0x2d   :  { %164 = dma.hbm_to_vmem [thread:$0]  %s157_s11, 32, %s159_s15, [#allocation15], %s2765_s22, %s2765_s22, %s2766_s19  }
  0x2e   :  { %s189_s0 = sshll.u32 %s2774_s17, 4  ;;  %s190_s0 = int_to_ptr.vmem [resolvable:$true] %s189_s0 }
  0x2f   :  { %192 = dma.hbm_to_vmem [thread:$0]  %s188_s5, 16, %s190_s0, [#allocation18]  }
  0x30   :  { %2746 = dma.done.wait [#allocation3], 512  }
  0x31   :  { %2747 = vsyncadd [#allocation3], 4294966784 }
  0x32   :  { %2748 = dma.done.wait [#allocation6], 272  }
  0x33   :  { %2749 = vsyncadd [#allocation6], 4294967024 }
  0x34   :  { %2750 = dma.done.wait [#allocation9], 48  }
  0x35   :  { %2751 = vsyncadd [#allocation9], 4294967248 }
  0x36   :  { %2752 = dma.done.wait [#allocation12], 64  }
  0x37   :  { %2753 = vsyncadd [#allocation12], 4294967232 }
  0x38   :  { %2754 = dma.done.wait [#allocation15], 64  }
  0x39   :  { %2755 = vsyncadd [#allocation15], 4294967232 }
  0x3a   :  { %2756 = dma.done.wait [#allocation18], 528  }
  0x3b   :  { %2757 = vsyncadd [#allocation18], 4294966768  ;;  %v2775_v0 = vmov 0   ;;  %vm265_vm0 = vcmask 1045504   ;;  %s3515_s26 = sld [smem:[#allocation28_spill]]  ;;  %v255_v3 = vld [vmem:[#allocation2 + $0x10] sm:$0xff]  ;;  %v239_v6 = vlaneseq }
  0x3c   :  { %2335 = vset.pattern.permute.xlu0 %v2775_v0  ;;  %2336 = vset.pattern.permute.xlu2 %v2775_v0  ;;  %v256_v2 = vld [vmem:[#allocation2 + $0x18] sm:$0x3f]  ;;  %v254_v4 = vld [vmem:[#allocation2 + $0x8] sm:$0xff]  ;;  %v253_v5 = vld [vmem:[#allocation2] sm:$0xff]  ;;  %vm258_vm1 = vcmask 244736   ;;  %v2776_v9 = vmov 0.0  }
  0x3d   :  { %2211 = vmatpush.msk.msra.mxu0 %vm265_vm0, %v256_v2  ;;  %v2966_v7 = vand.u32 127, %v239_v6  ;;  %v2970_v11 = vld [vmem:[#allocation5] sm:$0xff]  ;;  %s3516_s13 = sld [smem:[#allocation31_spill]]  ;;  %vm298_vm3 = vcmask 261120   ;;  %v2777_v17 = vmov 32.0   ;;  %s2778_s5 = smov 88  }
  0x3e   :  { %2358 = vrcp.f32 %v2777_v17  ;;  %s3517_s6 = sld [smem:[#allocation34_spill]]  ;;  %v3000_v43 = vld [vmem:[#allocation7] ss:$0 sm:$0xff]  ;;  %v3002_v46 = vld [vmem:[#allocation8] ss:$0 sm:$0xff]  ;;  %s2779_s17 = smov 96  }
  0x3f   :  { %282 = vmatpush.msra.mxu0 %v255_v3  ;;  %v3015_v51 = vld [vmem:[%s3484_s7] ss:$0 sm:$0xff]  ;;  %s2780_s0 = smov 120   ;;  %s2781_s19 = smov 72   ;;  %vm423_vm9 = vcmask 64512   ;;  %vm697_vm13 = vcmask 130048  }
  0x40   :  { %s2782_s21 = smov 80   ;;  %s2784_s16 = smov 104   ;;  %vm699_vm14 = vcmask 195584  }
  0x41   :  { %v237_v1 = vld [vmem:[%s3515_s26] sm:$0xff]  ;;  %283 = vmatpush.msra.mxu0 %v254_v4  ;;  %v238_v29 = vld [vmem:[%s3515_s26 + $0x8] sm:$0xff]  ;;  %s2783_s26 = smov 112   ;;  %s2785_s2 = smov 64  }
  0x42   :  { %242 = vperm.xlu0 %2335, %v237_v1   ;;  %245 = vperm.xlu2 %2336, %v238_v29   ;;  %s2787_s27 = smov 56   ;;  %s2788_s29 = smov 48  }
  0x43   :  { %284 = vmatpush.msra.mxu0 %v253_v5  ;;  %v2975_v12 = vld [vmem:[%s3516_s13] ss:$0 sm:$0xff]  ;;  %s2786_s13 = smov 40   ;;  %s2789_s23 = smov 24  }
  0x44   :  { %v2359_v18 = vpop.eup %2358  ;;  %v363_v30 = vld [vmem:[%s3517_s6 + $0x18] sm:$0xff]  ;;  %v362_v31 = vld [vmem:[%s3517_s6 + $0x10] sm:$0xff]  ;;  %v361_v32 = vld [vmem:[%s3517_s6 + $0x8] sm:$0xff] }
  0x45   :  { %v306_v19 = vmul.f32 32.0, %v2359_v18  ;;  %vm310_vm4 = vweird.f32 %v2359_v18  ;;  %409 = vmatpush.msra.mxu1 %v363_v30  ;;  %v360_v33 = vld [vmem:[%s3517_s6] sm:$0xff] }
  0x47   :  { %v307_v20 = vsub.f32 1.0, %v306_v19  ;;  %410 = vmatpush.msra.mxu1 %v362_v31 }
  0x49   :  { %v308_v21 = vmul.f32 %v2359_v18, %v307_v20  ;;  %411 = vmatpush.msra.mxu1 %v361_v32 }
  0x4b   :  { %v309_v22 = vadd.f32 %v2359_v18, %v308_v21  ;;  %412 = vmatpush.msra.mxu1 %v360_v33 }
  0x4d   :  { %v2980_v23 = vsel %vm310_vm4, %v2359_v18, %v309_v22 }
  0x9c   :  { %v246_v49 = vpop.permute.xlu2 %245 }
  0x9d   :  { %vm248_vm8 = vcmp.eq.s32.totalorder %v2966_v7, %v246_v49 }
  0x9e   :  { %v2210_v50 = vsel %vm248_vm8, 1.0, %v2776_v9 }
  0xb4   :  { %v243_v8 = vpop.permute.xlu0 %242 }
  0xb5   :  { %vm247_vm2 = vcmp.eq.s32.totalorder %v2966_v7, %v243_v8 }
  0xb6   :  { %v2209_v10 = vsel %vm247_vm2, 1.0, %v2776_v9  ;;  %vm1139_vm2 = vcmask 523264  }
  0xb7   :  { %2212 = vmatmul.msk.f32.vlgmr.msra.gmra.mxu0 %vm258_vm1, %v2209_v10 }
  0xbf   :  { %2213 = vmatmul.msk.f32.gmra.mxu0 %vm258_vm1, %v2210_v50 }
 0x134   :  { %v286_v13 = vpop.f32.mrf.mxu0 }
 0x135   :  { %v287_v14 = vadd.f32 %v286_v13, %v2970_v11 }
 0x137   :  { %v294_v15 = vadd.f32 %v2975_v12, %v287_v14 }
 0x139   :  { %v299_v16 = vsel %vm298_vm3, %v294_v15, 0.0 }
 0x13a   :  { %300 = vadd.xlane.f32.xlu0 %v299_v16 }
 0x13c   :  { %v289_v54 = vpop.f32.mrf.mxu0 }
 0x13d   :  { %v290_v55 = vadd.f32 %v289_v54, %v2970_v11 }
 0x13f   :  { %v295_v56 = vadd.f32 %v2975_v12, %v290_v55 }
 0x141   :  { %v302_v57 = vsel %vm298_vm3, %v295_v56, 0.0 }
 0x1ad   :  { %v301_v24 = vpop.xlane.xlu0 %300 }
 0x1ae   :  { %v312_v25 = vmul.f32 %v2980_v23, %v301_v24 }
 0x1b0   :  { %v314_v26 = vsub.f32 %v294_v15, %v312_v25 }
 0x1b2   :  { %v316_v27 = vmul.f32 %v314_v26, %v314_v26 }
 0x1b4   :  { %v318_v28 = vsel %vm298_vm3, %v316_v27, 0.0 }
 0x1b5   :  { %319 = vadd.xlane.f32.xlu1 %v318_v28 }
 0x228   :  { %v320_v34 = vpop.xlane.xlu1 %319 }
 0x229   :  { %v324_v35 = vmul.f32 %v320_v34, %v2980_v23 }
 0x22b   :  { %v326_v36 = vadd.f32 1e-12, %v324_v35 }
 0x22d   :  { %2360 = vrsqrt.f32 %v326_v36  ;;  %vm334_vm6 = vweird.f32 %v326_v36 }
 0x233   :  { %v2361_v37 = vpop.eup %2360 }
 0x234   :  { %v329_v38 = vmul.f32 %v2361_v37, %v326_v36  ;;  %vm335_vm5 = vweird.f32 %v2361_v37 }
 0x235   :  { %vm336_vm7 = vmor %vm334_vm6, %vm335_vm5 }
 0x236   :  { %v330_v39 = vmul.f32 %v2361_v37, %v329_v38 }
 0x238   :  { %v331_v40 = vmul.f32 0.5, %v330_v39 }
 0x23a   :  { %v332_v41 = vsub.f32 1.5, %v331_v40 }
 0x23c   :  { %v333_v42 = vmul.f32 %v2361_v37, %v332_v41 }
 0x23e   :  { %v337_v44 = vsel %vm336_vm7, %v2361_v37, %v333_v42 }
 0x23f   :  { %v348_v45 = vmul.f32 %v337_v44, %v314_v26 }
 0x241   :  { %v353_v47 = vmul.f32 %v3000_v43, %v348_v45 }
 0x243   :  { %v3006_v48 = vadd.f32 %v3002_v46, %v353_v47 }
 0x245   :  { %2214 = vmatmul.msk.f32.vlgmr.msra.gmra.mxu1 %vm298_vm3, %v3006_v48 }
 0x2c2   :  { %v414_v52 = vpop.f32.mrf.mxu1 }
 0x2c3   :  { %v3018_v53 = vadd.f32 %v3015_v51, %v414_v52 }
 0x2c5   :  { %488 = vrot.lane.b32.xlu2 %v3018_v53, %s2778_s5  ;;  %421 = vrot.lane.b32.xlu1 %v3018_v53, %s2779_s17 }
 0x2cd   :  { %486 = vrot.lane.b32.xlu2 %v3018_v53, %s2780_s0  ;;  %620 = vrot.lane.b32.xlu1 %v3018_v53, %s2781_s19 }
 0x2d5   :  { %554 = vrot.lane.b32.xlu2 %v3018_v53, %s2782_s21 }
 0x2dd   :  { %552 = vrot.lane.b32.xlu2 %v3018_v53, %s2783_s26 }
 0x2e5   :  { %618 = vrot.lane.b32.xlu2 %v3018_v53, %s2784_s16 }
 0x30e   :  { %303 = vadd.xlane.f32.xlu2 %v302_v57 }
 0x31f   :  { %v489_v58 = vpop.permute.xlu2 %488 }
 0x320   :  { %2219 = vmatpush.xpose.msk.msra.mxu3 %vm423_vm9, %v489_v58 }
 0x326   :  { %460 = vrot.lane.b32.xlu2 %v3018_v53, %s2785_s2 }
 0x327   :  { %v487_v59 = vpop.permute.xlu2 %486 }
 0x328   :  { %2220 = vmatmul.msk.f32.vlgmr.msra.gmra.mxu3 %vm423_vm9, %v487_v59 }
 0x32e   :  { %658 = vrot.lane.b32.xlu2 %v3018_v53, %s2786_s13 }
 0x32f   :  { %v555_v60 = vpop.permute.xlu2 %554 }
 0x330   :  { %2222 = vmatpush.xpose.msk.msrb.mxu3 %vm423_vm9, %v555_v60 }
 0x337   :  { %v553_v61 = vpop.permute.xlu2 %552  ;;  %v422_v62 = vpop.permute.xlu1 %421 }
 0x338   :  { %2216 = vmatpush.xpose.msk.msra.mxu2 %vm423_vm9, %v422_v62  ;;  %2223 = vmatmul.msk.f32.vlgmr.msrb.gmra.mxu3 %vm423_vm9, %v553_v61 }
 0x33b   :  { %2217 = vmatmul.msk.f32.vlgmr.msra.gmra.mxu2 %vm423_vm9, %v3018_v53 }
 0x33f   :  { %v621_v63 = vpop.permute.xlu1 %620  ;;  %v619_v0 = vpop.permute.xlu2 %618 }
 0x340   :  { %2225 = vmatpush.xpose.msk.msrb.mxu0 %vm423_vm9, %v621_v63 }
 0x343   :  { %2226 = vmatmul.msk.f32.vlgmr.msrb.gmra.mxu0 %vm423_vm9, %v619_v0 }
 0x381   :  { %v304_v1 = vpop.xlane.xlu2 %303 }
 0x382   :  { %v313_v5 = vmul.f32 %v2980_v23, %v304_v1 }
 0x384   :  { %v315_v10 = vsub.f32 %v295_v56, %v313_v5 }
 0x386   :  { %v317_v12 = vmul.f32 %v315_v10, %v315_v10 }
 0x388   :  { %v321_v13 = vsel %vm298_vm3, %v317_v12, 0.0 }
 0x389   :  { %v461_v2 = vpop.permute.xlu2 %460 }
 0x38a   :  { %481 = vmatpush.msrb.mxu2 %v461_v2 }
 0x391   :  { %v659_v3 = vpop.permute.xlu2 %658 }
 0x392   :  { %679 = vmatpush.msrb.mxu1 %v659_v3 }
 0x3ab   :  { %v511_v14 = vpop.f32.mrf.mxu3 }
 0x3ac   :  { %v514_v15 = vmul.f32 0.35355338, %v511_v14  ;;  %v368_v14 = vld [vmem:[%s3485_s8 + $0x18] sm:$0xff] }
 0x3ad   :  { %716 = vmatpush.msra.mxu3 %v368_v14 }
 0x3ae   :  { %v515_v16 = vsel %vm423_vm9, %v514_v15, -inf }
 0x3bb   :  { %v577_v17 = vpop.f32.mrf.mxu3 }
 0x3bc   :  { %v580_v18 = vmul.f32 0.35355338, %v577_v17 }
 0x3be   :  { %v445_v4 = vpop.f32.mrf.mxu2  ;;  %v581_v19 = vsel %vm423_vm9, %v580_v18, -inf }
 0x3bf   :  { %v448_v6 = vmul.f32 0.35355338, %v445_v4 }
 0x3c0   :  { %v643_v7 = vpop.f32.mrf.mxu0 }
 0x3c1   :  { %v646_v8 = vmul.f32 0.35355338, %v643_v7  ;;  %v449_v9 = vsel %vm423_vm9, %v448_v6, -inf }
 0x3c2   :  { %450 = vmax.xlane.f32.xlu1 %v449_v9 }
 0x3c3   :  { %v647_v11 = vsel %vm423_vm9, %v646_v8, -inf }
 0x3c4   :  { %648 = vmax.xlane.f32.xlu0 %v647_v11 }
 0x3cc   :  { %322 = vadd.xlane.f32.xlu0 %v321_v13 }
 0x3d4   :  { %516 = vmax.xlane.f32.xlu0 %v515_v16  ;;  %v366_v16 = vld [vmem:[%s3485_s8 + $0x8] sm:$0xff] }
 0x3dc   :  { %582 = vmax.xlane.f32.xlu0 %v581_v19 }
 0x435   :  { %v451_v20 = vpop.xlane.xlu1 %450 }
 0x436   :  { %v452_v21 = vsub.f32 %v448_v6, %v451_v20 }
 0x437   :  { %v649_v22 = vpop.xlane.xlu0 %648 }
 0x438   :  { %v453_v24 = vmul.f32 1.442695, %v452_v21  ;;  %v650_v25 = vsub.f32 %v646_v8, %v649_v22  ;;  %v365_v21 = vld [vmem:[%s3485_s8] sm:$0xff] }
 0x43a   :  { %2362 = vpow2.f32 %v453_v24  ;;  %v651_v26 = vmul.f32 1.442695, %v650_v25 }
 0x43c   :  { %2364 = vpow2.f32 %v651_v26 }
 0x43f   :  { %v323_v27 = vpop.xlane.xlu0 %322 }
 0x440   :  { %v2363_v28 = vpop.eup %2362  ;;  %v325_v29 = vmul.f32 %v323_v27, %v2980_v23 }
 0x441   :  { %v455_v30 = vsel %vm423_vm9, %v2363_v28, 0.0 }
 0x442   :  { %v327_v31 = vadd.f32 1e-12, %v325_v29  ;;  %456 = vadd.xlane.f32.xlu0 %v455_v30  ;;  %v2365_v32 = vpop.eup %2364 }
 0x443   :  { %v653_v35 = vsel %vm423_vm9, %v2365_v32, 0.0 }
 0x444   :  { %2366 = vrsqrt.f32 %v327_v31  ;;  %vm344_vm11 = vweird.f32 %v327_v31 }
 0x447   :  { %v517_v33 = vpop.xlane.xlu0 %516 }
 0x448   :  { %v518_v34 = vsub.f32 %v514_v15, %v517_v33  ;;  %v367_v15 = vld [vmem:[%s3485_s8 + $0x10] sm:$0xff] }
 0x449   :  { %717 = vmatpush.msra.mxu3 %v367_v15 }
 0x44a   :  { %v2367_v36 = vpop.eup %2366  ;;  %v519_v37 = vmul.f32 1.442695, %v518_v34  ;;  %654 = vadd.xlane.f32.xlu0 %v653_v35  ;;  %v3124_v34 = vld [vmem:[%s3486_s9] ss:$0 sm:$0xff] }
 0x44b   :  { %v339_v38 = vmul.f32 %v2367_v36, %v327_v31  ;;  %vm345_vm10 = vweird.f32 %v2367_v36  ;;  %718 = vmatpush.msra.mxu3 %v366_v16 }
 0x44c   :  { %2368 = vpow2.f32 %v519_v37  ;;  %vm346_vm12 = vmor %vm344_vm11, %vm345_vm10 }
 0x44d   :  { %v340_v39 = vmul.f32 %v2367_v36, %v339_v38  ;;  %719 = vmatpush.msra.mxu3 %v365_v21 }
 0x44f   :  { %v341_v40 = vmul.f32 0.5, %v340_v39  ;;  %v583_v41 = vpop.xlane.xlu0 %582 }
 0x450   :  { %v584_v42 = vsub.f32 %v580_v18, %v583_v41 }
 0x451   :  { %v342_v44 = vsub.f32 1.5, %v341_v40 }
 0x452   :  { %v2369_v45 = vpop.eup %2368  ;;  %v585_v47 = vmul.f32 1.442695, %v584_v42 }
 0x453   :  { %v343_v49 = vmul.f32 %v2367_v36, %v342_v44  ;;  %v521_v50 = vsel %vm423_vm9, %v2369_v45, 0.0 }
 0x454   :  { %2370 = vpow2.f32 %v585_v47  ;;  %522 = vadd.xlane.f32.xlu1 %v521_v50 }
 0x455   :  { %v347_v52 = vsel %vm346_vm12, %v2367_v36, %v343_v49 }
 0x456   :  { %v349_v54 = vmul.f32 %v347_v52, %v315_v10 }
 0x458   :  { %v354_v55 = vmul.f32 %v3000_v43, %v349_v54 }
 0x45a   :  { %v2371_v56 = vpop.eup %2370  ;;  %v3062_v57 = vadd.f32 %v3002_v46, %v354_v55 }
 0x45b   :  { %v587_v58 = vsel %vm423_vm9, %v2371_v56, 0.0 }
 0x45c   :  { %2215 = vmatmul.msk.f32.gmra.mxu1 %vm298_vm3, %v3062_v57  ;;  %588 = vadd.xlane.f32.xlu0 %v587_v58 }
 0x46d   :  { %526 = vrot.lane.b32.xlu1 %v3018_v53, %s2787_s27 }
 0x470   :  { %592 = vrot.lane.b32.xlu0 %v3018_v53, %s2788_s29 }
 0x4b5   :  { %v457_v59 = vpop.xlane.xlu0 %456 }
 0x4b6   :  { %2372 = vrcp.f32 %v457_v59 }
 0x4bc   :  { %v2373_v43 = vpop.eup %2372 }
 0x4bd   :  { %v655_v60 = vpop.xlane.xlu0 %654  ;;  %v459_v46 = vmul.f32 %v2373_v43, %v2363_v28 }
 0x4be   :  { %2374 = vrcp.f32 %v655_v60 }
 0x4bf   :  { %2218 = vmatmul.msk.f32.vlgmr.msrb.gmra.mxu2 %vm423_vm9, %v459_v46 }
 0x4c4   :  { %v2375_v61 = vpop.eup %2374 }
 0x4c5   :  { %v657_v62 = vmul.f32 %v2375_v61, %v2365_v32 }
 0x4c7   :  { %2227 = vmatmul.msk.f32.vlgmr.msrb.gmra.mxu1 %vm423_vm9, %v657_v62  ;;  %v523_v63 = vpop.xlane.xlu1 %522 }
 0x4c8   :  { %2376 = vrcp.f32 %v523_v63 }
 0x4ce   :  { %v2377_v53 = vpop.eup %2376 }
 0x4cf   :  { %v589_v1 = vpop.xlane.xlu0 %588  ;;  %v525_v3 = vmul.f32 %v2377_v53, %v2369_v45 }
 0x4d0   :  { %2378 = vrcp.f32 %v589_v1 }
 0x4d6   :  { %v2379_v6 = vpop.eup %2378 }
 0x4d7   :  { %v591_v7 = vmul.f32 %v2379_v6, %v2371_v56 }
 0x4d9   :  { %v417_v0 = vpop.f32.mrf.mxu1 }
 0x4da   :  { %v3074_v2 = vadd.f32 %v3015_v51, %v417_v0 }
 0x4dc   :  { %725 = vrot.lane.b32.xlu2 %v3074_v2, %s2779_s17 }
 0x4df   :  { %v527_v4 = vpop.permute.xlu1 %526 }
 0x4e0   :  { %547 = vmatpush.msra.mxu2 %v527_v4 }
 0x4e1   :  { %2221 = vmatmul.msk.f32.vlgmr.msra.gmra.mxu2 %vm423_vm9, %v525_v3 }
 0x4e2   :  { %v593_v5 = vpop.permute.xlu0 %592 }
 0x4e3   :  { %613 = vmatpush.msrb.mxu2 %v593_v5 }
 0x4e4   :  { %857 = vrot.lane.b32.xlu2 %v3074_v2, %s2782_s21 }
 0x4e9   :  { %2224 = vmatmul.msk.f32.vlgmr.msrb.gmra.mxu2 %vm423_vm9, %v591_v7 }
 0x4ec   :  { %789 = vrot.lane.b32.xlu2 %v3074_v2, %s2780_s0 }
 0x536   :  { %v726_v51 = vpop.permute.xlu2 %725 }
 0x537   :  { %2229 = vmatpush.xpose.msk.msra.mxu2 %vm423_vm9, %v726_v51 }
 0x53a   :  { %2230 = vmatmul.msk.f32.vlgmr.msra.gmra.mxu2 %vm423_vm9, %v3074_v2 }
 0x53e   :  { %v858_v8 = vpop.permute.xlu2 %857 }
 0x53f   :  { %2235 = vmatpush.xpose.msk.msrb.mxu2 %vm423_vm9, %v858_v8 }
 0x542   :  { %v483_v10 = vpop.f32.mrf.mxu2 }
 0x543   :  { %1017 = vmatpush.msra.mxu2 %v368_v14 }
 0x544   :  { %v681_v9 = vpop.f32.mrf.mxu1 }
 0x545   :  { %693 = vrot.lane.b32.xlu0 %v681_v9, %s2789_s23  ;;  %1018 = vmatpush.msra.mxu2 %v367_v15 }
 0x546   :  { %v790_v22 = vpop.permute.xlu2 %789 }
 0x547   :  { %1019 = vmatpush.msra.mxu2 %v366_v16 }
 0x549   :  { %1020 = vmatpush.msra.mxu2 %v365_v21 }
 0x54d   :  { %791 = vrot.lane.b32.xlu0 %v3074_v2, %s2778_s5 }
 0x555   :  { %921 = vrot.lane.b32.xlu0 %v3074_v2, %s2784_s16 }
 0x564   :  { %v549_v11 = vpop.f32.mrf.mxu2 }
 0x565   :  { %685 = vrot.lane.b32.xlu1 %v549_v11, %s2762_s25 }
 0x56c   :  { %v615_v12 = vpop.f32.mrf.mxu2 }
 0x56d   :  { %689 = vrot.lane.b32.xlu1 %v615_v12, %s2765_s22 }
 0x575   :  { %855 = vrot.lane.b32.xlu1 %v3074_v2, %s2783_s26 }
 0x57d   :  { %923 = vrot.lane.b32.xlu1 %v3074_v2, %s2781_s19 }
 0x5b7   :  { %v694_v13 = vpop.permute.xlu0 %693 }
 0x5bd   :  { %v748_v17 = vpop.f32.mrf.mxu2 }
 0x5be   :  { %v751_v18 = vmul.f32 0.35355338, %v748_v17 }
 0x5bf   :  { %v792_v19 = vpop.permute.xlu0 %791 }
 0x5c0   :  { %2232 = vmatpush.xpose.msk.msra.mxu1 %vm423_vm9, %v792_v19  ;;  %v752_v20 = vsel %vm423_vm9, %v751_v18, -inf }
 0x5c1   :  { %753 = vmax.xlane.f32.xlu2 %v752_v20 }
 0x5c3   :  { %2233 = vmatmul.msk.f32.vlgmr.msra.gmra.mxu1 %vm423_vm9, %v790_v22 }
 0x5c7   :  { %v922_v31 = vpop.permute.xlu0 %921 }
 0x5d7   :  { %v686_v24 = vpop.permute.xlu1 %685 }
 0x5d8   :  { %v696_v25 = vsel %vm423_vm9, %v483_v10, %v686_v24 }
 0x5df   :  { %v690_v26 = vpop.permute.xlu1 %689 }
 0x5e0   :  { %v698_v27 = vsel %vm697_vm13, %v696_v25, %v690_v26  ;;  %v3151_v26 = vld [vmem:[%s3487_s10] ss:$0 sm:$0xff] }
 0x5e1   :  { %v700_v28 = vsel %vm699_vm14, %v698_v27, %v694_v13 }
 0x5e2   :  { %2228 = vmatmul.msk.f32.vlgmr.msra.gmra.mxu3 %vm298_vm3, %v700_v28 }
 0x5e7   :  { %v856_v29 = vpop.permute.xlu1 %855 }
 0x5e8   :  { %2236 = vmatmul.msk.f32.vlgmr.msrb.gmra.mxu2 %vm423_vm9, %v856_v29 }
 0x5ef   :  { %v924_v30 = vpop.permute.xlu1 %923 }
 0x5f0   :  { %2238 = vmatpush.xpose.msk.msrb.mxu1 %vm423_vm9, %v924_v30  ;;  %v375_v30 = vld [vmem:[%s3489_s12 + $0x18] sm:$0xff] }
 0x5f3   :  { %2239 = vmatmul.msk.f32.vlgmr.msrb.gmra.mxu1 %vm423_vm9, %v922_v31  ;;  %v374_v31 = vld [vmem:[%s3489_s12 + $0x10] sm:$0xff] }
 0x634   :  { %v754_v32 = vpop.xlane.xlu2 %753 }
 0x635   :  { %v755_v33 = vsub.f32 %v751_v18, %v754_v32 }
 0x637   :  { %v756_v35 = vmul.f32 1.442695, %v755_v33  ;;  %v373_v33 = vld [vmem:[%s3489_s12 + $0x8] sm:$0xff] }
 0x639   :  { %2380 = vpow2.f32 %v756_v35  ;;  %v3164_v35 = vld [vmem:[#allocation10] ss:$0 sm:$0xff] }
 0x63f   :  { %v2381_v44 = vpop.eup %2380 }
 0x640   :  { %v758_v45 = vsel %vm423_vm9, %v2381_v44, 0.0  ;;  %v814_v47 = vpop.f32.mrf.mxu1 }
 0x641   :  { %v817_v49 = vmul.f32 0.35355338, %v814_v47  ;;  %v384_v47 = vld [vmem:[%s3491_s14 + $0x38] sm:$0xff] }
 0x642   :  { %1154 = vmatpush.msra.mxu1 %v384_v47 }
 0x643   :  { %v818_v50 = vsel %vm423_vm9, %v817_v49, -inf }
 0x665   :  { %v721_v36 = vpop.f32.mrf.mxu3 }
 0x666   :  { %v1028_v37 = vadd.f32 %v3124_v34, %v721_v36 }
 0x668   :  { %v1030_v38 = vadd.f32 %v1028_v37, %v3006_v48  ;;  %v372_v37 = vld [vmem:[%s3489_s12] sm:$0xff] }
 0x66a   :  { %v1032_v39 = vsel %vm298_vm3, %v1030_v38, 0.0 }
 0x66b   :  { %1033 = vadd.xlane.f32.xlu1 %v1032_v39  ;;  %v880_v40 = vpop.f32.mrf.mxu2 }
 0x66c   :  { %v883_v41 = vmul.f32 0.35355338, %v880_v40 }
 0x66e   :  { %v884_v42 = vsel %vm423_vm9, %v883_v41, -inf }
 0x66f   :  { %885 = vmax.xlane.f32.xlu0 %v884_v42 }
 0x670   :  { %v946_v52 = vpop.f32.mrf.mxu1 }
 0x671   :  { %v949_v48 = vmul.f32 0.35355338, %v946_v52 }
 0x673   :  { %759 = vadd.xlane.f32.xlu1 %v758_v45  ;;  %v950_v54 = vsel %vm423_vm9, %v949_v48, -inf }
 0x67b   :  { %819 = vmax.xlane.f32.xlu1 %v818_v50  ;;  %v382_v50 = vld [vmem:[%s3491_s14 + $0x28] sm:$0xff] }
 0x683   :  { %951 = vmax.xlane.f32.xlu1 %v950_v54  ;;  %v380_v54 = vld [vmem:[%s3491_s14 + $0x18] sm:$0xff] }
 0x6de   :  { %v1034_v55 = vpop.xlane.xlu1 %1033 }
 0x6df   :  { %v1038_v56 = vmul.f32 %v1034_v55, %v2980_v23  ;;  %v379_v55 = vld [vmem:[%s3491_s14 + $0x10] sm:$0xff] }
 0x6e1   :  { %v1040_v58 = vsub.f32 %v1030_v38, %v1038_v56  ;;  %v378_v56 = vld [vmem:[%s3491_s14 + $0x8] sm:$0xff] }
 0x6e2   :  { %v886_v59 = vpop.xlane.xlu0 %885 }
 0x6e3   :  { %v887_v43 = vsub.f32 %v883_v41, %v886_v59  ;;  %v1042_v60 = vmul.f32 %v1040_v58, %v1040_v58  ;;  %v377_v59 = vld [vmem:[%s3491_s14] sm:$0xff] }
 0x6e5   :  { %v888_v46 = vmul.f32 1.442695, %v887_v43  ;;  %v1044_v61 = vsel %vm298_vm3, %v1042_v60, 0.0  ;;  %v3197_v43 = vld [vmem:[#allocation11] ss:$0 sm:$0xff] }
 0x6e6   :  { %1045 = vadd.xlane.f32.xlu2 %v1044_v61  ;;  %v760_v62 = vpop.xlane.xlu1 %759 }
 0x6e7   :  { %2382 = vpow2.f32 %v888_v46 }
 0x6ed   :  { %v2383_v63 = vpop.eup %2382 }
 0x6ee   :  { %v820_v0 = vpop.xlane.xlu1 %819  ;;  %v890_v1 = vsel %vm423_vm9, %v2383_v63, 0.0 }
 0x6ef   :  { %v821_v53 = vsub.f32 %v817_v49, %v820_v0  ;;  %891 = vadd.xlane.f32.xlu0 %v890_v1  ;;  %v383_v49 = vld [vmem:[%s3491_s14 + $0x30] sm:$0xff] }
 0x6f0   :  { %1155 = vmatpush.msra.mxu1 %v383_v49 }
 0x6f1   :  { %v822_v3 = vmul.f32 1.442695, %v821_v53 }
 0x6f2   :  { %1156 = vmatpush.msra.mxu1 %v382_v50 }
 0x6f3   :  { %2384 = vpow2.f32 %v822_v3 }
 0x6f6   :  { %v952_v6 = vpop.xlane.xlu1 %951 }
 0x6f7   :  { %v953_v7 = vsub.f32 %v949_v48, %v952_v6  ;;  %v381_v48 = vld [vmem:[%s3491_s14 + $0x20] sm:$0xff] }
 0x6f8   :  { %1157 = vmatpush.msra.mxu1 %v381_v48 }
 0x6f9   :  { %v2385_v4 = vpop.eup %2384  ;;  %v954_v51 = vmul.f32 1.442695, %v953_v7 }
 0x6fa   :  { %v824_v5 = vsel %vm423_vm9, %v2385_v4, 0.0  ;;  %1158 = vmatpush.msra.mxu1 %v380_v54 }
 0x6fb   :  { %825 = vadd.xlane.f32.xlu1 %v824_v5  ;;  %2386 = vpow2.f32 %v954_v51 }
 0x6fc   :  { %2388 = vrcp.f32 %v760_v62  ;;  %1159 = vmatpush.msra.mxu1 %v379_v55 }
 0x6fe   :  { %763 = vrot.lane.b32.xlu2 %v3074_v2, %s2785_s2  ;;  %1160 = vmatpush.msra.mxu1 %v378_v56 }
 0x700   :  { %1161 = vmatpush.msra.mxu1 %v377_v59 }
 0x701   :  { %v2387_v8 = vpop.eup %2386 }
 0x702   :  { %v956_v9 = vsel %vm423_vm9, %v2387_v8, 0.0  ;;  %v2389_v13 = vpop.eup %2388 }
 0x703   :  { %895 = vrot.lane.b32.xlu0 %v3074_v2, %s2788_s29  ;;  %v762_v14 = vmul.f32 %v2389_v13, %v2381_v44 }
 0x70b   :  { %829 = vrot.lane.b32.xlu0 %v3074_v2, %s2787_s27 }
 0x714   :  { %961 = vrot.lane.b32.xlu1 %v3074_v2, %s2786_s13 }
 0x727   :  { %957 = vadd.xlane.f32.xlu2 %v956_v9 }
 0x759   :  { %v1046_v10 = vpop.xlane.xlu2 %1045 }
 0x75a   :  { %v1050_v11 = vmul.f32 %v1046_v10, %v2980_v23 }
 0x75c   :  { %v1052_v12 = vadd.f32 1e-12, %v1050_v11 }
 0x75e   :  { %2390 = vrsqrt.f32 %v1052_v12  ;;  %vm1060_vm0 = vweird.f32 %v1052_v12 }
 0x761   :  { %v764_v15 = vpop.permute.xlu2 %763 }
 0x762   :  { %784 = vmatpush.msra.mxu0 %v764_v15  ;;  %v892_v19 = vpop.xlane.xlu0 %891 }
 0x763   :  { %2231 = vmatmul.msk.f32.vlgmr.msra.gmra.mxu0 %vm423_vm9, %v762_v14  ;;  %2392 = vrcp.f32 %v892_v19 }
 0x764   :  { %v2391_v2 = vpop.eup %2390 }
 0x765   :  { %v1055_v16 = vmul.f32 %v2391_v2, %v1052_v12  ;;  %vm1061_vm15 = vweird.f32 %v2391_v2 }
 0x766   :  { %vm1062_vm1 = vmor %vm1060_vm0, %vm1061_vm15 }
 0x767   :  { %v1056_v17 = vmul.f32 %v2391_v2, %v1055_v16 }
 0x769   :  { %v1057_v18 = vmul.f32 0.5, %v1056_v17  ;;  %v2393_v24 = vpop.eup %2392 }
 0x76a   :  { %v894_v28 = vmul.f32 %v2393_v24, %v2383_v63 }
 0x76b   :  { %v1058_v20 = vsub.f32 1.5, %v1057_v18 }
 0x76d   :  { %v1059_v21 = vmul.f32 %v2391_v2, %v1058_v20 }
 0x76e   :  { %v826_v22 = vpop.xlane.xlu1 %825 }
 0x76f   :  { %v1063_v25 = vsel %vm1062_vm1, %v2391_v2, %v1059_v21  ;;  %2394 = vrcp.f32 %v826_v22 }
 0x770   :  { %v1074_v27 = vmul.f32 %v1063_v25, %v1040_v58 }
 0x772   :  { %v1079_v32 = vmul.f32 %v3151_v26, %v1074_v27 }
 0x774   :  { %v1084_v40 = vadd.f32 %v3164_v35, %v1079_v32 }
 0x775   :  { %v896_v29 = vpop.permute.xlu0 %895  ;;  %v2395_v36 = vpop.eup %2394 }
 0x776   :  { %916 = vmatpush.msrb.mxu0 %v896_v29  ;;  %v828_v38 = vmul.f32 %v2395_v36, %v2385_v4  ;;  %v2248_v29 = vld [vmem:[%s3517_s6 + $0x30] sm:$0xff] }
 0x777   :  { %2237 = vmatmul.msk.f32.vlgmr.msrb.gmra.mxu0 %vm423_vm9, %v894_v28  ;;  %v2249_v28 = vld [vmem:[%s3517_s6 + $0x38] sm:$0xff] }
 0x778   :  { %1107 = vmatpush.msra.mxu0 %v375_v30  ;;  %v2247_v30 = vld [vmem:[%s3517_s6 + $0x28] sm:$0xff] }
 0x77a   :  { %1108 = vmatpush.msra.mxu0 %v374_v31 }
 0x77c   :  { %1109 = vmatpush.msra.mxu0 %v373_v33 }
 0x77d   :  { %v830_v39 = vpop.permute.xlu0 %829 }
 0x77e   :  { %850 = vmatpush.msrb.mxu3 %v830_v39  ;;  %1110 = vmatpush.msra.mxu0 %v372_v37 }
 0x77f   :  { %2234 = vmatmul.msk.f32.vlgmr.msrb.gmra.mxu3 %vm423_vm9, %v828_v38  ;;  %2242 = vmatmul.msk.f32.vlgmr.msra.gmra.mxu0 %vm298_vm3, %v1084_v40 }
 0x786   :  { %v962_v41 = vpop.permute.xlu1 %961 }
 0x787   :  { %982 = vmatpush.msra.mxu3 %v962_v41 }
 0x789   :  { %1286 = vmatpush.msrb.mxu3 %v2249_v28 }
 0x78b   :  { %1287 = vmatpush.msrb.mxu3 %v2248_v29 }
 0x78d   :  { %1288 = vmatpush.msrb.mxu3 %v2247_v30 }
 0x79a   :  { %v958_v42 = vpop.xlane.xlu2 %957 }
 0x79b   :  { %2396 = vrcp.f32 %v958_v42 }
 0x7a1   :  { %v2397_v44 = vpop.eup %2396 }
 0x7a2   :  { %v960_v45 = vmul.f32 %v2397_v44, %v2387_v8  ;;  %v3204_v8 = vld [vmem:[#allocation13] ss:$0 sm:$0xff] }
 0x7a4   :  { %2240 = vmatmul.msk.f32.vlgmr.msra.gmra.mxu3 %vm423_vm9, %v960_v45  ;;  %v3231_v45 = vld [vmem:[#allocation14] ss:$0 sm:$0xff] }
 0x7e0   :  { %v786_v52 = vpop.f32.mrf.mxu0 }
 0x7f4   :  { %v918_v58 = vpop.f32.mrf.mxu0 }
 0x7fc   :  { %v1112_v60 = vpop.f32.mrf.mxu0 }
 0x7fd   :  { %v1113_v46 = vadd.f32 %v3197_v43, %v1112_v60 }
 0x7ff   :  { %v1118_v61 = vmul.f32 %v1113_v46, %v1113_v46 }
 0x801   :  { %v1120_v62 = vmul.f32 %v1118_v61, %v1113_v46 }
 0x802   :  { %v852_v63 = vpop.f32.mrf.mxu3 }
 0x803   :  { %v1122_v0 = vmul.f32 0.044715, %v1120_v62  ;;  %988 = vrot.lane.b32.xlu0 %v852_v63, %s2762_s25  ;;  %v3246_v63 = vld [vmem:[%s3484_s7 + $0x1] ss:$0 sm:$0xff] }
 0x805   :  { %v1124_v1 = vadd.f32 %v1122_v0, %v1113_v46 }
 0x807   :  { %v1126_v53 = vmul.f32 0.7978846, %v1124_v1 }
 0x809   :  { %2398 = vtanh.f32 %v1126_v53 }
 0x80b   :  { %992 = vrot.lane.b32.xlu0 %v918_v58, %s2765_s22 }
 0x80f   :  { %v2399_v3 = vpop.eup %2398 }
 0x810   :  { %v1130_v4 = vadd.f32 1.0, %v2399_v3 }
 0x812   :  { %v1132_v5 = vmul.f32 0.5, %v1130_v4 }
 0x814   :  { %v1134_v6 = vmul.f32 %v1132_v5, %v1113_v46 }
 0x816   :  { %2244 = vmatmul.msk.f32.vlgmr.msra.gmra.mxu1 %vm1139_vm2, %v1134_v6 }
 0x827   :  { %v984_v7 = vpop.f32.mrf.mxu3 }
 0x828   :  { %996 = vrot.lane.b32.xlu0 %v984_v7, %s2789_s23 }
 0x875   :  { %v989_v51 = vpop.permute.xlu0 %988 }
 0x876   :  { %v999_v14 = vsel %vm423_vm9, %v786_v52, %v989_v51  ;;  %v3233_v52 = vld [vmem:[#allocation16] ss:$0 sm:$0xff] }
 0x87d   :  { %v993_v9 = vpop.permute.xlu0 %992 }
 0x87e   :  { %v1000_v15 = vsel %vm697_vm13, %v999_v14, %v993_v9 }
 0x893   :  { %v1163_v10 = vpop.f32.mrf.mxu1 }
 0x894   :  { %v1164_v11 = vadd.f32 %v3204_v8, %v1163_v10 }
 0x896   :  { %v1169_v12 = vadd.f32 %v1164_v11, %v1084_v40 }
 0x898   :  { %v1171_v13 = vsel %vm298_vm3, %v1169_v12, 0.0 }
 0x899   :  { %1172 = vadd.xlane.f32.xlu1 %v1171_v13 }
 0x89a   :  { %v997_v2 = vpop.permute.xlu0 %996 }
 0x89b   :  { %v1001_v16 = vsel %vm699_vm14, %v1000_v15, %v997_v2 }
 0x89c   :  { %2241 = vmatmul.msk.f32.vlgmr.msra.gmra.mxu2 %vm298_vm3, %v1001_v16 }
 0x90c   :  { %v1173_v17 = vpop.xlane.xlu1 %1172 }
 0x90d   :  { %v1177_v18 = vmul.f32 %v1173_v17, %v2980_v23 }
 0x90f   :  { %v1179_v19 = vsub.f32 %v1169_v12, %v1177_v18 }
 0x911   :  { %v1181_v20 = vmul.f32 %v1179_v19, %v1179_v19 }
 0x913   :  { %v1183_v21 = vsel %vm298_vm3, %v1181_v20, 0.0 }
 0x914   :  { %1184 = vadd.xlane.f32.xlu0 %v1183_v21 }
 0x91f   :  { %v1022_v22 = vpop.f32.mrf.mxu2 }
 0x920   :  { %v1029_v24 = vadd.f32 %v3124_v34, %v1022_v22 }
 0x922   :  { %v1031_v25 = vadd.f32 %v1029_v24, %v3062_v57  ;;  %v2246_v57 = vld [vmem:[%s3517_s6 + $0x20] sm:$0xff] }
 0x923   :  { %1289 = vmatpush.msrb.mxu3 %v2246_v57 }
 0x924   :  { %v1035_v27 = vsel %vm298_vm3, %v1031_v25, 0.0 }
 0x925   :  { %1036 = vadd.xlane.f32.xlu2 %v1035_v27 }
 0x987   :  { %v1185_v34 = vpop.xlane.xlu0 %1184 }
 0x988   :  { %v1189_v31 = vmul.f32 %v1185_v34, %v2980_v23 }
 0x98a   :  { %v1191_v32 = vadd.f32 1e-12, %v1189_v31 }
 0x98c   :  { %2400 = vrsqrt.f32 %v1191_v32  ;;  %vm1199_vm5 = vweird.f32 %v1191_v32 }
 0x992   :  { %v2401_v33 = vpop.eup %2400 }
 0x993   :  { %v1194_v36 = vmul.f32 %v2401_v33, %v1191_v32  ;;  %vm1200_vm4 = vweird.f32 %v2401_v33 }
 0x994   :  { %vm1201_vm6 = vmor %vm1199_vm5, %vm1200_vm4 }
 0x995   :  { %v1195_v37 = vmul.f32 %v2401_v33, %v1194_v36 }
 0x997   :  { %v1196_v38 = vmul.f32 0.5, %v1195_v37 }
 0x998   :  { %v1037_v39 = vpop.xlane.xlu2 %1036 }
 0x999   :  { %v1197_v40 = vsub.f32 1.5, %v1196_v38  ;;  %v1039_v41 = vmul.f32 %v1037_v39, %v2980_v23 }
 0x99b   :  { %v1198_v42 = vmul.f32 %v2401_v33, %v1197_v40  ;;  %v1041_v44 = vsub.f32 %v1031_v25, %v1039_v41 }
 0x99d   :  { %v1202_v47 = vsel %vm1201_vm6, %v2401_v33, %v1198_v42  ;;  %v1043_v49 = vmul.f32 %v1041_v44, %v1041_v44 }
 0x99e   :  { %v1213_v50 = vmul.f32 %v1202_v47, %v1179_v19 }
 0x99f   :  { %v1047_v48 = vsel %vm298_vm3, %v1043_v49, 0.0 }
 0x9a0   :  { %v1218_v54 = vmul.f32 %v3231_v45, %v1213_v50  ;;  %1048 = vadd.xlane.f32.xlu2 %v1047_v48 }
 0x9a2   :  { %v3238_v55 = vadd.f32 %v3233_v52, %v1218_v54 }
 0x9a4   :  { %2269 = vmatmul.msk.f32.vlgmr.msrb.gmra.mxu3 %vm298_vm3, %v3238_v55 }
 0xa13   :  { %v1049_v56 = vpop.xlane.xlu2 %1048 }
 0xa14   :  { %v1051_v58 = vmul.f32 %v1049_v56, %v2980_v23 }
 0xa16   :  { %v1053_v59 = vadd.f32 1e-12, %v1051_v58 }
 0xa18   :  { %2402 = vrsqrt.f32 %v1053_v59  ;;  %vm1070_vm8 = vweird.f32 %v1053_v59 }
 0xa1e   :  { %v2403_v60 = vpop.eup %2402 }
 0xa1f   :  { %v1065_v46 = vmul.f32 %v2403_v60, %v1053_v59  ;;  %vm1071_vm7 = vweird.f32 %v2403_v60 }
 0xa20   :  { %vm1072_vm10 = vmor %vm1070_vm8, %vm1071_vm7 }
 0xa21   :  { %v1066_v61 = vmul.f32 %v2403_v60, %v1065_v46 }
 0xa23   :  { %v1067_v62 = vmul.f32 0.5, %v1066_v61 }
 0xa25   :  { %v1068_v0 = vsub.f32 1.5, %v1067_v62 }
 0xa27   :  { %v1069_v1 = vmul.f32 %v2403_v60, %v1068_v0  ;;  %v1291_v53 = vpop.f32.mrf.mxu3 }
 0xa28   :  { %v3249_v3 = vadd.f32 %v3246_v63, %v1291_v53 }
 0xa29   :  { %v1073_v4 = vsel %vm1072_vm10, %v2403_v60, %v1069_v1 }
 0xa2a   :  { %1298 = vrot.lane.b32.xlu2 %v3249_v3, %s2779_s17  ;;  %v1075_v5 = vmul.f32 %v1073_v4, %v1041_v44 }
 0xa2c   :  { %v1080_v6 = vmul.f32 %v3151_v26, %v1075_v5 }
 0xa2e   :  { %v1085_v7 = vadd.f32 %v3164_v35, %v1080_v6 }
 0xa30   :  { %2243 = vmatmul.msk.f32.gmra.mxu0 %vm298_vm3, %v1085_v7 }
 0xa32   :  { %1364 = vrot.lane.b32.xlu2 %v3249_v3, %s2778_s5 }
 0xa3a   :  { %1496 = vrot.lane.b32.xlu2 %v3249_v3, %s2781_s19 }
 0xa42   :  { %1494 = vrot.lane.b32.xlu2 %v3249_v3, %s2784_s16 }
 0xa4a   :  { %1428 = vrot.lane.b32.xlu2 %v3249_v3, %s2783_s26 }
 0xa84   :  { %v1299_v51 = vpop.permute.xlu2 %1298 }
 0xa85   :  { %2271 = vmatpush.xpose.msk.msrb.mxu2 %vm423_vm9, %v1299_v51 }
 0xa88   :  { %2272 = vmatmul.msk.f32.vlgmr.msrb.gmra.mxu2 %vm423_vm9, %v3249_v3 }
 0xa8c   :  { %v1365_v26 = vpop.permute.xlu2 %1364 }
 0xa8d   :  { %2274 = vmatpush.xpose.msk.msrb.mxu0 %vm423_vm9, %v1365_v26 }
 0xa94   :  { %v1497_v35 = vpop.permute.xlu2 %1496 }
 0xa95   :  { %2280 = vmatpush.xpose.msk.msrb.mxu1 %vm423_vm9, %v1497_v35 }
 0xa9c   :  { %v1495_v19 = vpop.permute.xlu2 %1494 }
 0xaa4   :  { %v1429_v33 = vpop.permute.xlu2 %1428 }
 0xaad   :  { %v1115_v9 = vpop.f32.mrf.mxu0 }
 0xaae   :  { %v1116_v10 = vadd.f32 %v3197_v43, %v1115_v9 }
 0xab0   :  { %v1119_v11 = vmul.f32 %v1116_v10, %v1116_v10 }
 0xab2   :  { %v1121_v12 = vmul.f32 %v1119_v11, %v1116_v10 }
 0xab4   :  { %v1123_v13 = vmul.f32 0.044715, %v1121_v12 }
 0xab6   :  { %v1125_v14 = vadd.f32 %v1123_v13, %v1116_v10 }
 0xab8   :  { %v1127_v15 = vmul.f32 0.7978846, %v1125_v14 }
 0xaba   :  { %2404 = vtanh.f32 %v1127_v15 }
 0xac0   :  { %v2405_v2 = vpop.eup %2404 }
 0xac1   :  { %v1131_v16 = vadd.f32 1.0, %v2405_v2 }
 0xac3   :  { %v1133_v17 = vmul.f32 0.5, %v1131_v16 }
 0xac5   :  { %v1135_v18 = vmul.f32 %v1133_v17, %v1116_v10 }
 0xac7   :  { %2245 = vmatmul.msk.f32.gmra.mxu1 %vm1139_vm2, %v1135_v18 }
 0xacf   :  { %2281 = vmatmul.msk.f32.vlgmr.msrb.gmra.mxu1 %vm423_vm9, %v1495_v19 }
 0xb0b   :  { %v1321_v20 = vpop.f32.mrf.mxu2 }
 0xb0c   :  { %v1324_v21 = vmul.f32 0.35355338, %v1321_v20 }
 0xb0e   :  { %v1325_v22 = vsel %vm423_vm9, %v1324_v21, -inf }
 0xb0f   :  { %1326 = vmax.xlane.f32.xlu1 %v1325_v22 }
 0xb44   :  { %v1166_v43 = vpop.f32.mrf.mxu1 }
 0xb45   :  { %v1167_v24 = vadd.f32 %v3204_v8, %v1166_v43 }
 0xb47   :  { %v1170_v25 = vadd.f32 %v1167_v24, %v1085_v7 }
 0xb49   :  { %v1174_v27 = vsel %vm298_vm3, %v1170_v25, 0.0 }
 0xb4a   :  { %1175 = vadd.xlane.f32.xlu0 %v1174_v27 }
 0xb4c   :  { %v1519_v28 = vpop.f32.mrf.mxu1 }
 0xb4d   :  { %v1522_v29 = vmul.f32 0.35355338, %v1519_v28 }
 0xb4f   :  { %v1523_v30 = vsel %vm423_vm9, %v1522_v29, -inf }
 0xb50   :  { %1524 = vmax.xlane.f32.xlu2 %v1523_v30 }
 0xb5e   :  { %1362 = vrot.lane.b32.xlu0 %v3249_v3, %s2780_s0 }
 0xb66   :  { %1430 = vrot.lane.b32.xlu0 %v3249_v3, %s2782_s21 }
 0xb82   :  { %v1327_v57 = vpop.xlane.xlu1 %1326 }
 0xb83   :  { %v1328_v34 = vsub.f32 %v1324_v21, %v1327_v57 }
 0xb85   :  { %v1329_v31 = vmul.f32 1.442695, %v1328_v34 }
 0xb87   :  { %2406 = vpow2.f32 %v1329_v31 }
 0xb8d   :  { %v2407_v8 = vpop.eup %2406 }
 0xb8e   :  { %v1331_v32 = vsel %vm423_vm9, %v2407_v8, 0.0 }
 0xb8f   :  { %1332 = vadd.xlane.f32.xlu1 %v1331_v32 }
 0xba8   :  { %1336 = vrot.lane.b32.xlu1 %v3249_v3, %s2785_s2 }
 0xbbd   :  { %v1176_v36 = vpop.xlane.xlu0 %1175 }
 0xbbe   :  { %v1178_v37 = vmul.f32 %v1176_v36, %v2980_v23 }
 0xbc0   :  { %v1180_v38 = vsub.f32 %v1170_v25, %v1178_v37 }
 0xbc2   :  { %v1182_v39 = vmul.f32 %v1180_v38, %v1180_v38 }
 0xbc3   :  { %v1525_v40 = vpop.xlane.xlu2 %1524 }
 0xbc4   :  { %v1526_v41 = vsub.f32 %v1522_v29, %v1525_v40  ;;  %v1186_v42 = vsel %vm298_vm3, %v1182_v39, 0.0 }
 0xbc5   :  { %1187 = vadd.xlane.f32.xlu0 %v1186_v42 }
 0xbc6   :  { %v1527_v44 = vmul.f32 1.442695, %v1526_v41 }
 0xbc8   :  { %2408 = vpow2.f32 %v1527_v44 }
 0xbce   :  { %v3285_v47 = vpop.eup %2408 }
 0xbcf   :  { %v1529_v49 = vsel %vm423_vm9, %v3285_v47, 0.0 }
 0xbd0   :  { %1530 = vadd.xlane.f32.xlu2 %v1529_v49  ;;  %v1363_v50 = vpop.permute.xlu0 %1362 }
 0xbd1   :  { %2275 = vmatmul.msk.f32.vlgmr.msrb.gmra.mxu0 %vm423_vm9, %v1363_v50 }
 0xbd8   :  { %v1431_v59 = vpop.permute.xlu0 %1430 }
 0xc02   :  { %v1333_v48 = vpop.xlane.xlu1 %1332 }
 0xc03   :  { %2410 = vrcp.f32 %v1333_v48 }
 0xc09   :  { %v2411_v54 = vpop.eup %2410 }
 0xc0a   :  { %v1335_v56 = vmul.f32 %v2411_v54, %v2407_v8 }
 0xc1a   :  { %v1337_v58 = vpop.permute.xlu1 %1336 }
 0xc1b   :  { %1357 = vmatpush.msra.mxu2 %v1337_v58 }
 0xc1c   :  { %2273 = vmatmul.msk.f32.vlgmr.msra.gmra.mxu2 %vm423_vm9, %v1335_v56 }
 0xc1d   :  { %2277 = vmatpush.xpose.msk.msrb.mxu2 %vm423_vm9, %v1431_v59 }
 0xc24   :  { %2278 = vmatmul.msk.f32.vlgmr.msrb.gmra.mxu2 %vm423_vm9, %v1429_v33 }
 0xc38   :  { %v1188_v60 = vpop.xlane.xlu0 %1187 }
 0xc39   :  { %v1190_v46 = vmul.f32 %v1188_v60, %v2980_v23 }
 0xc3b   :  { %v1192_v61 = vadd.f32 1e-12, %v1190_v46 }
 0xc3d   :  { %2412 = vrsqrt.f32 %v1192_v61  ;;  %vm1209_vm12 = vweird.f32 %v1192_v61 }
 0xc43   :  { %v2413_v62 = vpop.eup %2412  ;;  %v1531_v27 = vpop.xlane.xlu2 %1530 }
 0xc44   :  { %v1204_v0 = vmul.f32 %v2413_v62, %v1192_v61  ;;  %vm1210_vm11 = vweird.f32 %v2413_v62 }
 0xc45   :  { %vm1211_vm15 = vmor %vm1209_vm12, %vm1210_vm11  ;;  %vm2101_vm11 = vcmask 1040384  }
 0xc46   :  { %v1205_v1 = vmul.f32 %v2413_v62, %v1204_v0 }
 0xc48   :  { %v1206_v53 = vmul.f32 0.5, %v1205_v1 }
 0xc4a   :  { %v1207_v4 = vsub.f32 1.5, %v1206_v53 }
 0xc4c   :  { %v1208_v5 = vmul.f32 %v2413_v62, %v1207_v4 }
 0xc4e   :  { %v1212_v6 = vsel %vm1211_vm15, %v2413_v62, %v1208_v5  ;;  %v1387_v7 = vpop.f32.mrf.mxu0 }
 0xc4f   :  { %v1390_v51 = vmul.f32 0.35355338, %v1387_v7  ;;  %v1214_v26 = vmul.f32 %v1212_v6, %v1180_v38 }
 0xc51   :  { %v1391_v35 = vsel %vm423_vm9, %v1390_v51, -inf  ;;  %v1219_v9 = vmul.f32 %v3231_v45, %v1214_v26 }
 0xc52   :  { %1392 = vmax.xlane.f32.xlu1 %v1391_v35 }
 0xc53   :  { %v3297_v10 = vadd.f32 %v3233_v52, %v1219_v9 }
 0xc55   :  { %2270 = vmatmul.msk.f32.gmra.mxu3 %vm298_vm3, %v3297_v10 }
 0xc9f   :  { %v3301_v11 = vpop.f32.mrf.mxu2 }
 0xca7   :  { %v1453_v12 = vpop.f32.mrf.mxu2 }
 0xca8   :  { %v1456_v13 = vmul.f32 0.35355338, %v1453_v12 }
 0xcaa   :  { %v1457_v14 = vsel %vm423_vm9, %v1456_v13, -inf }
 0xcab   :  { %1458 = vmax.xlane.f32.xlu0 %v1457_v14 }
 0xcbf   :  { %1402 = vrot.lane.b32.xlu0 %v3249_v3, %s2787_s27 }
 0xcc5   :  { %v1393_v15 = vpop.xlane.xlu1 %1392 }
 0xcc6   :  { %v1394_v2 = vsub.f32 %v1390_v51, %v1393_v15 }
 0xcc8   :  { %v1395_v45 = vmul.f32 1.442695, %v1394_v2  ;;  %v2254_v2 = vld [vmem:[%s3485_s8 + $0x38] sm:$0xff] }
 0xcc9   :  { %1590 = vmatpush.msra.mxu2 %v2254_v2 }
 0xcca   :  { %2414 = vpow2.f32 %v1395_v45  ;;  %v2253_v45 = vld [vmem:[%s3485_s8 + $0x30] sm:$0xff] }
 0xccb   :  { %1591 = vmatpush.msra.mxu2 %v2253_v45 }
 0xcd0   :  { %v2415_v16 = vpop.eup %2414 }
 0xcd1   :  { %v1397_v52 = vsel %vm423_vm9, %v2415_v16, 0.0 }
 0xcd2   :  { %1398 = vadd.xlane.f32.xlu1 %v1397_v52  ;;  %v2251_v52 = vld [vmem:[%s3485_s8 + $0x20] sm:$0xff] }
 0xcd8   :  { %v1294_v17 = vpop.f32.mrf.mxu3 }
 0xcd9   :  { %v3308_v18 = vadd.f32 %v3246_v63, %v1294_v17 }
 0xcdb   :  { %1663 = vrot.lane.b32.xlu0 %v3308_v18, %s2780_s0  ;;  %1665 = vrot.lane.b32.xlu2 %v3308_v18, %s2778_s5 }
 0xce3   :  { %1797 = vrot.lane.b32.xlu0 %v3308_v18, %s2781_s19  ;;  %1599 = vrot.lane.b32.xlu2 %v3308_v18, %s2779_s17 }
 0xceb   :  { %1534 = vrot.lane.b32.xlu1 %v3249_v3, %s2786_s13  ;;  %1731 = vrot.lane.b32.xlu0 %v3308_v18, %s2782_s21 }
 0xcf3   :  { %1468 = vrot.lane.b32.xlu1 %v3249_v3, %s2788_s29 }
 0xcfb   :  { %1795 = vrot.lane.b32.xlu1 %v3308_v18, %s2784_s16 }
 0xd1e   :  { %v1459_v63 = vpop.xlane.xlu0 %1458 }
 0xd1f   :  { %v1460_v19 = vsub.f32 %v1456_v13, %v1459_v63 }
 0xd21   :  { %v1461_v20 = vmul.f32 1.442695, %v1460_v19 }
 0xd23   :  { %2416 = vpow2.f32 %v1461_v20 }
 0xd29   :  { %v2417_v21 = vpop.eup %2416 }
 0xd2a   :  { %v1463_v22 = vsel %vm423_vm9, %v2417_v21, 0.0 }
 0xd2b   :  { %1464 = vadd.xlane.f32.xlu2 %v1463_v22 }
 0xd31   :  { %v1403_v43 = vpop.permute.xlu0 %1402 }
 0xd32   :  { %1423 = vmatpush.msra.mxu3 %v1403_v43 }
 0xd35   :  { %v1666_v30 = vpop.permute.xlu2 %1665 }
 0xd3d   :  { %v1600_v32 = vpop.permute.xlu2 %1599 }
 0xd43   :  { %1729 = vrot.lane.b32.xlu2 %v3308_v18, %s2783_s26 }
 0xd45   :  { %v1399_v24 = vpop.xlane.xlu1 %1398 }
 0xd46   :  { %2418 = vrcp.f32 %v1399_v24 }
 0xd47   :  { %2420 = vrcp.f32 %v1531_v27 }
 0xd4c   :  { %v2419_v25 = vpop.eup %2418 }
 0xd4d   :  { %v1401_v3 = vmul.f32 %v2419_v25, %v2415_v16  ;;  %v1664_v28 = vpop.permute.xlu0 %1663  ;;  %v2421_v29 = vpop.eup %2420  ;;  %v2252_v16 = vld [vmem:[%s3485_s8 + $0x28] sm:$0xff] }
 0xd4e   :  { %v1533_v57 = vmul.f32 %v2421_v29, %v3285_v47  ;;  %1592 = vmatpush.msra.mxu2 %v2252_v16 }
 0xd4f   :  { %2276 = vmatmul.msk.f32.vlgmr.msra.gmra.mxu3 %vm423_vm9, %v1401_v3 }
 0xd50   :  { %1593 = vmatpush.msra.mxu2 %v2251_v52 }
 0xd55   :  { %v1798_v31 = vpop.permute.xlu0 %1797 }
 0xd5d   :  { %v1535_v34 = vpop.permute.xlu1 %1534  ;;  %v1732_v39 = vpop.permute.xlu0 %1731 }
 0xd5e   :  { %1555 = vmatpush.msrb.mxu3 %v1535_v34 }
 0xd5f   :  { %2282 = vmatmul.msk.f32.vlgmr.msrb.gmra.mxu3 %vm423_vm9, %v1533_v57 }
 0xd60   :  { %2287 = vmatpush.xpose.msk.msra.mxu3 %vm423_vm9, %v1666_v30 }
 0xd64   :  { %2293 = vmatpush.xpose.msk.msrb.mxu3 %vm423_vm9, %v1798_v31 }
 0xd65   :  { %v1469_v8 = vpop.permute.xlu1 %1468 }
 0xd66   :  { %1489 = vmatpush.msra.mxu0 %v1469_v8 }
 0xd67   :  { %2288 = vmatmul.msk.f32.vlgmr.msra.gmra.mxu3 %vm423_vm9, %v1664_v28 }
 0xd68   :  { %2284 = vmatpush.xpose.msk.msrb.mxu0 %vm423_vm9, %v1600_v32 }
 0xd6d   :  { %v1796_v33 = vpop.permute.xlu1 %1795 }
 0xd6f   :  { %2294 = vmatmul.msk.f32.vlgmr.msrb.gmra.mxu3 %vm423_vm9, %v1796_v33 }
 0xd9e   :  { %v1465_v36 = vpop.xlane.xlu2 %1464 }
 0xd9f   :  { %2422 = vrcp.f32 %v1465_v36 }
 0xda5   :  { %v2423_v37 = vpop.eup %2422 }
 0xda6   :  { %v1467_v38 = vmul.f32 %v2423_v37, %v2417_v21  ;;  %v1730_v40 = vpop.permute.xlu2 %1729 }
 0xda8   :  { %2279 = vmatmul.msk.f32.vlgmr.msra.gmra.mxu0 %vm423_vm9, %v1467_v38 }
 0xda9   :  { %2290 = vmatpush.xpose.msk.msra.mxu0 %vm423_vm9, %v1732_v39 }
 0xdb0   :  { %2285 = vmatmul.msk.f32.vlgmr.msrb.gmra.mxu0 %vm423_vm9, %v3308_v18 }
 0xdb1   :  { %1891 = vmatpush.msrb.mxu0 %v2254_v2 }
 0xdb3   :  { %1892 = vmatpush.msrb.mxu0 %v2253_v45 }
 0xdb5   :  { %1893 = vmatpush.msrb.mxu0 %v2252_v16 }
 0xdb7   :  { %1894 = vmatpush.msrb.mxu0 %v2251_v52 }
 0xdb8   :  { %2291 = vmatmul.msk.f32.vlgmr.msra.gmra.mxu0 %vm423_vm9, %v1730_v40 }
 0xdd2   :  { %v1425_v41 = vpop.f32.mrf.mxu3 }
 0xde2   :  { %v1557_v42 = vpop.f32.mrf.mxu3 }
 0xdea   :  { %v1688_v44 = vpop.f32.mrf.mxu3 }
 0xdeb   :  { %v1691_v47 = vmul.f32 0.35355338, %v1688_v44 }
 0xded   :  { %v1692_v49 = vsel %vm423_vm9, %v1691_v47, -inf }
 0xdee   :  { %1693 = vmax.xlane.f32.xlu1 %v1692_v49 }
 0xdf2   :  { %v1820_v50 = vpop.f32.mrf.mxu3 }
 0xdf3   :  { %v1823_v48 = vmul.f32 0.35355338, %v1820_v50  ;;  %v2349_v50 = vld [vmem:[%s3486_s9 + $0x1] ss:$0 sm:$0xff] }
 0xdf5   :  { %v1824_v54 = vsel %vm423_vm9, %v1823_v48, -inf }
 0xdf6   :  { %1825 = vmax.xlane.f32.xlu2 %v1824_v54 }
 0xe25   :  { %v1491_v56 = vpop.f32.mrf.mxu0 }
 0xe26   :  { %1565 = vrot.lane.b32.xlu2 %v1491_v56, %s2765_s22 }
 0xe2d   :  { %v1622_v58 = vpop.f32.mrf.mxu0 }
 0xe2e   :  { %v1625_v59 = vmul.f32 0.35355338, %v1622_v58 }
 0xe30   :  { %v1626_v60 = vsel %vm423_vm9, %v1625_v59, -inf }
 0xe31   :  { %1627 = vmax.xlane.f32.xlu0 %v1626_v60 }
 0xe35   :  { %v1754_v9 = vpop.f32.mrf.mxu0 }
 0xe36   :  { %v1757_v12 = vmul.f32 0.35355338, %v1754_v9  ;;  %v2258_v9 = vld [vmem:[%s3489_s12 + $0x28] sm:$0xff] }
 0xe38   :  { %v1758_v14 = vsel %vm423_vm9, %v1757_v12, -inf }
 0xe45   :  { %1561 = vrot.lane.b32.xlu0 %v1425_v41, %s2762_s25 }
 0xe61   :  { %v1694_v46 = vpop.xlane.xlu1 %1693 }
 0xe62   :  { %v1695_v61 = vsub.f32 %v1691_v47, %v1694_v46 }
 0xe64   :  { %v1696_v62 = vmul.f32 1.442695, %v1695_v61 }
 0xe66   :  { %2424 = vpow2.f32 %v1696_v62 }
 0xe69   :  { %v1826_v0 = vpop.xlane.xlu2 %1825 }
 0xe6a   :  { %v1827_v1 = vsub.f32 %v1823_v48, %v1826_v0 }
 0xe6c   :  { %v2425_v53 = vpop.eup %2424  ;;  %v1828_v4 = vmul.f32 1.442695, %v1827_v1 }
 0xe6d   :  { %v1698_v5 = vsel %vm423_vm9, %v2425_v53, 0.0 }
 0xe6e   :  { %2426 = vpow2.f32 %v1828_v4  ;;  %1699 = vadd.xlane.f32.xlu1 %v1698_v5 }
 0xe74   :  { %v3348_v6 = vpop.eup %2426 }
 0xe75   :  { %v1830_v7 = vsel %vm423_vm9, %v3348_v6, 0.0 }
 0xe76   :  { %1831 = vadd.xlane.f32.xlu2 %v1830_v7 }
 0xe80   :  { %v1566_v19 = vpop.permute.xlu2 %1565 }
 0xe87   :  { %1569 = vrot.lane.b32.xlu1 %v1557_v42, %s2789_s23 }
 0xe8e   :  { %1835 = vrot.lane.b32.xlu2 %v3308_v18, %s2786_s13 }
 0xea4   :  { %v1628_v51 = vpop.xlane.xlu0 %1627 }
 0xea5   :  { %v1629_v26 = vsub.f32 %v1625_v59, %v1628_v51 }
 0xea7   :  { %v1630_v35 = vmul.f32 1.442695, %v1629_v26  ;;  %v2260_v26 = vld [vmem:[%s3489_s12 + $0x38] sm:$0xff] }
 0xea9   :  { %2428 = vpow2.f32 %v1630_v35  ;;  %v2259_v35 = vld [vmem:[%s3489_s12 + $0x30] sm:$0xff] }
 0xeaf   :  { %v2429_v13 = vpop.eup %2428 }
 0xeb0   :  { %v1632_v15 = vsel %vm423_vm9, %v2429_v13, 0.0 }
 0xeb1   :  { %1759 = vmax.xlane.f32.xlu1 %v1758_v14  ;;  %1633 = vadd.xlane.f32.xlu0 %v1632_v15 }
 0xec5   :  { %1637 = vrot.lane.b32.xlu0 %v3308_v18, %s2785_s2 }
 0xeca   :  { %1703 = vrot.lane.b32.xlu1 %v3308_v18, %s2787_s27 }
 0xecd   :  { %1769 = vrot.lane.b32.xlu0 %v3308_v18, %s2788_s29  ;;  %v1562_v18 = vpop.permute.xlu0 %1561 }
 0xece   :  { %v1572_v63 = vsel %vm423_vm9, %v3301_v11, %v1562_v18  ;;  %v2350_v18 = vld [vmem:[%s3487_s10 + $0x1] ss:$0 sm:$0xff] }
 0xecf   :  { %v1573_v21 = vsel %vm697_vm13, %v1572_v63, %v1566_v19 }
 0xee1   :  { %v1700_v17 = vpop.xlane.xlu1 %1699 }
 0xee9   :  { %v1832_v29 = vpop.xlane.xlu2 %1831 }
 0xef1   :  { %v1836_v32 = vpop.permute.xlu2 %1835 }
 0xef9   :  { %v1570_v20 = vpop.permute.xlu1 %1569 }
 0xefa   :  { %v1574_v22 = vsel %vm699_vm14, %v1573_v21, %v1570_v20  ;;  %v2351_v20 = vld [vmem:[#allocation10 + $0x1] ss:$0 sm:$0xff] }
 0xefb   :  { %2283 = vmatmul.msk.f32.vlgmr.msra.gmra.mxu2 %vm298_vm3, %v1574_v22 }
 0xf24   :  { %v1760_v43 = vpop.xlane.xlu1 %1759  ;;  %v1634_v3 = vpop.xlane.xlu0 %1633 }
 0xf25   :  { %v1761_v24 = vsub.f32 %v1757_v12, %v1760_v43 }
 0xf27   :  { %v1762_v25 = vmul.f32 1.442695, %v1761_v24 }
 0xf29   :  { %2430 = vpow2.f32 %v1762_v25 }
 0xf2a   :  { %2432 = vrcp.f32 %v1634_v3 }
 0xf2b   :  { %2434 = vrcp.f32 %v1700_v17 }
 0xf2c   :  { %2436 = vrcp.f32 %v1832_v29  ;;  %v2266_v29 = vld [vmem:[%s3491_s14 + $0x68] sm:$0xff] }
 0xf2f   :  { %v2431_v27 = vpop.eup %2430 }
 0xf30   :  { %v1764_v28 = vsel %vm423_vm9, %v2431_v27, 0.0  ;;  %v2433_v11 = vpop.eup %2432 }
 0xf31   :  { %1765 = vadd.xlane.f32.xlu1 %v1764_v28  ;;  %v1636_v30 = vmul.f32 %v2433_v11, %v2429_v13  ;;  %v2435_v34 = vpop.eup %2434  ;;  %v2268_v28 = vld [vmem:[%s3491_s14 + $0x78] sm:$0xff]  ;;  %v2267_v11 = vld [vmem:[%s3491_s14 + $0x70] sm:$0xff] }
 0xf32   :  { %v1702_v31 = vmul.f32 %v2435_v34, %v2425_v53  ;;  %v2437_v36 = vpop.eup %2436  ;;  %2027 = vmatpush.msra.mxu3 %v2268_v28  ;;  %v2263_v34 = vld [vmem:[%s3491_s14 + $0x50] sm:$0xff] }
 0xf33   :  { %v1834_v37 = vmul.f32 %v2437_v36, %v3348_v6 }
 0xf34   :  { %2028 = vmatpush.msra.mxu3 %v2267_v11 }
 0xf36   :  { %2029 = vmatpush.msra.mxu3 %v2266_v29 }
 0xf37   :  { %v1638_v57 = vpop.permute.xlu0 %1637 }
 0xf38   :  { %1658 = vmatpush.msra.mxu1 %v1638_v57  ;;  %v2264_v57 = vld [vmem:[%s3491_s14 + $0x58] sm:$0xff] }
 0xf39   :  { %2286 = vmatmul.msk.f32.vlgmr.msra.gmra.mxu1 %vm423_vm9, %v1636_v30  ;;  %v2265_v30 = vld [vmem:[%s3491_s14 + $0x60] sm:$0xff] }
 0xf3a   :  { %2030 = vmatpush.msra.mxu3 %v2265_v30  ;;  %v2106_v30 = vld [vmem:[#allocation17 + $0x18] sm:$0xff] }
 0xf3c   :  { %v1704_v8 = vpop.permute.xlu1 %1703  ;;  %2031 = vmatpush.msra.mxu3 %v2264_v57  ;;  %v2105_v57 = vld [vmem:[#allocation17 + $0x10] sm:$0xff] }
 0xf3d   :  { %1724 = vmatpush.msrb.mxu2 %v1704_v8  ;;  %v2261_v8 = vld [vmem:[%s3491_s14 + $0x40] sm:$0xff] }
 0xf3e   :  { %2289 = vmatmul.msk.f32.vlgmr.msrb.gmra.mxu2 %vm423_vm9, %v1702_v31  ;;  %2032 = vmatpush.msra.mxu3 %v2263_v34  ;;  %v2262_v31 = vld [vmem:[%s3491_s14 + $0x48] sm:$0xff] }
 0xf3f   :  { %1856 = vmatpush.msra.mxu2 %v1836_v32  ;;  %v1770_v33 = vpop.permute.xlu0 %1769  ;;  %v2352_v32 = vld [vmem:[#allocation11 + $0x1] ss:$0 sm:$0xff] }
 0xf40   :  { %1790 = vmatpush.msrb.mxu1 %v1770_v33  ;;  %2033 = vmatpush.msra.mxu3 %v2262_v31  ;;  %v2104_v31 = vld [vmem:[#allocation17 + $0x8] sm:$0xff] }
 0xf41   :  { %2126 = vmatpush.msrb.mxu2 %v2106_v30 }
 0xf42   :  { %1981 = vmatpush.msra.mxu1 %v2260_v26  ;;  %2034 = vmatpush.msra.mxu3 %v2261_v8  ;;  %v2103_v8 = vld [vmem:[#allocation17] sm:$0xff] }
 0xf43   :  { %2127 = vmatpush.msrb.mxu2 %v2105_v57 }
 0xf44   :  { %1982 = vmatpush.msra.mxu1 %v2259_v35 }
 0xf45   :  { %2128 = vmatpush.msrb.mxu2 %v2104_v31 }
 0xf46   :  { %2295 = vmatmul.msk.f32.vlgmr.msra.gmra.mxu2 %vm423_vm9, %v1834_v37  ;;  %1983 = vmatpush.msra.mxu1 %v2258_v9 }
 0xf47   :  { %2129 = vmatpush.msrb.mxu2 %v2103_v8 }
 0xf7e   :  { %v1595_v41 = vpop.f32.mrf.mxu2 }
 0xf7f   :  { %v1902_v48 = vadd.f32 %v2349_v50, %v1595_v41 }
 0xf81   :  { %v1904_v54 = vadd.f32 %v1902_v48, %v3238_v55 }
 0xf83   :  { %v1906_v56 = vsel %vm298_vm3, %v1904_v54, 0.0 }
 0xfa4   :  { %v1766_v38 = vpop.xlane.xlu1 %1765 }
 0xfa5   :  { %2438 = vrcp.f32 %v1766_v38 }
 0xfab   :  { %v2439_v39 = vpop.eup %2438 }
 0xfac   :  { %v1768_v40 = vmul.f32 %v2439_v39, %v2431_v27 }
 0xfae   :  { %2292 = vmatmul.msk.f32.vlgmr.msrb.gmra.mxu1 %vm423_vm9, %v1768_v40 }
 0xfb6   :  { %v1660_v47 = vpop.f32.mrf.mxu1 }
 0xfc1   :  { %v1726_v42 = vpop.f32.mrf.mxu2 }
 0xfc2   :  { %1862 = vrot.lane.b32.xlu1 %v1726_v42, %s2762_s25 }
 0xfc9   :  { %v1858_v44 = vpop.f32.mrf.mxu2 }
 0xfca   :  { %1870 = vrot.lane.b32.xlu2 %v1858_v44, %s2789_s23  ;;  %s3518_s23 = sld [smem:[#allocation35_spill]] }
0x1024   :  { %v1871_v46 = vpop.permute.xlu2 %1870 }
0x102b   :  { %v1792_v49 = vpop.f32.mrf.mxu1 }
0x102c   :  { %1866 = vrot.lane.b32.xlu0 %v1792_v49, %s2765_s22 }
0x1034   :  { %v1863_v58 = vpop.permute.xlu1 %1862 }
0x1035   :  { %v1873_v59 = vsel %vm423_vm9, %v1660_v47, %v1863_v58 }
0x1056   :  { %1907 = vadd.xlane.f32.xlu0 %v1906_v56 }
0x109e   :  { %v1867_v60 = vpop.permute.xlu0 %1866 }
0x109f   :  { %v1874_v61 = vsel %vm697_vm13, %v1873_v59, %v1867_v60 }
0x10a0   :  { %v1875_v62 = vsel %vm699_vm14, %v1874_v61, %v1871_v46 }
0x10a1   :  { %2296 = vmatmul.msk.f32.vlgmr.msrb.gmra.mxu0 %vm298_vm3, %v1875_v62 }
0x10c9   :  { %v1908_v0 = vpop.xlane.xlu0 %1907 }
0x10ca   :  { %v1912_v1 = vmul.f32 %v1908_v0, %v2980_v23 }
0x10cc   :  { %v1914_v53 = vsub.f32 %v1904_v54, %v1912_v1 }
0x10ce   :  { %v1916_v4 = vmul.f32 %v1914_v53, %v1914_v53 }
0x10d0   :  { %v1918_v55 = vsel %vm298_vm3, %v1916_v4, 0.0  ;;  %v2353_v4 = vld [vmem:[#allocation13 + $0x1] ss:$0 sm:$0xff] }
0x10d1   :  { %1919 = vadd.xlane.f32.xlu1 %v1918_v55 }
0x111e   :  { %v1896_v5 = vpop.f32.mrf.mxu0 }
0x111f   :  { %v1903_v6 = vadd.f32 %v2349_v50, %v1896_v5 }
0x1121   :  { %v1905_v7 = vadd.f32 %v1903_v6, %v3297_v10  ;;  %v2257_v10 = vld [vmem:[%s3489_s12 + $0x20] sm:$0xff]  ;;  %s3519_s12 = sld [smem:[#allocation36_spill]] }
0x1122   :  { %1984 = vmatpush.msra.mxu1 %v2257_v10 }
0x1123   :  { %v1909_v51 = vsel %vm298_vm3, %v1905_v7, 0.0 }
0x1124   :  { %1910 = vadd.xlane.f32.xlu2 %v1909_v51 }
0x1127   :  { %s2194_s18 = sshll.u32 %s3519_s12, 4  ;;  %s2195_s18 = int_to_ptr.hbm [resolvable:$true] %s2194_s18 }
0x1144   :  { %v1920_v12 = vpop.xlane.xlu1 %1919 }
0x1145   :  { %v1924_v13 = vmul.f32 %v1920_v12, %v2980_v23 }
0x1147   :  { %v1926_v14 = vadd.f32 1e-12, %v1924_v13 }
0x1149   :  { %2440 = vrsqrt.f32 %v1926_v14  ;;  %vm1934_vm13 = vweird.f32 %v1926_v14 }
0x114f   :  { %v2441_v15 = vpop.eup %2440 }
0x1150   :  { %v1929_v2 = vmul.f32 %v2441_v15, %v1926_v14  ;;  %vm1935_vm9 = vweird.f32 %v2441_v15 }
0x1151   :  { %vm1936_vm14 = vmor %vm1934_vm13, %vm1935_vm9  ;;  %vm2185_vm9 = vcmask 107520  }
0x1152   :  { %v1930_v45 = vmul.f32 %v2441_v15, %v1929_v2 }
0x1154   :  { %v1931_v16 = vmul.f32 0.5, %v1930_v45 }
0x1156   :  { %v1932_v52 = vsub.f32 1.5, %v1931_v16 }
0x1158   :  { %v1933_v17 = vmul.f32 %v2441_v15, %v1932_v52 }
0x115a   :  { %v1937_v63 = vsel %vm1936_vm14, %v2441_v15, %v1933_v17 }
0x115b   :  { %v1948_v19 = vmul.f32 %v1937_v63, %v1914_v53 }
0x115d   :  { %v1953_v21 = vmul.f32 %v2350_v18, %v1948_v19 }
0x115f   :  { %v1958_v22 = vadd.f32 %v2351_v20, %v1953_v21 }
0x1161   :  { %2297 = vmatmul.msk.f32.vlgmr.msra.gmra.mxu1 %vm298_vm3, %v1958_v22 }
0x1197   :  { %v1911_v43 = vpop.xlane.xlu2 %1910 }
0x1198   :  { %v1913_v24 = vmul.f32 %v1911_v43, %v2980_v23 }
0x119a   :  { %v1915_v25 = vsub.f32 %v1905_v7, %v1913_v24 }
0x119c   :  { %v1917_v3 = vmul.f32 %v1915_v25, %v1915_v25 }
0x119e   :  { %v1921_v27 = vsel %vm298_vm3, %v1917_v3, 0.0 }
0x119f   :  { %1922 = vadd.xlane.f32.xlu0 %v1921_v27 }
0x11de   :  { %v1986_v33 = vpop.f32.mrf.mxu1 }
0x11df   :  { %v1987_v36 = vadd.f32 %v2352_v32, %v1986_v33 }
0x11e1   :  { %v1992_v37 = vmul.f32 %v1987_v36, %v1987_v36 }
0x11e3   :  { %v1994_v38 = vmul.f32 %v1992_v37, %v1987_v36 }
0x11e5   :  { %v1996_v39 = vmul.f32 0.044715, %v1994_v38 }
0x11e7   :  { %v1998_v40 = vadd.f32 %v1996_v39, %v1987_v36 }
0x11e9   :  { %v2000_v41 = vmul.f32 0.7978846, %v1998_v40 }
0x11eb   :  { %2442 = vtanh.f32 %v2000_v41 }
0x11f1   :  { %v2443_v42 = vpop.eup %2442 }
0x11f2   :  { %v2004_v44 = vadd.f32 1.0, %v2443_v42 }
0x11f4   :  { %v2006_v47 = vmul.f32 0.5, %v2004_v44 }
0x11f6   :  { %v2008_v49 = vmul.f32 %v2006_v47, %v1987_v36 }
0x11f8   :  { %2299 = vmatmul.msk.f32.vlgmr.msra.gmra.mxu3 %vm1139_vm2, %v2008_v49 }
0x1212   :  { %v1923_v50 = vpop.xlane.xlu0 %1922 }
0x1213   :  { %v1925_v48 = vmul.f32 %v1923_v50, %v2980_v23 }
0x1215   :  { %v1927_v54 = vadd.f32 1e-12, %v1925_v48 }
0x1217   :  { %2444 = vrsqrt.f32 %v1927_v54  ;;  %vm1944_vm1 = vweird.f32 %v1927_v54 }
0x121d   :  { %v2445_v56 = vpop.eup %2444 }
0x121e   :  { %v1939_v58 = vmul.f32 %v2445_v56, %v1927_v54  ;;  %vm1945_vm0 = vweird.f32 %v2445_v56 }
0x121f   :  { %vm1946_vm4 = vmor %vm1944_vm1, %vm1945_vm0 }
0x1220   :  { %v1940_v59 = vmul.f32 %v2445_v56, %v1939_v58 }
0x1222   :  { %v1941_v60 = vmul.f32 0.5, %v1940_v59 }
0x1224   :  { %v1942_v46 = vsub.f32 1.5, %v1941_v60 }
0x1226   :  { %v1943_v61 = vmul.f32 %v2445_v56, %v1942_v46 }
0x1228   :  { %v1947_v62 = vsel %vm1946_vm4, %v2445_v56, %v1943_v61  ;;  %v2354_v56 = vld [vmem:[#allocation14 + $0x1] ss:$0 sm:$0xff]  ;;  %v2355_v61 = vld [vmem:[#allocation16 + $0x1] ss:$0 sm:$0xff] }
0x1229   :  { %v1949_v0 = vmul.f32 %v1947_v62, %v1915_v25 }
0x122b   :  { %v1954_v1 = vmul.f32 %v2350_v18, %v1949_v0 }
0x122d   :  { %v1959_v53 = vadd.f32 %v2351_v20, %v1954_v1 }
0x122f   :  { %2298 = vmatmul.msk.f32.gmra.mxu1 %vm298_vm3, %v1959_v53 }
0x127b   :  { %v2036_v55 = vpop.f32.mrf.mxu3 }
0x127c   :  { %v2037_v5 = vadd.f32 %v2353_v4, %v2036_v55  ;;  %v2137_v55 = vld [vmem:[%s3497_s20 + $0x10] sm:$0xff] }
0x127e   :  { %v2042_v6 = vadd.f32 %v2037_v5, %v1958_v22  ;;  %v2136_v5 = vld [vmem:[%s3497_s20 + $0x8] sm:$0xff] }
0x1280   :  { %v2044_v7 = vsel %vm298_vm3, %v2042_v6, 0.0 }
0x1281   :  { %2045 = vadd.xlane.f32.xlu0 %v2044_v7  ;;  %v2356_v7 = vld [vmem:[%s3518_s23] ss:$0 sm:$0xff] }
0x12ac   :  { %v1989_v51 = vpop.f32.mrf.mxu1 }
0x12ad   :  { %v1990_v26 = vadd.f32 %v2352_v32, %v1989_v51 }
0x12af   :  { %v1993_v35 = vmul.f32 %v1990_v26, %v1990_v26 }
0x12b1   :  { %v1995_v9 = vmul.f32 %v1993_v35, %v1990_v26 }
0x12b3   :  { %v1997_v10 = vmul.f32 0.044715, %v1995_v9  ;;  %v2357_v9 = vld [vmem:[#allocation19] ss:$0 sm:$0xff] }
0x12b5   :  { %v1999_v12 = vadd.f32 %v1997_v10, %v1990_v26 }
0x12b7   :  { %v2001_v13 = vmul.f32 0.7978846, %v1999_v12 }
0x12b9   :  { %2446 = vtanh.f32 %v2001_v13 }
0x12bf   :  { %v2447_v14 = vpop.eup %2446 }
0x12c0   :  { %v2005_v15 = vadd.f32 1.0, %v2447_v14 }
0x12c2   :  { %v2007_v2 = vmul.f32 0.5, %v2005_v15 }
0x12c4   :  { %v2009_v45 = vmul.f32 %v2007_v2, %v1990_v26 }
0x12c6   :  { %2300 = vmatmul.msk.f32.gmra.mxu3 %vm1139_vm2, %v2009_v45 }
0x12f4   :  { %v2046_v16 = vpop.xlane.xlu0 %2045 }
0x12f5   :  { %v2050_v52 = vmul.f32 %v2046_v16, %v2980_v23 }
0x12f7   :  { %v2052_v17 = vsub.f32 %v2042_v6, %v2050_v52  ;;  %v2135_v6 = vld [vmem:[%s3497_s20] sm:$0xff] }
0x12f9   :  { %v2054_v18 = vmul.f32 %v2052_v17, %v2052_v17 }
0x12fb   :  { %v2056_v63 = vsel %vm298_vm3, %v2054_v18, 0.0 }
0x12fc   :  { %2057 = vadd.xlane.f32.xlu1 %v2056_v63 }
0x1349   :  { %v2039_v19 = vpop.f32.mrf.mxu3 }
0x134a   :  { %v2040_v20 = vadd.f32 %v2353_v4, %v2039_v19  ;;  %v2138_v4 = vld [vmem:[%s3497_s20 + $0x18] sm:$0xff]  ;;  %s2790_s20 = smov [#allocation20]  }
0x134b   :  { %2158 = vmatpush.msra.mxu0 %v2138_v4  ;;  %s2192_s28 = sshll.u32 %s2790_s20, 4  ;;  %s2193_s28 = int_to_ptr.vmem [resolvable:$true] %s2192_s28 }
0x134c   :  { %v2043_v21 = vadd.f32 %v2040_v20, %v1959_v53 }
0x134d   :  { %2159 = vmatpush.msra.mxu0 %v2137_v55 }
0x134e   :  { %v2047_v22 = vsel %vm298_vm3, %v2043_v21, 0.0 }
0x134f   :  { %2048 = vadd.xlane.f32.xlu2 %v2047_v22  ;;  %2160 = vmatpush.msra.mxu0 %v2136_v5 }
0x1351   :  { %2161 = vmatpush.msra.mxu0 %v2135_v6 }
0x136f   :  { %v2058_v28 = vpop.xlane.xlu1 %2057 }
0x1370   :  { %v2062_v11 = vmul.f32 %v2058_v28, %v2980_v23 }
0x1372   :  { %v2064_v29 = vadd.f32 1e-12, %v2062_v11 }
0x1374   :  { %2448 = vrsqrt.f32 %v2064_v29  ;;  %vm2072_vm5 = vweird.f32 %v2064_v29 }
0x137a   :  { %v2449_v34 = vpop.eup %2448 }
0x137b   :  { %v2067_v32 = vmul.f32 %v2449_v34, %v2064_v29  ;;  %vm2073_vm2 = vweird.f32 %v2449_v34 }
0x137c   :  { %vm2074_vm6 = vmor %vm2072_vm5, %vm2073_vm2 }
0x137d   :  { %v2068_v37 = vmul.f32 %v2449_v34, %v2067_v32 }
0x137f   :  { %v2069_v39 = vmul.f32 0.5, %v2068_v37 }
0x1381   :  { %v2070_v40 = vsub.f32 1.5, %v2069_v39 }
0x1383   :  { %v2071_v44 = vmul.f32 %v2449_v34, %v2070_v40 }
0x1385   :  { %v2075_v50 = vsel %vm2074_vm6, %v2449_v34, %v2071_v44 }
0x13c2   :  { %v2049_v43 = vpop.xlane.xlu2 %2048 }
0x13c3   :  { %v2051_v24 = vmul.f32 %v2049_v43, %v2980_v23 }
0x13c5   :  { %v2053_v25 = vsub.f32 %v2043_v21, %v2051_v24 }
0x13c7   :  { %v2055_v3 = vmul.f32 %v2053_v25, %v2053_v25 }
0x13c9   :  { %v2059_v27 = vsel %vm298_vm3, %v2055_v3, 0.0 }
0x13ca   :  { %2060 = vadd.xlane.f32.xlu2 %v2059_v27 }
0x143d   :  { %v2061_v33 = vpop.xlane.xlu2 %2060 }
0x143e   :  { %v2063_v36 = vmul.f32 %v2061_v33, %v2980_v23  ;;  %v2086_v23 = vmul.f32 %v2075_v50, %v2052_v17 }
0x1440   :  { %v2065_v38 = vadd.f32 1e-12, %v2063_v36  ;;  %v2091_v60 = vmul.f32 %v2354_v56, %v2086_v23 }
0x1442   :  { %2450 = vrsqrt.f32 %v2065_v38  ;;  %vm2082_vm8 = vweird.f32 %v2065_v38  ;;  %v2096_v0 = vadd.f32 %v2355_v61, %v2091_v60 }
0x1448   :  { %v2451_v41 = vpop.eup %2450 }
0x1449   :  { %v2077_v42 = vmul.f32 %v2451_v41, %v2065_v38  ;;  %vm2083_vm7 = vweird.f32 %v2451_v41 }
0x144a   :  { %vm2084_vm10 = vmor %vm2082_vm8, %vm2083_vm7 }
0x144b   :  { %v2078_v47 = vmul.f32 %v2451_v41, %v2077_v42 }
0x144d   :  { %v2079_v49 = vmul.f32 0.5, %v2078_v47 }
0x144f   :  { %v2080_v48 = vsub.f32 1.5, %v2079_v49 }
0x1451   :  { %v2081_v54 = vmul.f32 %v2451_v41, %v2080_v48 }
0x1453   :  { %v2085_v58 = vsel %vm2084_vm10, %v2451_v41, %v2081_v54 }
0x1454   :  { %v2087_v59 = vmul.f32 %v2085_v58, %v2053_v25 }
0x1456   :  { %v2092_v46 = vmul.f32 %v2354_v56, %v2087_v59 }
0x1458   :  { %v2097_v62 = vadd.f32 %v2355_v61, %v2092_v46 }
0x145a   :  { %v2099_v1 = vrot.slane %v2097_v62, 7 }
0x145c   :  { %v2102_v53 = vsel %vm2101_vm11, %v2096_v0, %v2099_v1 }
0x145d   :  { %2301 = vmatmul.msk.f32.vlgmr.msrb.gmra.mxu2 %vm298_vm3, %v2102_v53 }
0x14e0   :  { %v2131_v51 = vpop.f32.mrf.mxu2 }
0x14e1   :  { %v2132_v26 = vadd.f32 %v2356_v7, %v2131_v51 }
0x14e3   :  { %2452 = vtanh.f32 %v2132_v26 }
0x14e9   :  { %v2453_v35 = vpop.eup %2452 }
0x14ea   :  { %2302 = vmatmul.msk.f32.vlgmr.msra.gmra.mxu0 %vm298_vm3, %v2453_v35 }
0x1567   :  { %v2163_v10 = vpop.f32.mrf.mxu0 }
0x1568   :  { %v2164_v12 = vadd.f32 %v2357_v9, %v2163_v10 }
0x156a   :  { %v2303_v13 = vmul.f32 -1.442695, %v2164_v12 }
0x156c   :  { %2454 = vpow2.f32 %v2303_v13 }
0x1572   :  { %v2455_v14 = vpop.eup %2454 }
0x1573   :  { %v2169_v15 = vadd.f32 1.0, %v2455_v14 }
0x1575   :  { %2456 = vrcp.f32 %v2169_v15  ;;  %v2181_v52 = vand.u32 2147483648, %v2169_v15  ;;  %v2179_v18 = vand.u32 2147483647, %v2169_v15  ;;  %vm2175_vm3 = vweird.f32 %v2169_v15 }
0x1577   :  { %v2182_v19 = vor.u32 1.1754944e-38, %v2181_v52  ;;  %vm2180_vm13 = vcmp.eq.f32.partialorder %v2179_v18, 8.507059e+37 }
0x157b   :  { %v2457_v2 = vpop.eup %2456 }
0x157c   :  { %v2171_v45 = vmul.f32 %v2457_v2, %v2169_v15  ;;  %vm2176_vm12 = vweird.f32 %v2457_v2 }
0x157d   :  { %vm2177_vm15 = vmor %vm2175_vm3, %vm2176_vm12 }
0x157e   :  { %v2172_v16 = vsub.f32 1.0, %v2171_v45 }
0x1580   :  { %v2173_v17 = vmul.f32 %v2457_v2, %v2172_v16 }
0x1582   :  { %v2174_v63 = vadd.f32 %v2457_v2, %v2173_v17 }
0x1584   :  { %v2178_v20 = vsel %vm2177_vm15, %v2457_v2, %v2174_v63 }
0x1585   :  { %v2183_v21 = vsel %vm2180_vm13, %v2182_v19, %v2178_v20 }
0x1586   :  { %2186 = vst.msk [vmem:[#allocation20] sm:$0x3] %vm2185_vm9, %v2183_v21 }
0x1587   :  { %2197 = dma.vmem_to_hbm [thread:$0]  %s2193_s28, 32, %s2195_s18, [#allocation4]  }
0x1588   :  { %2758 = dma.done.wait [#allocation4], 32  }
0x1589   :  { %2759 = vsyncadd [#allocation4], 4294967264 }
0x158a   :  { %2202 = vsyncpa [#allocation3], 1 }
0x158b   :  { %2203 = vsyncpa [#allocation6], 1 }
0x158c   :  { %2204 = vsyncpa [#allocation9], 1 }
0x158d   :  { %2205 = vsyncpa [#allocation12], 1 }
0x158e   :  { %2206 = vsyncpa [#allocation15], 1 }
0x158f   :  { %2207 = vsyncpa [#allocation18], 1 }
0x1590   :  { %2208 = vsyncpa [#allocation4], 1 }

</bundles_post_ra>
